<compile_context>
chip_gen: v7x
topology: tpu7x:2x2x1
jax: 0.10.0
libtpu: 0.0.40
codegen_flags: <defaults>
</compile_context>

<pallas_src>
import jax
import jax.numpy as jnp
from jax.experimental import pallas as pl
from jax.experimental.pallas import tpu as pltpu


def lstm_kernel(x_ref, wih0_ref, whh0_ref, b0_ref,
                wih1_ref, whh1_ref, b1_ref,
                wfc_ref, bfc_ref,
                out_ref,
                g_scratch, hseq_scratch):
    """Full 2-layer LSTM + FC head + log-softmax, all operands resident in VMEM.

    x_ref       : (T*B, I)   bf16, time-major flattened input
    wih*_ref    : (in, 4H)   bf16, input->gates weights (pre-transposed, gate order i,f,g,o)
    whh*_ref    : (H, 4H)    bf16, hidden->gates weights (pre-transposed)
    b*_ref      : (1, 4H)    f32, combined bias (b_ih + b_hh)
    wfc_ref     : (H, C) bf16, bfc_ref: (1, C) f32
    out_ref     : (B, C)     f32 log-probabilities
    g_scratch   : (T*B, 4H)  f32  pre-activation buffer (reused by both layers)
    hseq_scratch: (T*B, H)   bf16 layer-0 hidden sequence (layer-1 matmul input)
    """
    TB = x_ref.shape[0]
    H = whh0_ref.shape[0]
    B = out_ref.shape[0]
    T = TB // B

    def sigmoid(z):
        # 0.5*(tanh(0.5 z)+1): single EUP push vs exp + reciprocal.
        return 0.5 * (jnp.tanh(0.5 * z) + 1.0)

    def recurrence(whh, emit_hseq):
        h = jnp.zeros((B, H), jnp.float32)
        c = jnp.zeros((B, H), jnp.float32)
        for t in range(T):                      # static unroll: short, fixed T
            r0 = t * B
            gates = (g_scratch[pl.ds(r0, B), :]
                     + jnp.dot(h.astype(jnp.bfloat16), whh,
                               preferred_element_type=jnp.float32))
            i = sigmoid(gates[:, 0:H])          # lane-aligned slices (H % 128 == 0)
            f = sigmoid(gates[:, H:2 * H])
            g = jnp.tanh(gates[:, 2 * H:3 * H])
            o = sigmoid(gates[:, 3 * H:4 * H])
            c = f * c + i * g                   # f32 state math
            h = o * jnp.tanh(c)
            if emit_hseq:
                hseq_scratch[pl.ds(r0, B), :] = h.astype(jnp.bfloat16)
        return h

    # ---- layer 0: batched input projection over all timesteps, then recurrence ----
    g_scratch[...] = (jnp.dot(x_ref[...], wih0_ref[...],
                              preferred_element_type=jnp.float32)
                      + b0_ref[...])
    whh0 = whh0_ref[...]                        # hoisted out of the serial loop
    recurrence(whh0, emit_hseq=True)

    # ---- layer 1: batched input projection of the layer-0 hidden sequence ----
    # TODO(synk): inter-layer nn.Dropout is training-only; eval forward == identity.
    g_scratch[...] = (jnp.dot(hseq_scratch[...], wih1_ref[...],
                              preferred_element_type=jnp.float32)
                      + b1_ref[...])
    whh1 = whh1_ref[...]
    h_last = recurrence(whh1, emit_hseq=False)

    # ---- FC head on the last timestep + LogSoftmax(dim=1) ----
    logits = (jnp.dot(h_last.astype(jnp.bfloat16), wfc_ref[...],
                      preferred_element_type=jnp.float32)
              + bfc_ref[...])
    m = jnp.max(logits, axis=1, keepdims=True)
    shifted = logits - m
    lse = jnp.log(jnp.sum(jnp.exp(shifted), axis=1, keepdims=True))
    out_ref[...] = shifted - lse


@jax.jit
def lstm_forward(x_btI, params):
    """x_btI: (B, T, I) batch-first (PyTorch convention). Returns (B, C) log-probs."""
    (wih0, whh0, b0, wih1, whh1, b1, wfc, bfc) = params
    B, T, I = x_btI.shape
    H = whh0.shape[0]
    C = wfc.shape[1]
    bf16 = jnp.bfloat16

    # Time-major and flattened to (T*B, I): the layer-0 input projection becomes a
    # single well-shaped MXU matmul in the kernel. I is tiny here, so the host-side
    # transpose beats strided per-timestep DMA.
    x_flat = jnp.transpose(x_btI, (1, 0, 2)).reshape(T * B, I).astype(bf16)

    vmem = pl.BlockSpec(memory_space=pltpu.MemorySpace.VMEM)
    return pl.pallas_call(
        lstm_kernel,
        out_shape=jax.ShapeDtypeStruct((B, C), jnp.float32),
        in_specs=[vmem] * 9,
        out_specs=vmem,
        scratch_shapes=[
            pltpu.VMEM((T * B, 4 * H), jnp.float32),   # pre-activations (reused by both layers)
            pltpu.VMEM((T * B, H), bf16),              # layer-0 hidden sequence
        ],
    )(x_flat,
      wih0.astype(bf16), whh0.astype(bf16), b0,
      wih1.astype(bf16), whh1.astype(bf16), b1,
      wfc.astype(bf16), bfc)


def init_params(key, input_size, hidden_size, num_classes):
    """Deterministic init mimicking PyTorch's U(-1/sqrt(H), 1/sqrt(H)). Stored f32;
    matmul operands are cast to bf16 in the wrapper."""
    H = hidden_size
    bound = 1.0 / jnp.sqrt(jnp.float32(H))
    keys = jax.random.split(key, 10)

    def u(k, shape):
        return jax.random.uniform(k, shape, jnp.float32, -bound, bound)

    wih0 = u(keys[0], (input_size, 4 * H))          # PyTorch W_ih^T
    whh0 = u(keys[1], (H, 4 * H))                   # PyTorch W_hh^T
    b0 = u(keys[2], (1, 4 * H)) + u(keys[3], (1, 4 * H))   # b_ih + b_hh
    wih1 = u(keys[4], (H, 4 * H))
    whh1 = u(keys[5], (H, 4 * H))
    b1 = u(keys[6], (1, 4 * H)) + u(keys[7], (1, 4 * H))
    wfc = u(keys[8], (H, num_classes))
    bfc = u(keys[9], (1, num_classes))
    return (wih0, whh0, b0, wih1, whh1, b1, wfc, bfc)


def lstm_reference(x_btI, params):
    """Pure-JAX reference (lax.scan) mirroring the kernel's bf16 matmul operands."""
    (wih0, whh0, b0, wih1, whh1, b1, wfc, bfc) = params
    B, T, I = x_btI.shape
    H = whh0.shape[0]
    bf16 = jnp.bfloat16

    def mm(a, w):
        return jnp.dot(a.astype(bf16), w.astype(bf16),
                       preferred_element_type=jnp.float32)

    def cell(x_t, h, c, wih, whh, b):
        g = mm(x_t, wih) + mm(h, whh) + b
        i = jax.nn.sigmoid(g[:, 0:H])
        f = jax.nn.sigmoid(g[:, H:2 * H])
        gg = jnp.tanh(g[:, 2 * H:3 * H])
        o = jax.nn.sigmoid(g[:, 3 * H:4 * H])
        c = f * c + i * gg
        h = o * jnp.tanh(c)
        return h, c

    def step(carry, x_t):
        h0, c0, h1, c1 = carry
        h0, c0 = cell(x_t, h0, c0, wih0, whh0, b0)
        h1, c1 = cell(h0, h1, c1, wih1, whh1, b1)
        return (h0, c0, h1, c1), None

    z = jnp.zeros((B, H), jnp.float32)
    (_, _, h1, _), _ = jax.lax.scan(step, (z, z, z, z),
                                    jnp.transpose(x_btI, (1, 0, 2)))
    logits = mm(h1, wfc) + bfc
    return jax.nn.log_softmax(logits, axis=1)


if __name__ == "__main__":
    # Small shapes consistent with the module: batch-first input, 2-layer LSTM,
    # FC head to num_classes. H chosen as a multiple of 128 (lane-aligned gates)
    # and B as a multiple of 8 (sublane-aligned) per the performance review.
    B, T, I, H, C = 8, 8, 16, 128, 4

    key = jax.random.PRNGKey(0)
    k_x, k_p = jax.random.split(key)
    x = jax.random.normal(k_x, (B, T, I), jnp.float32)
    params = init_params(k_p, I, H, C)

    out = jax.block_until_ready(lstm_forward(x, params))
    ref = lstm_reference(x, params)

    assert out.shape == (B, C)
    max_diff = jnp.max(jnp.abs(out - ref))
    assert jnp.allclose(out, ref, atol=1e-2, rtol=1e-2), (
        f"mismatch vs reference (max abs diff = {max_diff})")

    print("KERNEL_OK")
</pallas_src>

<mosaic_0001>
module attributes {stable_mosaic.version = 11 : i64} {
  func.func @lstm_kernel(%arg0: memref<64x16xbf16, #tpu.memory_space<vmem>>, %arg1: memref<16x512xbf16, #tpu.memory_space<vmem>>, %arg2: memref<128x512xbf16, #tpu.memory_space<vmem>>, %arg3: memref<1x512xf32, #tpu.memory_space<vmem>>, %arg4: memref<128x512xbf16, #tpu.memory_space<vmem>>, %arg5: memref<128x512xbf16, #tpu.memory_space<vmem>>, %arg6: memref<1x512xf32, #tpu.memory_space<vmem>>, %arg7: memref<128x4xbf16, #tpu.memory_space<vmem>>, %arg8: memref<1x4xf32, #tpu.memory_space<vmem>>, %arg9: memref<8x4xf32, #tpu.memory_space<vmem>>, %arg10: memref<64x512xf32, #tpu.memory_space<vmem>>, %arg11: memref<64x128xbf16, #tpu.memory_space<vmem>>) attributes {dimension_semantics = [], scalar_prefetch = 0 : i64, scratch_operands = 2 : i64, tpu.core_type = #tpu.core_type<tc>} {
    %c0 = arith.constant 0 : index
    %c0_0 = arith.constant 0 : index
    %0 = vector.load %arg0[%c0, %c0_0] : memref<64x16xbf16, #tpu.memory_space<vmem>>, vector<64x16xbf16>
    %c0_1 = arith.constant 0 : index
    %c0_2 = arith.constant 0 : index
    %1 = vector.load %arg1[%c0_1, %c0_2] : memref<16x512xbf16, #tpu.memory_space<vmem>>, vector<16x512xbf16>
    %cst = arith.constant dense<0.000000e+00> : vector<64x512xf32>
    %2 = tpu.matmul %0, %1, %cst {dimension_numbers = #tpu.dot_dimension_numbers<[1], [0], [0], [1], [0, 0, 1, 1], [], []>} : vector<64x16xbf16>, vector<16x512xbf16>, vector<64x512xf32> -> vector<64x512xf32>
    %c0_3 = arith.constant 0 : index
    %c0_4 = arith.constant 0 : index
    %3 = vector.load %arg3[%c0_3, %c0_4] : memref<1x512xf32, #tpu.memory_space<vmem>>, vector<1x512xf32>
    %4 = vector.broadcast %3 : vector<1x512xf32> to vector<64x512xf32>
    %5 = arith.addf %2, %4 : vector<64x512xf32>
    %c0_5 = arith.constant 0 : index
    %c0_6 = arith.constant 0 : index
    %6 = vector.load %arg10[%c0_5, %c0_6] : memref<64x512xf32, #tpu.memory_space<vmem>>, vector<64x512xf32>
    tpu.vector_store %arg10[%c0_5, %c0_6], %5 {strides = array<i32>} : memref<64x512xf32, #tpu.memory_space<vmem>>, vector<64x512xf32>,
    %c0_7 = arith.constant 0 : index
    %c0_8 = arith.constant 0 : index
    %7 = vector.load %arg2[%c0_7, %c0_8] : memref<128x512xbf16, #tpu.memory_space<vmem>>, vector<128x512xbf16>
    %cst_9 = arith.constant 0.000000e+00 : f32
    %8 = vector.broadcast %cst_9 : f32 to vector<8x128xf32>
    %cst_10 = arith.constant 0.000000e+00 : f32
    %9 = vector.broadcast %cst_10 : f32 to vector<8x128xf32>
    %c0_11 = arith.constant 0 : index
    %c0_12 = arith.constant 0 : index
    %10 = vector.load %arg10[%c0_11, %c0_12] : memref<64x512xf32, #tpu.memory_space<vmem>>, vector<8x512xf32>
    %11 = arith.truncf %8 : vector<8x128xf32> to vector<8x128xbf16>
    %cst_13 = arith.constant dense<0.000000e+00> : vector<8x512xf32>
    %12 = tpu.matmul %11, %7, %cst_13 {dimension_numbers = #tpu.dot_dimension_numbers<[1], [0], [0], [1], [0, 0, 1, 1], [], []>} : vector<8x128xbf16>, vector<128x512xbf16>, vector<8x512xf32> -> vector<8x512xf32>
    %13 = arith.addf %10, %12 : vector<8x512xf32>
    %14 = vector.extract_strided_slice %13 {offsets = [0, 0], sizes = [8, 128], strides = [1, 1]} : vector<8x512xf32> to vector<8x128xf32>
    %cst_14 = arith.constant 5.000000e-01 : f32
    %15 = vector.broadcast %cst_14 : f32 to vector<8x128xf32>
    %16 = arith.mulf %15, %14 : vector<8x128xf32>
    %17 = math.tanh %16 : vector<8x128xf32>
    %cst_15 = arith.constant 1.000000e+00 : f32
    %18 = vector.broadcast %cst_15 : f32 to vector<8x128xf32>
    %19 = arith.addf %17, %18 : vector<8x128xf32>
    %cst_16 = arith.constant 5.000000e-01 : f32
    %20 = vector.broadcast %cst_16 : f32 to vector<8x128xf32>
    %21 = arith.mulf %20, %19 : vector<8x128xf32>
    %22 = vector.extract_strided_slice %13 {offsets = [0, 128], sizes = [8, 128], strides = [1, 1]} : vector<8x512xf32> to vector<8x128xf32>
    %cst_17 = arith.constant 5.000000e-01 : f32
    %23 = vector.broadcast %cst_17 : f32 to vector<8x128xf32>
    %24 = arith.mulf %23, %22 : vector<8x128xf32>
    %25 = math.tanh %24 : vector<8x128xf32>
    %cst_18 = arith.constant 1.000000e+00 : f32
    %26 = vector.broadcast %cst_18 : f32 to vector<8x128xf32>
    %27 = arith.addf %25, %26 : vector<8x128xf32>
    %cst_19 = arith.constant 5.000000e-01 : f32
    %28 = vector.broadcast %cst_19 : f32 to vector<8x128xf32>
    %29 = arith.mulf %28, %27 : vector<8x128xf32>
    %30 = vector.extract_strided_slice %13 {offsets = [0, 256], sizes = [8, 128], strides = [1, 1]} : vector<8x512xf32> to vector<8x128xf32>
    %31 = math.tanh %30 : vector<8x128xf32>
    %32 = vector.extract_strided_slice %13 {offsets = [0, 384], sizes = [8, 128], strides = [1, 1]} : vector<8x512xf32> to vector<8x128xf32>
    %cst_20 = arith.constant 5.000000e-01 : f32
    %33 = vector.broadcast %cst_20 : f32 to vector<8x128xf32>
    %34 = arith.mulf %33, %32 : vector<8x128xf32>
    %35 = math.tanh %34 : vector<8x128xf32>
    %cst_21 = arith.constant 1.000000e+00 : f32
    %36 = vector.broadcast %cst_21 : f32 to vector<8x128xf32>
    %37 = arith.addf %35, %36 : vector<8x128xf32>
    %cst_22 = arith.constant 5.000000e-01 : f32
    %38 = vector.broadcast %cst_22 : f32 to vector<8x128xf32>
    %39 = arith.mulf %38, %37 : vector<8x128xf32>
    %40 = arith.mulf %29, %9 : vector<8x128xf32>
    %41 = arith.mulf %21, %31 : vector<8x128xf32>
    %42 = arith.addf %40, %41 : vector<8x128xf32>
    %43 = math.tanh %42 : vector<8x128xf32>
    %44 = arith.mulf %39, %43 : vector<8x128xf32>
    %45 = arith.truncf %44 : vector<8x128xf32> to vector<8x128xbf16>
    %c0_23 = arith.constant 0 : index
    %c0_24 = arith.constant 0 : index
    %46 = vector.load %arg11[%c0_23, %c0_24] : memref<64x128xbf16, #tpu.memory_space<vmem>>, vector<8x128xbf16>
    tpu.vector_store %arg11[%c0_23, %c0_24], %45 {strides = array<i32>} : memref<64x128xbf16, #tpu.memory_space<vmem>>, vector<8x128xbf16>,
    %c8 = arith.constant 8 : index
    %c0_25 = arith.constant 0 : index
    %47 = vector.load %arg10[%c8, %c0_25] : memref<64x512xf32, #tpu.memory_space<vmem>>, vector<8x512xf32>
    %48 = arith.truncf %44 : vector<8x128xf32> to vector<8x128xbf16>
    %cst_26 = arith.constant dense<0.000000e+00> : vector<8x512xf32>
    %49 = tpu.matmul %48, %7, %cst_26 {dimension_numbers = #tpu.dot_dimension_numbers<[1], [0], [0], [1], [0, 0, 1, 1], [], []>} : vector<8x128xbf16>, vector<128x512xbf16>, vector<8x512xf32> -> vector<8x512xf32>
    %50 = arith.addf %47, %49 : vector<8x512xf32>
    %51 = vector.extract_strided_slice %50 {offsets = [0, 0], sizes = [8, 128], strides = [1, 1]} : vector<8x512xf32> to vector<8x128xf32>
    %cst_27 = arith.constant 5.000000e-01 : f32
    %52 = vector.broadcast %cst_27 : f32 to vector<8x128xf32>
    %53 = arith.mulf %52, %51 : vector<8x128xf32>
    %54 = math.tanh %53 : vector<8x128xf32>
    %cst_28 = arith.constant 1.000000e+00 : f32
    %55 = vector.broadcast %cst_28 : f32 to vector<8x128xf32>
    %56 = arith.addf %54, %55 : vector<8x128xf32>
    %cst_29 = arith.constant 5.000000e-01 : f32
    %57 = vector.broadcast %cst_29 : f32 to vector<8x128xf32>
    %58 = arith.mulf %57, %56 : vector<8x128xf32>
    %59 = vector.extract_strided_slice %50 {offsets = [0, 128], sizes = [8, 128], strides = [1, 1]} : vector<8x512xf32> to vector<8x128xf32>
    %cst_30 = arith.constant 5.000000e-01 : f32
    %60 = vector.broadcast %cst_30 : f32 to vector<8x128xf32>
    %61 = arith.mulf %60, %59 : vector<8x128xf32>
    %62 = math.tanh %61 : vector<8x128xf32>
    %cst_31 = arith.constant 1.000000e+00 : f32
    %63 = vector.broadcast %cst_31 : f32 to vector<8x128xf32>
    %64 = arith.addf %62, %63 : vector<8x128xf32>
    %cst_32 = arith.constant 5.000000e-01 : f32
    %65 = vector.broadcast %cst_32 : f32 to vector<8x128xf32>
    %66 = arith.mulf %65, %64 : vector<8x128xf32>
    %67 = vector.extract_strided_slice %50 {offsets = [0, 256], sizes = [8, 128], strides = [1, 1]} : vector<8x512xf32> to vector<8x128xf32>
    %68 = math.tanh %67 : vector<8x128xf32>
    %69 = vector.extract_strided_slice %50 {offsets = [0, 384], sizes = [8, 128], strides = [1, 1]} : vector<8x512xf32> to vector<8x128xf32>
    %cst_33 = arith.constant 5.000000e-01 : f32
    %70 = vector.broadcast %cst_33 : f32 to vector<8x128xf32>
    %71 = arith.mulf %70, %69 : vector<8x128xf32>
    %72 = math.tanh %71 : vector<8x128xf32>
    %cst_34 = arith.constant 1.000000e+00 : f32
    %73 = vector.broadcast %cst_34 : f32 to vector<8x128xf32>
    %74 = arith.addf %72, %73 : vector<8x128xf32>
    %cst_35 = arith.constant 5.000000e-01 : f32
    %75 = vector.broadcast %cst_35 : f32 to vector<8x128xf32>
    %76 = arith.mulf %75, %74 : vector<8x128xf32>
    %77 = arith.mulf %66, %42 : vector<8x128xf32>
    %78 = arith.mulf %58, %68 : vector<8x128xf32>
    %79 = arith.addf %77, %78 : vector<8x128xf32>
    %80 = math.tanh %79 : vector<8x128xf32>
    %81 = arith.mulf %76, %80 : vector<8x128xf32>
    %82 = arith.truncf %81 : vector<8x128xf32> to vector<8x128xbf16>
    %c8_36 = arith.constant 8 : index
    %c0_37 = arith.constant 0 : index
    %83 = vector.load %arg11[%c8_36, %c0_37] : memref<64x128xbf16, #tpu.memory_space<vmem>>, vector<8x128xbf16>
    tpu.vector_store %arg11[%c8_36, %c0_37], %82 {strides = array<i32>} : memref<64x128xbf16, #tpu.memory_space<vmem>>, vector<8x128xbf16>,
    %c16 = arith.constant 16 : index
    %c0_38 = arith.constant 0 : index
    %84 = vector.load %arg10[%c16, %c0_38] : memref<64x512xf32, #tpu.memory_space<vmem>>, vector<8x512xf32>
    %85 = arith.truncf %81 : vector<8x128xf32> to vector<8x128xbf16>
    %cst_39 = arith.constant dense<0.000000e+00> : vector<8x512xf32>
    %86 = tpu.matmul %85, %7, %cst_39 {dimension_numbers = #tpu.dot_dimension_numbers<[1], [0], [0], [1], [0, 0, 1, 1], [], []>} : vector<8x128xbf16>, vector<128x512xbf16>, vector<8x512xf32> -> vector<8x512xf32>
    %87 = arith.addf %84, %86 : vector<8x512xf32>
    %88 = vector.extract_strided_slice %87 {offsets = [0, 0], sizes = [8, 128], strides = [1, 1]} : vector<8x512xf32> to vector<8x128xf32>
    %cst_40 = arith.constant 5.000000e-01 : f32
    %89 = vector.broadcast %cst_40 : f32 to vector<8x128xf32>
    %90 = arith.mulf %89, %88 : vector<8x128xf32>
    %91 = math.tanh %90 : vector<8x128xf32>
    %cst_41 = arith.constant 1.000000e+00 : f32
    %92 = vector.broadcast %cst_41 : f32 to vector<8x128xf32>
    %93 = arith.addf %91, %92 : vector<8x128xf32>
    %cst_42 = arith.constant 5.000000e-01 : f32
    %94 = vector.broadcast %cst_42 : f32 to vector<8x128xf32>
    %95 = arith.mulf %94, %93 : vector<8x128xf32>
    %96 = vector.extract_strided_slice %87 {offsets = [0, 128], sizes = [8, 128], strides = [1, 1]} : vector<8x512xf32> to vector<8x128xf32>
    %cst_43 = arith.constant 5.000000e-01 : f32
    %97 = vector.broadcast %cst_43 : f32 to vector<8x128xf32>
    %98 = arith.mulf %97, %96 : vector<8x128xf32>
    %99 = math.tanh %98 : vector<8x128xf32>
    %cst_44 = arith.constant 1.000000e+00 : f32
    %100 = vector.broadcast %cst_44 : f32 to vector<8x128xf32>
    %101 = arith.addf %99, %100 : vector<8x128xf32>
    %cst_45 = arith.constant 5.000000e-01 : f32
    %102 = vector.broadcast %cst_45 : f32 to vector<8x128xf32>
    %103 = arith.mulf %102, %101 : vector<8x128xf32>
    %104 = vector.extract_strided_slice %87 {offsets = [0, 256], sizes = [8, 128], strides = [1, 1]} : vector<8x512xf32> to vector<8x128xf32>
    %105 = math.tanh %104 : vector<8x128xf32>
    %106 = vector.extract_strided_slice %87 {offsets = [0, 384], sizes = [8, 128], strides = [1, 1]} : vector<8x512xf32> to vector<8x128xf32>
    %cst_46 = arith.constant 5.000000e-01 : f32
    %107 = vector.broadcast %cst_46 : f32 to vector<8x128xf32>
    %108 = arith.mulf %107, %106 : vector<8x128xf32>
    %109 = math.tanh %108 : vector<8x128xf32>
    %cst_47 = arith.constant 1.000000e+00 : f32
    %110 = vector.broadcast %cst_47 : f32 to vector<8x128xf32>
    %111 = arith.addf %109, %110 : vector<8x128xf32>
    %cst_48 = arith.constant 5.000000e-01 : f32
    %112 = vector.broadcast %cst_48 : f32 to vector<8x128xf32>
    %113 = arith.mulf %112, %111 : vector<8x128xf32>
    %114 = arith.mulf %103, %79 : vector<8x128xf32>
    %115 = arith.mulf %95, %105 : vector<8x128xf32>
    %116 = arith.addf %114, %115 : vector<8x128xf32>
    %117 = math.tanh %116 : vector<8x128xf32>
    %118 = arith.mulf %113, %117 : vector<8x128xf32>
    %119 = arith.truncf %118 : vector<8x128xf32> to vector<8x128xbf16>
    %c16_49 = arith.constant 16 : index
    %c0_50 = arith.constant 0 : index
    %120 = vector.load %arg11[%c16_49, %c0_50] : memref<64x128xbf16, #tpu.memory_space<vmem>>, vector<8x128xbf16>
    tpu.vector_store %arg11[%c16_49, %c0_50], %119 {strides = array<i32>} : memref<64x128xbf16, #tpu.memory_space<vmem>>, vector<8x128xbf16>,
    %c24 = arith.constant 24 : index
    %c0_51 = arith.constant 0 : index
    %121 = vector.load %arg10[%c24, %c0_51] : memref<64x512xf32, #tpu.memory_space<vmem>>, vector<8x512xf32>
    %122 = arith.truncf %118 : vector<8x128xf32> to vector<8x128xbf16>
    %cst_52 = arith.constant dense<0.000000e+00> : vector<8x512xf32>
    %123 = tpu.matmul %122, %7, %cst_52 {dimension_numbers = #tpu.dot_dimension_numbers<[1], [0], [0], [1], [0, 0, 1, 1], [], []>} : vector<8x128xbf16>, vector<128x512xbf16>, vector<8x512xf32> -> vector<8x512xf32>
    %124 = arith.addf %121, %123 : vector<8x512xf32>
    %125 = vector.extract_strided_slice %124 {offsets = [0, 0], sizes = [8, 128], strides = [1, 1]} : vector<8x512xf32> to vector<8x128xf32>
    %cst_53 = arith.constant 5.000000e-01 : f32
    %126 = vector.broadcast %cst_53 : f32 to vector<8x128xf32>
    %127 = arith.mulf %126, %125 : vector<8x128xf32>
    %128 = math.tanh %127 : vector<8x128xf32>
    %cst_54 = arith.constant 1.000000e+00 : f32
    %129 = vector.broadcast %cst_54 : f32 to vector<8x128xf32>
    %130 = arith.addf %128, %129 : vector<8x128xf32>
    %cst_55 = arith.constant 5.000000e-01 : f32
    %131 = vector.broadcast %cst_55 : f32 to vector<8x128xf32>
    %132 = arith.mulf %131, %130 : vector<8x128xf32>
    %133 = vector.extract_strided_slice %124 {offsets = [0, 128], sizes = [8, 128], strides = [1, 1]} : vector<8x512xf32> to vector<8x128xf32>
    %cst_56 = arith.constant 5.000000e-01 : f32
    %134 = vector.broadcast %cst_56 : f32 to vector<8x128xf32>
    %135 = arith.mulf %134, %133 : vector<8x128xf32>
    %136 = math.tanh %135 : vector<8x128xf32>
    %cst_57 = arith.constant 1.000000e+00 : f32
    %137 = vector.broadcast %cst_57 : f32 to vector<8x128xf32>
    %138 = arith.addf %136, %137 : vector<8x128xf32>
    %cst_58 = arith.constant 5.000000e-01 : f32
    %139 = vector.broadcast %cst_58 : f32 to vector<8x128xf32>
    %140 = arith.mulf %139, %138 : vector<8x128xf32>
    %141 = vector.extract_strided_slice %124 {offsets = [0, 256], sizes = [8, 128], strides = [1, 1]} : vector<8x512xf32> to vector<8x128xf32>
    %142 = math.tanh %141 : vector<8x128xf32>
    %143 = vector.extract_strided_slice %124 {offsets = [0, 384], sizes = [8, 128], strides = [1, 1]} : vector<8x512xf32> to vector<8x128xf32>
    %cst_59 = arith.constant 5.000000e-01 : f32
    %144 = vector.broadcast %cst_59 : f32 to vector<8x128xf32>
    %145 = arith.mulf %144, %143 : vector<8x128xf32>
    %146 = math.tanh %145 : vector<8x128xf32>
    %cst_60 = arith.constant 1.000000e+00 : f32
    %147 = vector.broadcast %cst_60 : f32 to vector<8x128xf32>
    %148 = arith.addf %146, %147 : vector<8x128xf32>
    %cst_61 = arith.constant 5.000000e-01 : f32
    %149 = vector.broadcast %cst_61 : f32 to vector<8x128xf32>
    %150 = arith.mulf %149, %148 : vector<8x128xf32>
    %151 = arith.mulf %140, %116 : vector<8x128xf32>
    %152 = arith.mulf %132, %142 : vector<8x128xf32>
    %153 = arith.addf %151, %152 : vector<8x128xf32>
    %154 = math.tanh %153 : vector<8x128xf32>
    %155 = arith.mulf %150, %154 : vector<8x128xf32>
    %156 = arith.truncf %155 : vector<8x128xf32> to vector<8x128xbf16>
    %c24_62 = arith.constant 24 : index
    %c0_63 = arith.constant 0 : index
    %157 = vector.load %arg11[%c24_62, %c0_63] : memref<64x128xbf16, #tpu.memory_space<vmem>>, vector<8x128xbf16>
    tpu.vector_store %arg11[%c24_62, %c0_63], %156 {strides = array<i32>} : memref<64x128xbf16, #tpu.memory_space<vmem>>, vector<8x128xbf16>,
    %c32 = arith.constant 32 : index
    %c0_64 = arith.constant 0 : index
    %158 = vector.load %arg10[%c32, %c0_64] : memref<64x512xf32, #tpu.memory_space<vmem>>, vector<8x512xf32>
    %159 = arith.truncf %155 : vector<8x128xf32> to vector<8x128xbf16>
    %cst_65 = arith.constant dense<0.000000e+00> : vector<8x512xf32>
    %160 = tpu.matmul %159, %7, %cst_65 {dimension_numbers = #tpu.dot_dimension_numbers<[1], [0], [0], [1], [0, 0, 1, 1], [], []>} : vector<8x128xbf16>, vector<128x512xbf16>, vector<8x512xf32> -> vector<8x512xf32>
    %161 = arith.addf %158, %160 : vector<8x512xf32>
    %162 = vector.extract_strided_slice %161 {offsets = [0, 0], sizes = [8, 128], strides = [1, 1]} : vector<8x512xf32> to vector<8x128xf32>
    %cst_66 = arith.constant 5.000000e-01 : f32
    %163 = vector.broadcast %cst_66 : f32 to vector<8x128xf32>
    %164 = arith.mulf %163, %162 : vector<8x128xf32>
    %165 = math.tanh %164 : vector<8x128xf32>
    %cst_67 = arith.constant 1.000000e+00 : f32
    %166 = vector.broadcast %cst_67 : f32 to vector<8x128xf32>
    %167 = arith.addf %165, %166 : vector<8x128xf32>
    %cst_68 = arith.constant 5.000000e-01 : f32
    %168 = vector.broadcast %cst_68 : f32 to vector<8x128xf32>
    %169 = arith.mulf %168, %167 : vector<8x128xf32>
    %170 = vector.extract_strided_slice %161 {offsets = [0, 128], sizes = [8, 128], strides = [1, 1]} : vector<8x512xf32> to vector<8x128xf32>
    %cst_69 = arith.constant 5.000000e-01 : f32
    %171 = vector.broadcast %cst_69 : f32 to vector<8x128xf32>
    %172 = arith.mulf %171, %170 : vector<8x128xf32>
    %173 = math.tanh %172 : vector<8x128xf32>
    %cst_70 = arith.constant 1.000000e+00 : f32
    %174 = vector.broadcast %cst_70 : f32 to vector<8x128xf32>
    %175 = arith.addf %173, %174 : vector<8x128xf32>
    %cst_71 = arith.constant 5.000000e-01 : f32
    %176 = vector.broadcast %cst_71 : f32 to vector<8x128xf32>
    %177 = arith.mulf %176, %175 : vector<8x128xf32>
    %178 = vector.extract_strided_slice %161 {offsets = [0, 256], sizes = [8, 128], strides = [1, 1]} : vector<8x512xf32> to vector<8x128xf32>
    %179 = math.tanh %178 : vector<8x128xf32>
    %180 = vector.extract_strided_slice %161 {offsets = [0, 384], sizes = [8, 128], strides = [1, 1]} : vector<8x512xf32> to vector<8x128xf32>
    %cst_72 = arith.constant 5.000000e-01 : f32
    %181 = vector.broadcast %cst_72 : f32 to vector<8x128xf32>
    %182 = arith.mulf %181, %180 : vector<8x128xf32>
    %183 = math.tanh %182 : vector<8x128xf32>
    %cst_73 = arith.constant 1.000000e+00 : f32
    %184 = vector.broadcast %cst_73 : f32 to vector<8x128xf32>
    %185 = arith.addf %183, %184 : vector<8x128xf32>
    %cst_74 = arith.constant 5.000000e-01 : f32
    %186 = vector.broadcast %cst_74 : f32 to vector<8x128xf32>
    %187 = arith.mulf %186, %185 : vector<8x128xf32>
    %188 = arith.mulf %177, %153 : vector<8x128xf32>
    %189 = arith.mulf %169, %179 : vector<8x128xf32>
    %190 = arith.addf %188, %189 : vector<8x128xf32>
    %191 = math.tanh %190 : vector<8x128xf32>
    %192 = arith.mulf %187, %191 : vector<8x128xf32>
    %193 = arith.truncf %192 : vector<8x128xf32> to vector<8x128xbf16>
    %c32_75 = arith.constant 32 : index
    %c0_76 = arith.constant 0 : index
    %194 = vector.load %arg11[%c32_75, %c0_76] : memref<64x128xbf16, #tpu.memory_space<vmem>>, vector<8x128xbf16>
    tpu.vector_store %arg11[%c32_75, %c0_76], %193 {strides = array<i32>} : memref<64x128xbf16, #tpu.memory_space<vmem>>, vector<8x128xbf16>,
    %c40 = arith.constant 40 : index
    %c0_77 = arith.constant 0 : index
    %195 = vector.load %arg10[%c40, %c0_77] : memref<64x512xf32, #tpu.memory_space<vmem>>, vector<8x512xf32>
    %196 = arith.truncf %192 : vector<8x128xf32> to vector<8x128xbf16>
    %cst_78 = arith.constant dense<0.000000e+00> : vector<8x512xf32>
    %197 = tpu.matmul %196, %7, %cst_78 {dimension_numbers = #tpu.dot_dimension_numbers<[1], [0], [0], [1], [0, 0, 1, 1], [], []>} : vector<8x128xbf16>, vector<128x512xbf16>, vector<8x512xf32> -> vector<8x512xf32>
    %198 = arith.addf %195, %197 : vector<8x512xf32>
    %199 = vector.extract_strided_slice %198 {offsets = [0, 0], sizes = [8, 128], strides = [1, 1]} : vector<8x512xf32> to vector<8x128xf32>
    %cst_79 = arith.constant 5.000000e-01 : f32
    %200 = vector.broadcast %cst_79 : f32 to vector<8x128xf32>
    %201 = arith.mulf %200, %199 : vector<8x128xf32>
    %202 = math.tanh %201 : vector<8x128xf32>
    %cst_80 = arith.constant 1.000000e+00 : f32
    %203 = vector.broadcast %cst_80 : f32 to vector<8x128xf32>
    %204 = arith.addf %202, %203 : vector<8x128xf32>
    %cst_81 = arith.constant 5.000000e-01 : f32
    %205 = vector.broadcast %cst_81 : f32 to vector<8x128xf32>
    %206 = arith.mulf %205, %204 : vector<8x128xf32>
    %207 = vector.extract_strided_slice %198 {offsets = [0, 128], sizes = [8, 128], strides = [1, 1]} : vector<8x512xf32> to vector<8x128xf32>
    %cst_82 = arith.constant 5.000000e-01 : f32
    %208 = vector.broadcast %cst_82 : f32 to vector<8x128xf32>
    %209 = arith.mulf %208, %207 : vector<8x128xf32>
    %210 = math.tanh %209 : vector<8x128xf32>
    %cst_83 = arith.constant 1.000000e+00 : f32
    %211 = vector.broadcast %cst_83 : f32 to vector<8x128xf32>
    %212 = arith.addf %210, %211 : vector<8x128xf32>
    %cst_84 = arith.constant 5.000000e-01 : f32
    %213 = vector.broadcast %cst_84 : f32 to vector<8x128xf32>
    %214 = arith.mulf %213, %212 : vector<8x128xf32>
    %215 = vector.extract_strided_slice %198 {offsets = [0, 256], sizes = [8, 128], strides = [1, 1]} : vector<8x512xf32> to vector<8x128xf32>
    %216 = math.tanh %215 : vector<8x128xf32>
    %217 = vector.extract_strided_slice %198 {offsets = [0, 384], sizes = [8, 128], strides = [1, 1]} : vector<8x512xf32> to vector<8x128xf32>
    %cst_85 = arith.constant 5.000000e-01 : f32
    %218 = vector.broadcast %cst_85 : f32 to vector<8x128xf32>
    %219 = arith.mulf %218, %217 : vector<8x128xf32>
    %220 = math.tanh %219 : vector<8x128xf32>
    %cst_86 = arith.constant 1.000000e+00 : f32
    %221 = vector.broadcast %cst_86 : f32 to vector<8x128xf32>
    %222 = arith.addf %220, %221 : vector<8x128xf32>
    %cst_87 = arith.constant 5.000000e-01 : f32
    %223 = vector.broadcast %cst_87 : f32 to vector<8x128xf32>
    %224 = arith.mulf %223, %222 : vector<8x128xf32>
    %225 = arith.mulf %214, %190 : vector<8x128xf32>
    %226 = arith.mulf %206, %216 : vector<8x128xf32>
    %227 = arith.addf %225, %226 : vector<8x128xf32>
    %228 = math.tanh %227 : vector<8x128xf32>
    %229 = arith.mulf %224, %228 : vector<8x128xf32>
    %230 = arith.truncf %229 : vector<8x128xf32> to vector<8x128xbf16>
    %c40_88 = arith.constant 40 : index
    %c0_89 = arith.constant 0 : index
    %231 = vector.load %arg11[%c40_88, %c0_89] : memref<64x128xbf16, #tpu.memory_space<vmem>>, vector<8x128xbf16>
    tpu.vector_store %arg11[%c40_88, %c0_89], %230 {strides = array<i32>} : memref<64x128xbf16, #tpu.memory_space<vmem>>, vector<8x128xbf16>,
    %c48 = arith.constant 48 : index
    %c0_90 = arith.constant 0 : index
    %232 = vector.load %arg10[%c48, %c0_90] : memref<64x512xf32, #tpu.memory_space<vmem>>, vector<8x512xf32>
    %233 = arith.truncf %229 : vector<8x128xf32> to vector<8x128xbf16>
    %cst_91 = arith.constant dense<0.000000e+00> : vector<8x512xf32>
    %234 = tpu.matmul %233, %7, %cst_91 {dimension_numbers = #tpu.dot_dimension_numbers<[1], [0], [0], [1], [0, 0, 1, 1], [], []>} : vector<8x128xbf16>, vector<128x512xbf16>, vector<8x512xf32> -> vector<8x512xf32>
    %235 = arith.addf %232, %234 : vector<8x512xf32>
    %236 = vector.extract_strided_slice %235 {offsets = [0, 0], sizes = [8, 128], strides = [1, 1]} : vector<8x512xf32> to vector<8x128xf32>
    %cst_92 = arith.constant 5.000000e-01 : f32
    %237 = vector.broadcast %cst_92 : f32 to vector<8x128xf32>
    %238 = arith.mulf %237, %236 : vector<8x128xf32>
    %239 = math.tanh %238 : vector<8x128xf32>
    %cst_93 = arith.constant 1.000000e+00 : f32
    %240 = vector.broadcast %cst_93 : f32 to vector<8x128xf32>
    %241 = arith.addf %239, %240 : vector<8x128xf32>
    %cst_94 = arith.constant 5.000000e-01 : f32
    %242 = vector.broadcast %cst_94 : f32 to vector<8x128xf32>
    %243 = arith.mulf %242, %241 : vector<8x128xf32>
    %244 = vector.extract_strided_slice %235 {offsets = [0, 128], sizes = [8, 128], strides = [1, 1]} : vector<8x512xf32> to vector<8x128xf32>
    %cst_95 = arith.constant 5.000000e-01 : f32
    %245 = vector.broadcast %cst_95 : f32 to vector<8x128xf32>
    %246 = arith.mulf %245, %244 : vector<8x128xf32>
    %247 = math.tanh %246 : vector<8x128xf32>
    %cst_96 = arith.constant 1.000000e+00 : f32
    %248 = vector.broadcast %cst_96 : f32 to vector<8x128xf32>
    %249 = arith.addf %247, %248 : vector<8x128xf32>
    %cst_97 = arith.constant 5.000000e-01 : f32
    %250 = vector.broadcast %cst_97 : f32 to vector<8x128xf32>
    %251 = arith.mulf %250, %249 : vector<8x128xf32>
    %252 = vector.extract_strided_slice %235 {offsets = [0, 256], sizes = [8, 128], strides = [1, 1]} : vector<8x512xf32> to vector<8x128xf32>
    %253 = math.tanh %252 : vector<8x128xf32>
    %254 = vector.extract_strided_slice %235 {offsets = [0, 384], sizes = [8, 128], strides = [1, 1]} : vector<8x512xf32> to vector<8x128xf32>
    %cst_98 = arith.constant 5.000000e-01 : f32
    %255 = vector.broadcast %cst_98 : f32 to vector<8x128xf32>
    %256 = arith.mulf %255, %254 : vector<8x128xf32>
    %257 = math.tanh %256 : vector<8x128xf32>
    %cst_99 = arith.constant 1.000000e+00 : f32
    %258 = vector.broadcast %cst_99 : f32 to vector<8x128xf32>
    %259 = arith.addf %257, %258 : vector<8x128xf32>
    %cst_100 = arith.constant 5.000000e-01 : f32
    %260 = vector.broadcast %cst_100 : f32 to vector<8x128xf32>
    %261 = arith.mulf %260, %259 : vector<8x128xf32>
    %262 = arith.mulf %251, %227 : vector<8x128xf32>
    %263 = arith.mulf %243, %253 : vector<8x128xf32>
    %264 = arith.addf %262, %263 : vector<8x128xf32>
    %265 = math.tanh %264 : vector<8x128xf32>
    %266 = arith.mulf %261, %265 : vector<8x128xf32>
    %267 = arith.truncf %266 : vector<8x128xf32> to vector<8x128xbf16>
    %c48_101 = arith.constant 48 : index
    %c0_102 = arith.constant 0 : index
    %268 = vector.load %arg11[%c48_101, %c0_102] : memref<64x128xbf16, #tpu.memory_space<vmem>>, vector<8x128xbf16>
    tpu.vector_store %arg11[%c48_101, %c0_102], %267 {strides = array<i32>} : memref<64x128xbf16, #tpu.memory_space<vmem>>, vector<8x128xbf16>,
    %c56 = arith.constant 56 : index
    %c0_103 = arith.constant 0 : index
    %269 = vector.load %arg10[%c56, %c0_103] : memref<64x512xf32, #tpu.memory_space<vmem>>, vector<8x512xf32>
    %270 = arith.truncf %266 : vector<8x128xf32> to vector<8x128xbf16>
    %cst_104 = arith.constant dense<0.000000e+00> : vector<8x512xf32>
    %271 = tpu.matmul %270, %7, %cst_104 {dimension_numbers = #tpu.dot_dimension_numbers<[1], [0], [0], [1], [0, 0, 1, 1], [], []>} : vector<8x128xbf16>, vector<128x512xbf16>, vector<8x512xf32> -> vector<8x512xf32>
    %272 = arith.addf %269, %271 : vector<8x512xf32>
    %273 = vector.extract_strided_slice %272 {offsets = [0, 0], sizes = [8, 128], strides = [1, 1]} : vector<8x512xf32> to vector<8x128xf32>
    %cst_105 = arith.constant 5.000000e-01 : f32
    %274 = vector.broadcast %cst_105 : f32 to vector<8x128xf32>
    %275 = arith.mulf %274, %273 : vector<8x128xf32>
    %276 = math.tanh %275 : vector<8x128xf32>
    %cst_106 = arith.constant 1.000000e+00 : f32
    %277 = vector.broadcast %cst_106 : f32 to vector<8x128xf32>
    %278 = arith.addf %276, %277 : vector<8x128xf32>
    %cst_107 = arith.constant 5.000000e-01 : f32
    %279 = vector.broadcast %cst_107 : f32 to vector<8x128xf32>
    %280 = arith.mulf %279, %278 : vector<8x128xf32>
    %281 = vector.extract_strided_slice %272 {offsets = [0, 128], sizes = [8, 128], strides = [1, 1]} : vector<8x512xf32> to vector<8x128xf32>
    %cst_108 = arith.constant 5.000000e-01 : f32
    %282 = vector.broadcast %cst_108 : f32 to vector<8x128xf32>
    %283 = arith.mulf %282, %281 : vector<8x128xf32>
    %284 = math.tanh %283 : vector<8x128xf32>
    %cst_109 = arith.constant 1.000000e+00 : f32
    %285 = vector.broadcast %cst_109 : f32 to vector<8x128xf32>
    %286 = arith.addf %284, %285 : vector<8x128xf32>
    %cst_110 = arith.constant 5.000000e-01 : f32
    %287 = vector.broadcast %cst_110 : f32 to vector<8x128xf32>
    %288 = arith.mulf %287, %286 : vector<8x128xf32>
    %289 = vector.extract_strided_slice %272 {offsets = [0, 256], sizes = [8, 128], strides = [1, 1]} : vector<8x512xf32> to vector<8x128xf32>
    %290 = math.tanh %289 : vector<8x128xf32>
    %291 = vector.extract_strided_slice %272 {offsets = [0, 384], sizes = [8, 128], strides = [1, 1]} : vector<8x512xf32> to vector<8x128xf32>
    %cst_111 = arith.constant 5.000000e-01 : f32
    %292 = vector.broadcast %cst_111 : f32 to vector<8x128xf32>
    %293 = arith.mulf %292, %291 : vector<8x128xf32>
    %294 = math.tanh %293 : vector<8x128xf32>
    %cst_112 = arith.constant 1.000000e+00 : f32
    %295 = vector.broadcast %cst_112 : f32 to vector<8x128xf32>
    %296 = arith.addf %294, %295 : vector<8x128xf32>
    %cst_113 = arith.constant 5.000000e-01 : f32
    %297 = vector.broadcast %cst_113 : f32 to vector<8x128xf32>
    %298 = arith.mulf %297, %296 : vector<8x128xf32>
    %299 = arith.mulf %288, %264 : vector<8x128xf32>
    %300 = arith.mulf %280, %290 : vector<8x128xf32>
    %301 = arith.addf %299, %300 : vector<8x128xf32>
    %302 = math.tanh %301 : vector<8x128xf32>
    %303 = arith.mulf %298, %302 : vector<8x128xf32>
    %304 = arith.truncf %303 : vector<8x128xf32> to vector<8x128xbf16>
    %c56_114 = arith.constant 56 : index
    %c0_115 = arith.constant 0 : index
    %305 = vector.load %arg11[%c56_114, %c0_115] : memref<64x128xbf16, #tpu.memory_space<vmem>>, vector<8x128xbf16>
    tpu.vector_store %arg11[%c56_114, %c0_115], %304 {strides = array<i32>} : memref<64x128xbf16, #tpu.memory_space<vmem>>, vector<8x128xbf16>,
    %c0_116 = arith.constant 0 : index
    %c0_117 = arith.constant 0 : index
    %306 = vector.load %arg11[%c0_116, %c0_117] : memref<64x128xbf16, #tpu.memory_space<vmem>>, vector<64x128xbf16>
    %c0_118 = arith.constant 0 : index
    %c0_119 = arith.constant 0 : index
    %307 = vector.load %arg4[%c0_118, %c0_119] : memref<128x512xbf16, #tpu.memory_space<vmem>>, vector<128x512xbf16>
    %cst_120 = arith.constant dense<0.000000e+00> : vector<64x512xf32>
    %308 = tpu.matmul %306, %307, %cst_120 {dimension_numbers = #tpu.dot_dimension_numbers<[1], [0], [0], [1], [0, 0, 1, 1], [], []>} : vector<64x128xbf16>, vector<128x512xbf16>, vector<64x512xf32> -> vector<64x512xf32>
    %c0_121 = arith.constant 0 : index
    %c0_122 = arith.constant 0 : index
    %309 = vector.load %arg6[%c0_121, %c0_122] : memref<1x512xf32, #tpu.memory_space<vmem>>, vector<1x512xf32>
    %310 = vector.broadcast %309 : vector<1x512xf32> to vector<64x512xf32>
    %311 = arith.addf %308, %310 : vector<64x512xf32>
    %c0_123 = arith.constant 0 : index
    %c0_124 = arith.constant 0 : index
    %312 = vector.load %arg10[%c0_123, %c0_124] : memref<64x512xf32, #tpu.memory_space<vmem>>, vector<64x512xf32>
    tpu.vector_store %arg10[%c0_123, %c0_124], %311 {strides = array<i32>} : memref<64x512xf32, #tpu.memory_space<vmem>>, vector<64x512xf32>,
    %c0_125 = arith.constant 0 : index
    %c0_126 = arith.constant 0 : index
    %313 = vector.load %arg5[%c0_125, %c0_126] : memref<128x512xbf16, #tpu.memory_space<vmem>>, vector<128x512xbf16>
    %cst_127 = arith.constant 0.000000e+00 : f32
    %314 = vector.broadcast %cst_127 : f32 to vector<8x128xf32>
    %cst_128 = arith.constant 0.000000e+00 : f32
    %315 = vector.broadcast %cst_128 : f32 to vector<8x128xf32>
    %c0_129 = arith.constant 0 : index
    %c0_130 = arith.constant 0 : index
    %316 = vector.load %arg10[%c0_129, %c0_130] : memref<64x512xf32, #tpu.memory_space<vmem>>, vector<8x512xf32>
    %317 = arith.truncf %314 : vector<8x128xf32> to vector<8x128xbf16>
    %cst_131 = arith.constant dense<0.000000e+00> : vector<8x512xf32>
    %318 = tpu.matmul %317, %313, %cst_131 {dimension_numbers = #tpu.dot_dimension_numbers<[1], [0], [0], [1], [0, 0, 1, 1], [], []>} : vector<8x128xbf16>, vector<128x512xbf16>, vector<8x512xf32> -> vector<8x512xf32>
    %319 = arith.addf %316, %318 : vector<8x512xf32>
    %320 = vector.extract_strided_slice %319 {offsets = [0, 0], sizes = [8, 128], strides = [1, 1]} : vector<8x512xf32> to vector<8x128xf32>
    %cst_132 = arith.constant 5.000000e-01 : f32
    %321 = vector.broadcast %cst_132 : f32 to vector<8x128xf32>
    %322 = arith.mulf %321, %320 : vector<8x128xf32>
    %323 = math.tanh %322 : vector<8x128xf32>
    %cst_133 = arith.constant 1.000000e+00 : f32
    %324 = vector.broadcast %cst_133 : f32 to vector<8x128xf32>
    %325 = arith.addf %323, %324 : vector<8x128xf32>
    %cst_134 = arith.constant 5.000000e-01 : f32
    %326 = vector.broadcast %cst_134 : f32 to vector<8x128xf32>
    %327 = arith.mulf %326, %325 : vector<8x128xf32>
    %328 = vector.extract_strided_slice %319 {offsets = [0, 128], sizes = [8, 128], strides = [1, 1]} : vector<8x512xf32> to vector<8x128xf32>
    %cst_135 = arith.constant 5.000000e-01 : f32
    %329 = vector.broadcast %cst_135 : f32 to vector<8x128xf32>
    %330 = arith.mulf %329, %328 : vector<8x128xf32>
    %331 = math.tanh %330 : vector<8x128xf32>
    %cst_136 = arith.constant 1.000000e+00 : f32
    %332 = vector.broadcast %cst_136 : f32 to vector<8x128xf32>
    %333 = arith.addf %331, %332 : vector<8x128xf32>
    %cst_137 = arith.constant 5.000000e-01 : f32
    %334 = vector.broadcast %cst_137 : f32 to vector<8x128xf32>
    %335 = arith.mulf %334, %333 : vector<8x128xf32>
    %336 = vector.extract_strided_slice %319 {offsets = [0, 256], sizes = [8, 128], strides = [1, 1]} : vector<8x512xf32> to vector<8x128xf32>
    %337 = math.tanh %336 : vector<8x128xf32>
    %338 = vector.extract_strided_slice %319 {offsets = [0, 384], sizes = [8, 128], strides = [1, 1]} : vector<8x512xf32> to vector<8x128xf32>
    %cst_138 = arith.constant 5.000000e-01 : f32
    %339 = vector.broadcast %cst_138 : f32 to vector<8x128xf32>
    %340 = arith.mulf %339, %338 : vector<8x128xf32>
    %341 = math.tanh %340 : vector<8x128xf32>
    %cst_139 = arith.constant 1.000000e+00 : f32
    %342 = vector.broadcast %cst_139 : f32 to vector<8x128xf32>
    %343 = arith.addf %341, %342 : vector<8x128xf32>
    %cst_140 = arith.constant 5.000000e-01 : f32
    %344 = vector.broadcast %cst_140 : f32 to vector<8x128xf32>
    %345 = arith.mulf %344, %343 : vector<8x128xf32>
    %346 = arith.mulf %335, %315 : vector<8x128xf32>
    %347 = arith.mulf %327, %337 : vector<8x128xf32>
    %348 = arith.addf %346, %347 : vector<8x128xf32>
    %349 = math.tanh %348 : vector<8x128xf32>
    %350 = arith.mulf %345, %349 : vector<8x128xf32>
    %c8_141 = arith.constant 8 : index
    %c0_142 = arith.constant 0 : index
    %351 = vector.load %arg10[%c8_141, %c0_142] : memref<64x512xf32, #tpu.memory_space<vmem>>, vector<8x512xf32>
    %352 = arith.truncf %350 : vector<8x128xf32> to vector<8x128xbf16>
    %cst_143 = arith.constant dense<0.000000e+00> : vector<8x512xf32>
    %353 = tpu.matmul %352, %313, %cst_143 {dimension_numbers = #tpu.dot_dimension_numbers<[1], [0], [0], [1], [0, 0, 1, 1], [], []>} : vector<8x128xbf16>, vector<128x512xbf16>, vector<8x512xf32> -> vector<8x512xf32>
    %354 = arith.addf %351, %353 : vector<8x512xf32>
    %355 = vector.extract_strided_slice %354 {offsets = [0, 0], sizes = [8, 128], strides = [1, 1]} : vector<8x512xf32> to vector<8x128xf32>
    %cst_144 = arith.constant 5.000000e-01 : f32
    %356 = vector.broadcast %cst_144 : f32 to vector<8x128xf32>
    %357 = arith.mulf %356, %355 : vector<8x128xf32>
    %358 = math.tanh %357 : vector<8x128xf32>
    %cst_145 = arith.constant 1.000000e+00 : f32
    %359 = vector.broadcast %cst_145 : f32 to vector<8x128xf32>
    %360 = arith.addf %358, %359 : vector<8x128xf32>
    %cst_146 = arith.constant 5.000000e-01 : f32
    %361 = vector.broadcast %cst_146 : f32 to vector<8x128xf32>
    %362 = arith.mulf %361, %360 : vector<8x128xf32>
    %363 = vector.extract_strided_slice %354 {offsets = [0, 128], sizes = [8, 128], strides = [1, 1]} : vector<8x512xf32> to vector<8x128xf32>
    %cst_147 = arith.constant 5.000000e-01 : f32
    %364 = vector.broadcast %cst_147 : f32 to vector<8x128xf32>
    %365 = arith.mulf %364, %363 : vector<8x128xf32>
    %366 = math.tanh %365 : vector<8x128xf32>
    %cst_148 = arith.constant 1.000000e+00 : f32
    %367 = vector.broadcast %cst_148 : f32 to vector<8x128xf32>
    %368 = arith.addf %366, %367 : vector<8x128xf32>
    %cst_149 = arith.constant 5.000000e-01 : f32
    %369 = vector.broadcast %cst_149 : f32 to vector<8x128xf32>
    %370 = arith.mulf %369, %368 : vector<8x128xf32>
    %371 = vector.extract_strided_slice %354 {offsets = [0, 256], sizes = [8, 128], strides = [1, 1]} : vector<8x512xf32> to vector<8x128xf32>
    %372 = math.tanh %371 : vector<8x128xf32>
    %373 = vector.extract_strided_slice %354 {offsets = [0, 384], sizes = [8, 128], strides = [1, 1]} : vector<8x512xf32> to vector<8x128xf32>
    %cst_150 = arith.constant 5.000000e-01 : f32
    %374 = vector.broadcast %cst_150 : f32 to vector<8x128xf32>
    %375 = arith.mulf %374, %373 : vector<8x128xf32>
    %376 = math.tanh %375 : vector<8x128xf32>
    %cst_151 = arith.constant 1.000000e+00 : f32
    %377 = vector.broadcast %cst_151 : f32 to vector<8x128xf32>
    %378 = arith.addf %376, %377 : vector<8x128xf32>
    %cst_152 = arith.constant 5.000000e-01 : f32
    %379 = vector.broadcast %cst_152 : f32 to vector<8x128xf32>
    %380 = arith.mulf %379, %378 : vector<8x128xf32>
    %381 = arith.mulf %370, %348 : vector<8x128xf32>
    %382 = arith.mulf %362, %372 : vector<8x128xf32>
    %383 = arith.addf %381, %382 : vector<8x128xf32>
    %384 = math.tanh %383 : vector<8x128xf32>
    %385 = arith.mulf %380, %384 : vector<8x128xf32>
    %c16_153 = arith.constant 16 : index
    %c0_154 = arith.constant 0 : index
    %386 = vector.load %arg10[%c16_153, %c0_154] : memref<64x512xf32, #tpu.memory_space<vmem>>, vector<8x512xf32>
    %387 = arith.truncf %385 : vector<8x128xf32> to vector<8x128xbf16>
    %cst_155 = arith.constant dense<0.000000e+00> : vector<8x512xf32>
    %388 = tpu.matmul %387, %313, %cst_155 {dimension_numbers = #tpu.dot_dimension_numbers<[1], [0], [0], [1], [0, 0, 1, 1], [], []>} : vector<8x128xbf16>, vector<128x512xbf16>, vector<8x512xf32> -> vector<8x512xf32>
    %389 = arith.addf %386, %388 : vector<8x512xf32>
    %390 = vector.extract_strided_slice %389 {offsets = [0, 0], sizes = [8, 128], strides = [1, 1]} : vector<8x512xf32> to vector<8x128xf32>
    %cst_156 = arith.constant 5.000000e-01 : f32
    %391 = vector.broadcast %cst_156 : f32 to vector<8x128xf32>
    %392 = arith.mulf %391, %390 : vector<8x128xf32>
    %393 = math.tanh %392 : vector<8x128xf32>
    %cst_157 = arith.constant 1.000000e+00 : f32
    %394 = vector.broadcast %cst_157 : f32 to vector<8x128xf32>
    %395 = arith.addf %393, %394 : vector<8x128xf32>
    %cst_158 = arith.constant 5.000000e-01 : f32
    %396 = vector.broadcast %cst_158 : f32 to vector<8x128xf32>
    %397 = arith.mulf %396, %395 : vector<8x128xf32>
    %398 = vector.extract_strided_slice %389 {offsets = [0, 128], sizes = [8, 128], strides = [1, 1]} : vector<8x512xf32> to vector<8x128xf32>
    %cst_159 = arith.constant 5.000000e-01 : f32
    %399 = vector.broadcast %cst_159 : f32 to vector<8x128xf32>
    %400 = arith.mulf %399, %398 : vector<8x128xf32>
    %401 = math.tanh %400 : vector<8x128xf32>
    %cst_160 = arith.constant 1.000000e+00 : f32
    %402 = vector.broadcast %cst_160 : f32 to vector<8x128xf32>
    %403 = arith.addf %401, %402 : vector<8x128xf32>
    %cst_161 = arith.constant 5.000000e-01 : f32
    %404 = vector.broadcast %cst_161 : f32 to vector<8x128xf32>
    %405 = arith.mulf %404, %403 : vector<8x128xf32>
    %406 = vector.extract_strided_slice %389 {offsets = [0, 256], sizes = [8, 128], strides = [1, 1]} : vector<8x512xf32> to vector<8x128xf32>
    %407 = math.tanh %406 : vector<8x128xf32>
    %408 = vector.extract_strided_slice %389 {offsets = [0, 384], sizes = [8, 128], strides = [1, 1]} : vector<8x512xf32> to vector<8x128xf32>
    %cst_162 = arith.constant 5.000000e-01 : f32
    %409 = vector.broadcast %cst_162 : f32 to vector<8x128xf32>
    %410 = arith.mulf %409, %408 : vector<8x128xf32>
    %411 = math.tanh %410 : vector<8x128xf32>
    %cst_163 = arith.constant 1.000000e+00 : f32
    %412 = vector.broadcast %cst_163 : f32 to vector<8x128xf32>
    %413 = arith.addf %411, %412 : vector<8x128xf32>
    %cst_164 = arith.constant 5.000000e-01 : f32
    %414 = vector.broadcast %cst_164 : f32 to vector<8x128xf32>
    %415 = arith.mulf %414, %413 : vector<8x128xf32>
    %416 = arith.mulf %405, %383 : vector<8x128xf32>
    %417 = arith.mulf %397, %407 : vector<8x128xf32>
    %418 = arith.addf %416, %417 : vector<8x128xf32>
    %419 = math.tanh %418 : vector<8x128xf32>
    %420 = arith.mulf %415, %419 : vector<8x128xf32>
    %c24_165 = arith.constant 24 : index
    %c0_166 = arith.constant 0 : index
    %421 = vector.load %arg10[%c24_165, %c0_166] : memref<64x512xf32, #tpu.memory_space<vmem>>, vector<8x512xf32>
    %422 = arith.truncf %420 : vector<8x128xf32> to vector<8x128xbf16>
    %cst_167 = arith.constant dense<0.000000e+00> : vector<8x512xf32>
    %423 = tpu.matmul %422, %313, %cst_167 {dimension_numbers = #tpu.dot_dimension_numbers<[1], [0], [0], [1], [0, 0, 1, 1], [], []>} : vector<8x128xbf16>, vector<128x512xbf16>, vector<8x512xf32> -> vector<8x512xf32>
    %424 = arith.addf %421, %423 : vector<8x512xf32>
    %425 = vector.extract_strided_slice %424 {offsets = [0, 0], sizes = [8, 128], strides = [1, 1]} : vector<8x512xf32> to vector<8x128xf32>
    %cst_168 = arith.constant 5.000000e-01 : f32
    %426 = vector.broadcast %cst_168 : f32 to vector<8x128xf32>
    %427 = arith.mulf %426, %425 : vector<8x128xf32>
    %428 = math.tanh %427 : vector<8x128xf32>
    %cst_169 = arith.constant 1.000000e+00 : f32
    %429 = vector.broadcast %cst_169 : f32 to vector<8x128xf32>
    %430 = arith.addf %428, %429 : vector<8x128xf32>
    %cst_170 = arith.constant 5.000000e-01 : f32
    %431 = vector.broadcast %cst_170 : f32 to vector<8x128xf32>
    %432 = arith.mulf %431, %430 : vector<8x128xf32>
    %433 = vector.extract_strided_slice %424 {offsets = [0, 128], sizes = [8, 128], strides = [1, 1]} : vector<8x512xf32> to vector<8x128xf32>
    %cst_171 = arith.constant 5.000000e-01 : f32
    %434 = vector.broadcast %cst_171 : f32 to vector<8x128xf32>
    %435 = arith.mulf %434, %433 : vector<8x128xf32>
    %436 = math.tanh %435 : vector<8x128xf32>
    %cst_172 = arith.constant 1.000000e+00 : f32
    %437 = vector.broadcast %cst_172 : f32 to vector<8x128xf32>
    %438 = arith.addf %436, %437 : vector<8x128xf32>
    %cst_173 = arith.constant 5.000000e-01 : f32
    %439 = vector.broadcast %cst_173 : f32 to vector<8x128xf32>
    %440 = arith.mulf %439, %438 : vector<8x128xf32>
    %441 = vector.extract_strided_slice %424 {offsets = [0, 256], sizes = [8, 128], strides = [1, 1]} : vector<8x512xf32> to vector<8x128xf32>
    %442 = math.tanh %441 : vector<8x128xf32>
    %443 = vector.extract_strided_slice %424 {offsets = [0, 384], sizes = [8, 128], strides = [1, 1]} : vector<8x512xf32> to vector<8x128xf32>
    %cst_174 = arith.constant 5.000000e-01 : f32
    %444 = vector.broadcast %cst_174 : f32 to vector<8x128xf32>
    %445 = arith.mulf %444, %443 : vector<8x128xf32>
    %446 = math.tanh %445 : vector<8x128xf32>
    %cst_175 = arith.constant 1.000000e+00 : f32
    %447 = vector.broadcast %cst_175 : f32 to vector<8x128xf32>
    %448 = arith.addf %446, %447 : vector<8x128xf32>
    %cst_176 = arith.constant 5.000000e-01 : f32
    %449 = vector.broadcast %cst_176 : f32 to vector<8x128xf32>
    %450 = arith.mulf %449, %448 : vector<8x128xf32>
    %451 = arith.mulf %440, %418 : vector<8x128xf32>
    %452 = arith.mulf %432, %442 : vector<8x128xf32>
    %453 = arith.addf %451, %452 : vector<8x128xf32>
    %454 = math.tanh %453 : vector<8x128xf32>
    %455 = arith.mulf %450, %454 : vector<8x128xf32>
    %c32_177 = arith.constant 32 : index
    %c0_178 = arith.constant 0 : index
    %456 = vector.load %arg10[%c32_177, %c0_178] : memref<64x512xf32, #tpu.memory_space<vmem>>, vector<8x512xf32>
    %457 = arith.truncf %455 : vector<8x128xf32> to vector<8x128xbf16>
    %cst_179 = arith.constant dense<0.000000e+00> : vector<8x512xf32>
    %458 = tpu.matmul %457, %313, %cst_179 {dimension_numbers = #tpu.dot_dimension_numbers<[1], [0], [0], [1], [0, 0, 1, 1], [], []>} : vector<8x128xbf16>, vector<128x512xbf16>, vector<8x512xf32> -> vector<8x512xf32>
    %459 = arith.addf %456, %458 : vector<8x512xf32>
    %460 = vector.extract_strided_slice %459 {offsets = [0, 0], sizes = [8, 128], strides = [1, 1]} : vector<8x512xf32> to vector<8x128xf32>
    %cst_180 = arith.constant 5.000000e-01 : f32
    %461 = vector.broadcast %cst_180 : f32 to vector<8x128xf32>
    %462 = arith.mulf %461, %460 : vector<8x128xf32>
    %463 = math.tanh %462 : vector<8x128xf32>
    %cst_181 = arith.constant 1.000000e+00 : f32
    %464 = vector.broadcast %cst_181 : f32 to vector<8x128xf32>
    %465 = arith.addf %463, %464 : vector<8x128xf32>
    %cst_182 = arith.constant 5.000000e-01 : f32
    %466 = vector.broadcast %cst_182 : f32 to vector<8x128xf32>
    %467 = arith.mulf %466, %465 : vector<8x128xf32>
    %468 = vector.extract_strided_slice %459 {offsets = [0, 128], sizes = [8, 128], strides = [1, 1]} : vector<8x512xf32> to vector<8x128xf32>
    %cst_183 = arith.constant 5.000000e-01 : f32
    %469 = vector.broadcast %cst_183 : f32 to vector<8x128xf32>
    %470 = arith.mulf %469, %468 : vector<8x128xf32>
    %471 = math.tanh %470 : vector<8x128xf32>
    %cst_184 = arith.constant 1.000000e+00 : f32
    %472 = vector.broadcast %cst_184 : f32 to vector<8x128xf32>
    %473 = arith.addf %471, %472 : vector<8x128xf32>
    %cst_185 = arith.constant 5.000000e-01 : f32
    %474 = vector.broadcast %cst_185 : f32 to vector<8x128xf32>
    %475 = arith.mulf %474, %473 : vector<8x128xf32>
    %476 = vector.extract_strided_slice %459 {offsets = [0, 256], sizes = [8, 128], strides = [1, 1]} : vector<8x512xf32> to vector<8x128xf32>
    %477 = math.tanh %476 : vector<8x128xf32>
    %478 = vector.extract_strided_slice %459 {offsets = [0, 384], sizes = [8, 128], strides = [1, 1]} : vector<8x512xf32> to vector<8x128xf32>
    %cst_186 = arith.constant 5.000000e-01 : f32
    %479 = vector.broadcast %cst_186 : f32 to vector<8x128xf32>
    %480 = arith.mulf %479, %478 : vector<8x128xf32>
    %481 = math.tanh %480 : vector<8x128xf32>
    %cst_187 = arith.constant 1.000000e+00 : f32
    %482 = vector.broadcast %cst_187 : f32 to vector<8x128xf32>
    %483 = arith.addf %481, %482 : vector<8x128xf32>
    %cst_188 = arith.constant 5.000000e-01 : f32
    %484 = vector.broadcast %cst_188 : f32 to vector<8x128xf32>
    %485 = arith.mulf %484, %483 : vector<8x128xf32>
    %486 = arith.mulf %475, %453 : vector<8x128xf32>
    %487 = arith.mulf %467, %477 : vector<8x128xf32>
    %488 = arith.addf %486, %487 : vector<8x128xf32>
    %489 = math.tanh %488 : vector<8x128xf32>
    %490 = arith.mulf %485, %489 : vector<8x128xf32>
    %c40_189 = arith.constant 40 : index
    %c0_190 = arith.constant 0 : index
    %491 = vector.load %arg10[%c40_189, %c0_190] : memref<64x512xf32, #tpu.memory_space<vmem>>, vector<8x512xf32>
    %492 = arith.truncf %490 : vector<8x128xf32> to vector<8x128xbf16>
    %cst_191 = arith.constant dense<0.000000e+00> : vector<8x512xf32>
    %493 = tpu.matmul %492, %313, %cst_191 {dimension_numbers = #tpu.dot_dimension_numbers<[1], [0], [0], [1], [0, 0, 1, 1], [], []>} : vector<8x128xbf16>, vector<128x512xbf16>, vector<8x512xf32> -> vector<8x512xf32>
    %494 = arith.addf %491, %493 : vector<8x512xf32>
    %495 = vector.extract_strided_slice %494 {offsets = [0, 0], sizes = [8, 128], strides = [1, 1]} : vector<8x512xf32> to vector<8x128xf32>
    %cst_192 = arith.constant 5.000000e-01 : f32
    %496 = vector.broadcast %cst_192 : f32 to vector<8x128xf32>
    %497 = arith.mulf %496, %495 : vector<8x128xf32>
    %498 = math.tanh %497 : vector<8x128xf32>
    %cst_193 = arith.constant 1.000000e+00 : f32
    %499 = vector.broadcast %cst_193 : f32 to vector<8x128xf32>
    %500 = arith.addf %498, %499 : vector<8x128xf32>
    %cst_194 = arith.constant 5.000000e-01 : f32
    %501 = vector.broadcast %cst_194 : f32 to vector<8x128xf32>
    %502 = arith.mulf %501, %500 : vector<8x128xf32>
    %503 = vector.extract_strided_slice %494 {offsets = [0, 128], sizes = [8, 128], strides = [1, 1]} : vector<8x512xf32> to vector<8x128xf32>
    %cst_195 = arith.constant 5.000000e-01 : f32
    %504 = vector.broadcast %cst_195 : f32 to vector<8x128xf32>
    %505 = arith.mulf %504, %503 : vector<8x128xf32>
    %506 = math.tanh %505 : vector<8x128xf32>
    %cst_196 = arith.constant 1.000000e+00 : f32
    %507 = vector.broadcast %cst_196 : f32 to vector<8x128xf32>
    %508 = arith.addf %506, %507 : vector<8x128xf32>
    %cst_197 = arith.constant 5.000000e-01 : f32
    %509 = vector.broadcast %cst_197 : f32 to vector<8x128xf32>
    %510 = arith.mulf %509, %508 : vector<8x128xf32>
    %511 = vector.extract_strided_slice %494 {offsets = [0, 256], sizes = [8, 128], strides = [1, 1]} : vector<8x512xf32> to vector<8x128xf32>
    %512 = math.tanh %511 : vector<8x128xf32>
    %513 = vector.extract_strided_slice %494 {offsets = [0, 384], sizes = [8, 128], strides = [1, 1]} : vector<8x512xf32> to vector<8x128xf32>
    %cst_198 = arith.constant 5.000000e-01 : f32
    %514 = vector.broadcast %cst_198 : f32 to vector<8x128xf32>
    %515 = arith.mulf %514, %513 : vector<8x128xf32>
    %516 = math.tanh %515 : vector<8x128xf32>
    %cst_199 = arith.constant 1.000000e+00 : f32
    %517 = vector.broadcast %cst_199 : f32 to vector<8x128xf32>
    %518 = arith.addf %516, %517 : vector<8x128xf32>
    %cst_200 = arith.constant 5.000000e-01 : f32
    %519 = vector.broadcast %cst_200 : f32 to vector<8x128xf32>
    %520 = arith.mulf %519, %518 : vector<8x128xf32>
    %521 = arith.mulf %510, %488 : vector<8x128xf32>
    %522 = arith.mulf %502, %512 : vector<8x128xf32>
    %523 = arith.addf %521, %522 : vector<8x128xf32>
    %524 = math.tanh %523 : vector<8x128xf32>
    %525 = arith.mulf %520, %524 : vector<8x128xf32>
    %c48_201 = arith.constant 48 : index
    %c0_202 = arith.constant 0 : index
    %526 = vector.load %arg10[%c48_201, %c0_202] : memref<64x512xf32, #tpu.memory_space<vmem>>, vector<8x512xf32>
    %527 = arith.truncf %525 : vector<8x128xf32> to vector<8x128xbf16>
    %cst_203 = arith.constant dense<0.000000e+00> : vector<8x512xf32>
    %528 = tpu.matmul %527, %313, %cst_203 {dimension_numbers = #tpu.dot_dimension_numbers<[1], [0], [0], [1], [0, 0, 1, 1], [], []>} : vector<8x128xbf16>, vector<128x512xbf16>, vector<8x512xf32> -> vector<8x512xf32>
    %529 = arith.addf %526, %528 : vector<8x512xf32>
    %530 = vector.extract_strided_slice %529 {offsets = [0, 0], sizes = [8, 128], strides = [1, 1]} : vector<8x512xf32> to vector<8x128xf32>
    %cst_204 = arith.constant 5.000000e-01 : f32
    %531 = vector.broadcast %cst_204 : f32 to vector<8x128xf32>
    %532 = arith.mulf %531, %530 : vector<8x128xf32>
    %533 = math.tanh %532 : vector<8x128xf32>
    %cst_205 = arith.constant 1.000000e+00 : f32
    %534 = vector.broadcast %cst_205 : f32 to vector<8x128xf32>
    %535 = arith.addf %533, %534 : vector<8x128xf32>
    %cst_206 = arith.constant 5.000000e-01 : f32
    %536 = vector.broadcast %cst_206 : f32 to vector<8x128xf32>
    %537 = arith.mulf %536, %535 : vector<8x128xf32>
    %538 = vector.extract_strided_slice %529 {offsets = [0, 128], sizes = [8, 128], strides = [1, 1]} : vector<8x512xf32> to vector<8x128xf32>
    %cst_207 = arith.constant 5.000000e-01 : f32
    %539 = vector.broadcast %cst_207 : f32 to vector<8x128xf32>
    %540 = arith.mulf %539, %538 : vector<8x128xf32>
    %541 = math.tanh %540 : vector<8x128xf32>
    %cst_208 = arith.constant 1.000000e+00 : f32
    %542 = vector.broadcast %cst_208 : f32 to vector<8x128xf32>
    %543 = arith.addf %541, %542 : vector<8x128xf32>
    %cst_209 = arith.constant 5.000000e-01 : f32
    %544 = vector.broadcast %cst_209 : f32 to vector<8x128xf32>
    %545 = arith.mulf %544, %543 : vector<8x128xf32>
    %546 = vector.extract_strided_slice %529 {offsets = [0, 256], sizes = [8, 128], strides = [1, 1]} : vector<8x512xf32> to vector<8x128xf32>
    %547 = math.tanh %546 : vector<8x128xf32>
    %548 = vector.extract_strided_slice %529 {offsets = [0, 384], sizes = [8, 128], strides = [1, 1]} : vector<8x512xf32> to vector<8x128xf32>
    %cst_210 = arith.constant 5.000000e-01 : f32
    %549 = vector.broadcast %cst_210 : f32 to vector<8x128xf32>
    %550 = arith.mulf %549, %548 : vector<8x128xf32>
    %551 = math.tanh %550 : vector<8x128xf32>
    %cst_211 = arith.constant 1.000000e+00 : f32
    %552 = vector.broadcast %cst_211 : f32 to vector<8x128xf32>
    %553 = arith.addf %551, %552 : vector<8x128xf32>
    %cst_212 = arith.constant 5.000000e-01 : f32
    %554 = vector.broadcast %cst_212 : f32 to vector<8x128xf32>
    %555 = arith.mulf %554, %553 : vector<8x128xf32>
    %556 = arith.mulf %545, %523 : vector<8x128xf32>
    %557 = arith.mulf %537, %547 : vector<8x128xf32>
    %558 = arith.addf %556, %557 : vector<8x128xf32>
    %559 = math.tanh %558 : vector<8x128xf32>
    %560 = arith.mulf %555, %559 : vector<8x128xf32>
    %c56_213 = arith.constant 56 : index
    %c0_214 = arith.constant 0 : index
    %561 = vector.load %arg10[%c56_213, %c0_214] : memref<64x512xf32, #tpu.memory_space<vmem>>, vector<8x512xf32>
    %562 = arith.truncf %560 : vector<8x128xf32> to vector<8x128xbf16>
    %cst_215 = arith.constant dense<0.000000e+00> : vector<8x512xf32>
    %563 = tpu.matmul %562, %313, %cst_215 {dimension_numbers = #tpu.dot_dimension_numbers<[1], [0], [0], [1], [0, 0, 1, 1], [], []>} : vector<8x128xbf16>, vector<128x512xbf16>, vector<8x512xf32> -> vector<8x512xf32>
    %564 = arith.addf %561, %563 : vector<8x512xf32>
    %565 = vector.extract_strided_slice %564 {offsets = [0, 0], sizes = [8, 128], strides = [1, 1]} : vector<8x512xf32> to vector<8x128xf32>
    %cst_216 = arith.constant 5.000000e-01 : f32
    %566 = vector.broadcast %cst_216 : f32 to vector<8x128xf32>
    %567 = arith.mulf %566, %565 : vector<8x128xf32>
    %568 = math.tanh %567 : vector<8x128xf32>
    %cst_217 = arith.constant 1.000000e+00 : f32
    %569 = vector.broadcast %cst_217 : f32 to vector<8x128xf32>
    %570 = arith.addf %568, %569 : vector<8x128xf32>
    %cst_218 = arith.constant 5.000000e-01 : f32
    %571 = vector.broadcast %cst_218 : f32 to vector<8x128xf32>
    %572 = arith.mulf %571, %570 : vector<8x128xf32>
    %573 = vector.extract_strided_slice %564 {offsets = [0, 128], sizes = [8, 128], strides = [1, 1]} : vector<8x512xf32> to vector<8x128xf32>
    %cst_219 = arith.constant 5.000000e-01 : f32
    %574 = vector.broadcast %cst_219 : f32 to vector<8x128xf32>
    %575 = arith.mulf %574, %573 : vector<8x128xf32>
    %576 = math.tanh %575 : vector<8x128xf32>
    %cst_220 = arith.constant 1.000000e+00 : f32
    %577 = vector.broadcast %cst_220 : f32 to vector<8x128xf32>
    %578 = arith.addf %576, %577 : vector<8x128xf32>
    %cst_221 = arith.constant 5.000000e-01 : f32
    %579 = vector.broadcast %cst_221 : f32 to vector<8x128xf32>
    %580 = arith.mulf %579, %578 : vector<8x128xf32>
    %581 = vector.extract_strided_slice %564 {offsets = [0, 256], sizes = [8, 128], strides = [1, 1]} : vector<8x512xf32> to vector<8x128xf32>
    %582 = math.tanh %581 : vector<8x128xf32>
    %583 = vector.extract_strided_slice %564 {offsets = [0, 384], sizes = [8, 128], strides = [1, 1]} : vector<8x512xf32> to vector<8x128xf32>
    %cst_222 = arith.constant 5.000000e-01 : f32
    %584 = vector.broadcast %cst_222 : f32 to vector<8x128xf32>
    %585 = arith.mulf %584, %583 : vector<8x128xf32>
    %586 = math.tanh %585 : vector<8x128xf32>
    %cst_223 = arith.constant 1.000000e+00 : f32
    %587 = vector.broadcast %cst_223 : f32 to vector<8x128xf32>
    %588 = arith.addf %586, %587 : vector<8x128xf32>
    %cst_224 = arith.constant 5.000000e-01 : f32
    %589 = vector.broadcast %cst_224 : f32 to vector<8x128xf32>
    %590 = arith.mulf %589, %588 : vector<8x128xf32>
    %591 = arith.mulf %580, %558 : vector<8x128xf32>
    %592 = arith.mulf %572, %582 : vector<8x128xf32>
    %593 = arith.addf %591, %592 : vector<8x128xf32>
    %594 = math.tanh %593 : vector<8x128xf32>
    %595 = arith.mulf %590, %594 : vector<8x128xf32>
    %596 = arith.truncf %595 : vector<8x128xf32> to vector<8x128xbf16>
    %c0_225 = arith.constant 0 : index
    %c0_226 = arith.constant 0 : index
    %597 = vector.load %arg7[%c0_225, %c0_226] : memref<128x4xbf16, #tpu.memory_space<vmem>>, vector<128x4xbf16>
    %cst_227 = arith.constant dense<0.000000e+00> : vector<8x4xf32>
    %598 = tpu.matmul %596, %597, %cst_227 {dimension_numbers = #tpu.dot_dimension_numbers<[1], [0], [0], [1], [0, 0, 1, 1], [], []>} : vector<8x128xbf16>, vector<128x4xbf16>, vector<8x4xf32> -> vector<8x4xf32>
    %c0_228 = arith.constant 0 : index
    %c0_229 = arith.constant 0 : index
    %599 = vector.load %arg8[%c0_228, %c0_229] : memref<1x4xf32, #tpu.memory_space<vmem>>, vector<1x4xf32>
    %600 = vector.broadcast %599 : vector<1x4xf32> to vector<8x4xf32>
    %601 = arith.addf %598, %600 : vector<8x4xf32>
    %cst_230 = arith.constant dense<0xFF800000> : vector<8xf32>
    %602 = vector.multi_reduction <maximumf>, %601, %cst_230 [1] : vector<8x4xf32> to vector<8xf32>
    %603 = vector.shape_cast %602 : vector<8xf32> to vector<8x1xf32>
    %604 = vector.broadcast %603 : vector<8x1xf32> to vector<8x4xf32>
    %605 = arith.subf %601, %604 : vector<8x4xf32>
    %606 = math.exp %605 : vector<8x4xf32>
    %cst_231 = arith.constant dense<0.000000e+00> : vector<8xf32>
    %607 = vector.multi_reduction <add>, %606, %cst_231 [1] : vector<8x4xf32> to vector<8xf32>
    %608 = vector.shape_cast %607 : vector<8xf32> to vector<8x1xf32>
    %609 = math.log %608 : vector<8x1xf32>
    %610 = vector.broadcast %609 : vector<8x1xf32> to vector<8x4xf32>
    %611 = arith.subf %605, %610 : vector<8x4xf32>
    %c0_232 = arith.constant 0 : index
    %c0_233 = arith.constant 0 : index
    %612 = vector.load %arg9[%c0_232, %c0_233] : memref<8x4xf32, #tpu.memory_space<vmem>>, vector<8x4xf32>
    tpu.vector_store %arg9[%c0_232, %c0_233], %611 {strides = array<i32>} : memref<8x4xf32, #tpu.memory_space<vmem>>, vector<8x4xf32>,
    return
  }
}

</mosaic_0001>

<bundles_post_ra>
// kernel: lstm_forward.1
= control target key start
LH: loop header
LB: loop body
LE: loop exit
PB: predicated region body
PF: predicated region fallthrough
CT: control target
= control target key end

     0   :  { %v5207_v1 = vmov 0   ;;  %vm107_vm0 = vcmask 130048   ;;  %v47_v41 = vlaneseq  ;;  %vm3516_vm1 = vmmov 0   ;;  %s5193_s1 = inlined_call_operand.vmem [shape: bf16[16,512], index: 1, kind: input, shape index: {}]   ;;  %s5194_s0 = inlined_call_operand.vmem [shape: bf16[64,16], index: 0, kind: input, shape index: {}]   ;;  %s5195_s2 = inlined_call_operand.vmem [shape: bf16[128,512], index: 2, kind: input, shape index: {}]   ;;  %s5196_s3 = inlined_call_operand.vmem [shape: f32[1,512], index: 3, kind: input, shape index: {}]   ;;  %s5197_s4 = inlined_call_operand.vmem [shape: bf16[128,512], index: 4, kind: input, shape index: {}]   ;;  %s5198_s5 = inlined_call_operand.vmem [shape: bf16[128,512], index: 5, kind: input, shape index: {}]   ;;  %s5199_s6 = inlined_call_operand.vmem [shape: f32[1,512], index: 6, kind: input, shape index: {}]   ;;  %s5200_s7 = inlined_call_operand.vmem [shape: bf16[128,4], index: 7, kind: input, shape index: {}]   ;;  %s5201_s8 = inlined_call_operand.vmem [shape: f32[1,4], index: 8, kind: input, shape index: {}]   ;;  %s5202_s9 = inlined_call_operand.vmem [shape: f32[8,4], index: 9, kind: output, shape index: {}]  }
   0x1   :  { %v3124_v0 = vld [vmem:[%s5193_s1 + $0x4] ss:$16 sps:$4 sm:$0xff]   ;;  %152 = vmatprep.mubr.bf16.mxu0 %v5207_v1  ;;  %225 = vmatprep.mubr.bf16.mxu1 %v5207_v1  ;;  %v3126_v2 = vld [vmem:[%s5193_s1 + $0xc] ss:$16 sps:$4 sm:$0xff]   ;;  %v3128_v3 = vld [vmem:[%s5193_s1] ss:$16 sps:$4 sm:$0xff]  }
   0x2   :  { %120 = vmatprep.subr.bf16.mxu0 %v3124_v0  ;;  %v3129_v4 = vld [vmem:[%s5193_s1 + $0x8] ss:$16 sps:$4 sm:$0xff]   ;;  %193 = vmatprep.subr.bf16.mxu1 %v3126_v2  ;;  %v3130_v5 = vld [vmem:[%s5194_s0] sm:$0xff]   ;;  %v3592_v7 = vld [vmem:[%s5195_s2 + $0xc] ss:$16 sps:$4 sm:$0xff]   ;;  %v3839_v42 = vshrl.u32 %v47_v41, 7 }
   0x3   :  { %121 = vmatpush1.bf16.msra.mxu0 %v3128_v3  ;;  %194 = vmatpush1.bf16.msra.mxu1 %v3129_v4  ;;  %v3587_v6 = vld [vmem:[%s5195_s2 + $0x4] ss:$16 sps:$4 sm:$0xff]   ;;  %v3597_v8 = vld [vmem:[%s5195_s2] ss:$16 sps:$4 sm:$0xff]   ;;  %v3603_v9 = vld [vmem:[%s5195_s2 + $0x8] ss:$16 sps:$4 sm:$0xff]  }
   0x4   :  { %494 = vmatprep.subr.bf16.mxu0 %v3587_v6  ;;  %v3610_v10 = vld [vmem:[%s5195_s2 + $0x24] ss:$16 sps:$4 sm:$0xff]   ;;  %535 = vmatprep.subr.bf16.mxu1 %v3592_v7  ;;  %v3617_v11 = vld [vmem:[%s5195_s2 + $0x2c] ss:$16 sps:$4 sm:$0xff]   ;;  %v3622_v12 = vld [vmem:[%s5195_s2 + $0x20] ss:$16 sps:$4 sm:$0xff]  }
   0x5   :  { %v3627_v13 = vld [vmem:[%s5195_s2 + $0x28] ss:$16 sps:$4 sm:$0xff]   ;;  %v3639_v15 = vld [vmem:[%s5195_s2 + $0x44] ss:$16 sps:$4 sm:$0xff]   ;;  %v3645_v16 = vld [vmem:[%s5195_s2 + $0x4c] ss:$16 sps:$4 sm:$0xff]  }
   0x6   :  { %2979 = vmatmul.mubr.msk.bf16.vlgmr.msra.gmra.mrb[0].mxu0 %vm107_vm0, %v3130_v5  ;;  %2983 = vmatmul.mubr.msk.bf16.vlgmr.msra.gmra.mrb[0].mxu1 %vm107_vm0, %v3130_v5  ;;  %v3143_v14 = vld [vmem:[%s5194_s0 + $0x8] sm:$0xff]   ;;  %v3651_v17 = vld [vmem:[%s5195_s2 + $0x40] ss:$16 sps:$4 sm:$0xff]   ;;  %v3663_v19 = vld [vmem:[%s5195_s2 + $0x64] ss:$16 sps:$4 sm:$0xff]   ;;  %5211 = vst [vmem:[#allocation4_spill] sm:$0xff] %v3839_v42 }
   0x7   :  { %495 = vmatpush1.bf16.msra.mxu0 %v3597_v8  ;;  %536 = vmatpush1.bf16.msra.mxu1 %v3603_v9  ;;  %v3656_v18 = vld [vmem:[%s5195_s2 + $0x48] ss:$16 sps:$4 sm:$0xff]   ;;  %v3669_v20 = vld [vmem:[%s5195_s2 + $0x6c] ss:$16 sps:$4 sm:$0xff]   ;;  %v3676_v21 = vld [vmem:[%s5195_s2 + $0x60] ss:$16 sps:$4 sm:$0xff]  }
   0x8   :  { %496 = vmatprep.subr.bf16.mxu0 %v3610_v10  ;;  %537 = vmatprep.subr.bf16.mxu1 %v3617_v11  ;;  %v3682_v22 = vld [vmem:[%s5195_s2 + $0x68] ss:$16 sps:$4 sm:$0xff]   ;;  %v3690_v23 = vld [vmem:[%s5195_s2 + $0x84] ss:$16 sps:$4 sm:$0xff]   ;;  %v3697_v24 = vld [vmem:[%s5195_s2 + $0x8c] ss:$16 sps:$4 sm:$0xff]  }
   0x9   :  { %162 = vmatprep.mubr.bf16.mxu0 %v5207_v1  ;;  %235 = vmatprep.mubr.bf16.mxu1 %v5207_v1  ;;  %v3156_v25 = vld [vmem:[%s5194_s0 + $0x10] sm:$0xff]   ;;  %v3713_v27 = vld [vmem:[%s5195_s2 + $0x88] ss:$16 sps:$4 sm:$0xff]   ;;  %v3724_v29 = vld [vmem:[%s5195_s2 + $0xac] ss:$16 sps:$4 sm:$0xff]   ;;  %v5205_v43 = vsub.s32 2, %v3839_v42 }
   0xa   :  { %v3706_v26 = vld [vmem:[%s5195_s2 + $0x80] ss:$16 sps:$4 sm:$0xff]   ;;  %v3718_v28 = vld [vmem:[%s5195_s2 + $0xa4] ss:$16 sps:$4 sm:$0xff]   ;;  %v3737_v31 = vld [vmem:[%s5195_s2 + $0xa8] ss:$16 sps:$4 sm:$0xff]  }
   0xb   :  { %497 = vmatpush1.bf16.msra.mxu0 %v3622_v12  ;;  %538 = vmatpush1.bf16.msra.mxu1 %v3627_v13  ;;  %v3732_v30 = vld [vmem:[%s5195_s2 + $0xa0] ss:$16 sps:$4 sm:$0xff]   ;;  %v3745_v32 = vld [vmem:[%s5195_s2 + $0xc4] ss:$16 sps:$4 sm:$0xff]   ;;  %v3752_v33 = vld [vmem:[%s5195_s2 + $0xcc] ss:$16 sps:$4 sm:$0xff]  }
   0xc   :  { %498 = vmatprep.subr.bf16.mxu0 %v3639_v15  ;;  %539 = vmatprep.subr.bf16.mxu1 %v3645_v16  ;;  %v3169_v34 = vld [vmem:[%s5194_s0 + $0x18] sm:$0xff]   ;;  %v3761_v35 = vld [vmem:[%s5195_s2 + $0xc0] ss:$16 sps:$4 sm:$0xff]   ;;  %v3773_v37 = vld [vmem:[%s5195_s2 + $0xe4] ss:$16 sps:$4 sm:$0xff]   ;;  %v5203_v44 = vsub.s32 3, %v3839_v42 }
   0xd   :  { %v3768_v36 = vld [vmem:[%s5195_s2 + $0xc8] ss:$16 sps:$4 sm:$0xff]   ;;  %v3779_v38 = vld [vmem:[%s5195_s2 + $0xec] ss:$16 sps:$4 sm:$0xff]   ;;  %v3787_v39 = vld [vmem:[%s5195_s2 + $0xe0] ss:$16 sps:$4 sm:$0xff]  }
   0xe   :  { %2980 = vmatmul.mubr.msk.bf16.gmra.mrb[4].mxu0 %vm107_vm0, %v3143_v14  ;;  %2984 = vmatmul.mubr.msk.bf16.gmra.mrb[4].mxu1 %vm107_vm0, %v3143_v14  ;;  %v3795_v40 = vld [vmem:[%s5195_s2 + $0xe8] ss:$16 sps:$4 sm:$0xff]   ;;  %v5206_v45 = vsub.s32 0, %v3839_v42  ;;  %v45_v46 = vld [vmem:[%s5196_s3] sm:$0xf]  ;;  %v5204_v47 = vsub.s32 1, %v3839_v42 }
   0xf   :  { %499 = vmatpush1.bf16.msra.mxu0 %v3651_v17  ;;  %172 = vmatprep.mubr.bf16.mxu0 %v5207_v1  ;;  %v3850_v48 = vrot.slane %v45_v46, %v5205_v43  ;;  %v3858_v51 = vrot.slane %v45_v46, %v5203_v44  ;;  %vm2953_vm2 = vcmask 31744  }
  0x10   :  { %540 = vmatpush1.bf16.msra.mxu1 %v3656_v18  ;;  %500 = vmatprep.subr.bf16.mxu0 %v3663_v19  ;;  %v50_v52 = vrot.slane %v45_v46, %v5206_v45  ;;  %v54_v55 = vrot.slane %v45_v46, %v5204_v47 }
  0x11   :  { %541 = vmatprep.subr.bf16.mxu1 %v3669_v20  ;;  %245 = vmatprep.mubr.bf16.mxu1 %v5207_v1 }
  0x13   :  { %501 = vmatpush1.bf16.msra.mxu0 %v3676_v21 }
  0x14   :  { %542 = vmatpush1.bf16.msra.mxu1 %v3682_v22  ;;  %502 = vmatprep.subr.bf16.mxu0 %v3690_v23 }
  0x15   :  { %543 = vmatprep.subr.bf16.mxu1 %v3697_v24 }
  0x16   :  { %2981 = vmatmul.mubr.msk.bf16.gmra.mrb[8].mxu0 %vm107_vm0, %v3156_v25  ;;  %2985 = vmatmul.mubr.msk.bf16.gmra.mrb[8].mxu1 %vm107_vm0, %v3156_v25 }
  0x17   :  { %503 = vmatpush1.bf16.msra.mxu0 %v3706_v26  ;;  %182 = vmatprep.mubr.bf16.mxu0 %v5207_v1 }
  0x18   :  { %544 = vmatpush1.bf16.msra.mxu1 %v3713_v27  ;;  %504 = vmatprep.subr.bf16.mxu0 %v3718_v28 }
  0x19   :  { %545 = vmatprep.subr.bf16.mxu1 %v3724_v29  ;;  %255 = vmatprep.mubr.bf16.mxu1 %v5207_v1 }
  0x1b   :  { %505 = vmatpush1.bf16.msra.mxu0 %v3732_v30 }
  0x1c   :  { %546 = vmatpush1.bf16.msra.mxu1 %v3737_v31  ;;  %506 = vmatprep.subr.bf16.mxu0 %v3745_v32 }
  0x1d   :  { %547 = vmatprep.subr.bf16.mxu1 %v3752_v33 }
  0x1e   :  { %2982 = vmatmul.mubr.msk.bf16.gmra.mrb[12].mxu0 %vm107_vm0, %v3169_v34  ;;  %2986 = vmatmul.mubr.msk.bf16.gmra.mrb[12].mxu1 %vm107_vm0, %v3169_v34 }
  0x1f   :  { %507 = vmatpush1.bf16.msra.mxu0 %v3761_v35  ;;  %526 = vmatprep.mubr.bf16.mxu0 %v5207_v1 }
  0x20   :  { %548 = vmatpush1.bf16.msra.mxu1 %v3768_v36  ;;  %508 = vmatprep.subr.bf16.mxu0 %v3773_v37 }
  0x21   :  { %549 = vmatprep.subr.bf16.mxu1 %v3779_v38  ;;  %567 = vmatprep.mubr.bf16.mxu1 %v5207_v1 }
  0x23   :  { %509 = vmatpush1.bf16.msra.mxu0 %v3787_v39 }
  0x24   :  { %550 = vmatpush1.bf16.msra.mxu1 %v3795_v40  ;;  %604 = vmatprep.subr.bf16.mxu0 %v3587_v6 }
  0x25   :  { %645 = vmatprep.subr.bf16.mxu1 %v3592_v7 }
  0x26   :  { %527 = vmatmul.mubr.bf16.vlgmr.msra.gmra.mrb[16].mxu0 %v5207_v1 }
  0x27   :  { %568 = vmatmul.mubr.bf16.vlgmr.msra.gmra.mrb[16].mxu1 %v5207_v1  ;;  %605 = vmatpush1.bf16.msra.mxu0 %v3597_v8 }
  0x28   :  { %646 = vmatpush1.bf16.msra.mxu1 %v3603_v9  ;;  %606 = vmatprep.subr.bf16.mxu0 %v3610_v10 }
  0x29   :  { %647 = vmatprep.subr.bf16.mxu1 %v3617_v11  ;;  %636 = vmatprep.mubr.bf16.mxu0 %v5207_v1 }
  0x2a   :  { %677 = vmatprep.mubr.bf16.mxu1 %v5207_v1 }
  0x2b   :  { %607 = vmatpush1.bf16.msra.mxu0 %v3622_v12 }
  0x2c   :  { %648 = vmatpush1.bf16.msra.mxu1 %v3627_v13  ;;  %608 = vmatprep.subr.bf16.mxu0 %v3639_v15 }
  0x2d   :  { %649 = vmatprep.subr.bf16.mxu1 %v3645_v16 }
  0x2f   :  { %609 = vmatpush1.bf16.msra.mxu0 %v3651_v17 }
  0x30   :  { %650 = vmatpush1.bf16.msra.mxu1 %v3656_v18  ;;  %610 = vmatprep.subr.bf16.mxu0 %v3663_v19 }
  0x31   :  { %651 = vmatprep.subr.bf16.mxu1 %v3669_v20 }
  0x33   :  { %611 = vmatpush1.bf16.msra.mxu0 %v3676_v21 }
  0x34   :  { %652 = vmatpush1.bf16.msra.mxu1 %v3682_v22  ;;  %612 = vmatprep.subr.bf16.mxu0 %v3690_v23 }
  0x35   :  { %653 = vmatprep.subr.bf16.mxu1 %v3697_v24 }
  0x37   :  { %613 = vmatpush1.bf16.msra.mxu0 %v3706_v26 }
  0x38   :  { %654 = vmatpush1.bf16.msra.mxu1 %v3713_v27  ;;  %614 = vmatprep.subr.bf16.mxu0 %v3718_v28 }
  0x39   :  { %655 = vmatprep.subr.bf16.mxu1 %v3724_v29 }
  0x3b   :  { %615 = vmatpush1.bf16.msra.mxu0 %v3732_v30 }
  0x3c   :  { %656 = vmatpush1.bf16.msra.mxu1 %v3737_v31  ;;  %616 = vmatprep.subr.bf16.mxu0 %v3745_v32 }
  0x3d   :  { %657 = vmatprep.subr.bf16.mxu1 %v3752_v33 }
  0x3f   :  { %617 = vmatpush1.bf16.msra.mxu0 %v3761_v35 }
  0x40   :  { %658 = vmatpush1.bf16.msra.mxu1 %v3768_v36  ;;  %618 = vmatprep.subr.bf16.mxu0 %v3773_v37 }
  0x41   :  { %659 = vmatprep.subr.bf16.mxu1 %v3779_v38 }
  0x43   :  { %619 = vmatpush1.bf16.msra.mxu0 %v3787_v39 }
  0x44   :  { %660 = vmatpush1.bf16.msra.mxu1 %v3795_v40  ;;  %717 = vmatprep.subr.bf16.mxu0 %v3587_v6 }
  0x45   :  { %758 = vmatprep.subr.bf16.mxu1 %v3592_v7 }
  0xd9   :  { %v3852_v49 = vpop.f32.mrb[0].mxu0  ;;  %v3854_v50 = vpop.f32.mrb[0].mxu1 }
  0xda   :  { %v156_v53 = vpop.f32.mrb[1].mxu0  ;;  %v229_v54 = vpop.f32.mrb[1].mxu1 }
  0xdb   :  { %v158_v56 = vpop.f32.mrb[2].mxu0  ;;  %v231_v57 = vpop.f32.mrb[2].mxu1 }
  0xdc   :  { %v3864_v58 = vadd.f32 %v158_v56, %v50_v52  ;;  %v160_v59 = vpop.f32.mrb[3].mxu0  ;;  %v3867_v60 = vadd.f32 %v231_v57, %v3850_v48  ;;  %v233_v61 = vpop.f32.mrb[3].mxu1 }
  0xdd   :  { %v3869_v62 = vadd.f32 %v160_v59, %v54_v55  ;;  %v3872_v63 = vadd.f32 %v233_v61, %v3858_v51 }
  0xe1   :  { %v164_v0 = vpop.f32.mrb[4].mxu0  ;;  %v237_v2 = vpop.f32.mrb[4].mxu1 }
  0xe2   :  { %v3874_v3 = vadd.f32 %v164_v0, %v50_v52  ;;  %v166_v4 = vpop.f32.mrb[5].mxu0  ;;  %v3877_v5 = vadd.f32 %v237_v2, %v3850_v48  ;;  %v239_v14 = vpop.f32.mrb[5].mxu1 }
  0xe3   :  { %v3879_v25 = vadd.f32 %v166_v4, %v54_v55  ;;  %v168_v34 = vpop.f32.mrb[6].mxu0  ;;  %v3882_v41 = vadd.f32 %v239_v14, %v3858_v51  ;;  %v241_v46 = vpop.f32.mrb[6].mxu1 }
  0xe4   :  { %v3884_v56 = vadd.f32 %v168_v34, %v50_v52  ;;  %v170_v57 = vpop.f32.mrb[7].mxu0  ;;  %v3887_v59 = vadd.f32 %v241_v46, %v3850_v48  ;;  %v243_v61 = vpop.f32.mrb[7].mxu1 }
  0xe5   :  { %5212 = vst [vmem:[#allocation5_spill] sm:$0xff] %v3882_v41  ;;  %v3889_v0 = vadd.f32 %v170_v57, %v54_v55  ;;  %v3892_v2 = vadd.f32 %v243_v61, %v3858_v51 }
  0xe6   :  { %5213 = vst [vmem:[#allocation6_spill] sm:$0xff] %v3884_v56  ;;  %5214 = vst [vmem:[#allocation7_spill] sm:$0xff] %v3887_v59 }
  0xe7   :  { %5215 = vst [vmem:[#allocation8_spill] sm:$0xff] %v3889_v0  ;;  %5216 = vst [vmem:[#allocation9_spill] sm:$0xff] %v3892_v2 }
  0xe9   :  { %v174_v44 = vpop.f32.mrb[8].mxu0  ;;  %v247_v4 = vpop.f32.mrb[8].mxu1 }
  0xea   :  { %v3894_v47 = vadd.f32 %v174_v44, %v50_v52  ;;  %v176_v43 = vpop.f32.mrb[9].mxu0  ;;  %v3897_v14 = vadd.f32 %v247_v4, %v3850_v48  ;;  %v249_v34 = vpop.f32.mrb[9].mxu1 }
  0xeb   :  { %v3899_v45 = vadd.f32 %v176_v43, %v54_v55  ;;  %v178_v1 = vpop.f32.mrb[10].mxu0  ;;  %v3902_v46 = vadd.f32 %v249_v34, %v3858_v51  ;;  %v251_v57 = vpop.f32.mrb[10].mxu1 }
  0xec   :  { %5217 = vst [vmem:[#allocation10_spill] sm:$0xff] %v3894_v47  ;;  %5218 = vst [vmem:[#allocation11_spill] sm:$0xff] %v3897_v14  ;;  %v3904_v42 = vadd.f32 %v178_v1, %v50_v52  ;;  %v180_v61 = vpop.f32.mrb[11].mxu0  ;;  %v3907_v2 = vadd.f32 %v251_v57, %v3850_v48  ;;  %v253_v44 = vpop.f32.mrb[11].mxu1 }
  0xed   :  { %5219 = vst [vmem:[#allocation12_spill] sm:$0xff] %v3899_v45  ;;  %5220 = vst [vmem:[#allocation13_spill] sm:$0xff] %v3902_v46  ;;  %v3909_v47 = vadd.f32 %v180_v61, %v54_v55  ;;  %v3912_v4 = vadd.f32 %v253_v44, %v3858_v51 }
  0xee   :  { %5221 = vst [vmem:[#allocation14_spill] sm:$0xff] %v3904_v42  ;;  %5222 = vst [vmem:[#allocation15_spill] sm:$0xff] %v3907_v2 }
  0xef   :  { %5223 = vst [vmem:[#allocation16_spill] sm:$0xff] %v3909_v47  ;;  %5224 = vst [vmem:[#allocation17_spill] sm:$0xff] %v3912_v4 }
  0xf1   :  { %v184_v14 = vpop.f32.mrb[12].mxu0  ;;  %v257_v43 = vpop.f32.mrb[12].mxu1 }
  0xf2   :  { %v3914_v45 = vadd.f32 %v184_v14, %v50_v52  ;;  %v186_v0 = vpop.f32.mrb[13].mxu0  ;;  %v3917_v34 = vadd.f32 %v257_v43, %v3850_v48  ;;  %v259_v1 = vpop.f32.mrb[13].mxu1 }
  0xf3   :  { %v3919_v42 = vadd.f32 %v186_v0, %v54_v55  ;;  %v188_v46 = vpop.f32.mrb[14].mxu0  ;;  %v3922_v57 = vadd.f32 %v259_v1, %v3858_v51  ;;  %v261_v61 = vpop.f32.mrb[14].mxu1  ;;  %v155_v0 = vadd.f32 %v3852_v49, %v50_v52  ;;  %v228_v1 = vadd.f32 %v3854_v50, %v3850_v48 }
  0xf4   :  { %5225 = vst [vmem:[#allocation18_spill] sm:$0xff] %v3914_v45  ;;  %5226 = vst [vmem:[#allocation19_spill] sm:$0xff] %v3917_v34  ;;  %v3924_v47 = vadd.f32 %v188_v46, %v50_v52  ;;  %v190_v44 = vpop.f32.mrb[15].mxu0  ;;  %v3927_v4 = vadd.f32 %v261_v61, %v3850_v48  ;;  %v263_v14 = vpop.f32.mrb[15].mxu1  ;;  %v230_v46 = vadd.f32 %v229_v54, %v3858_v51 }
  0xf5   :  { %5227 = vst [vmem:[#allocation20_spill] sm:$0xff] %v3919_v42  ;;  %5228 = vst [vmem:[#allocation21_spill] sm:$0xff] %v3922_v57  ;;  %v3929_v45 = vadd.f32 %v190_v44, %v54_v55  ;;  %v3932_v43 = vadd.f32 %v263_v14, %v3858_v51  ;;  %v157_v42 = vadd.f32 %v156_v53, %v54_v55 }
  0xf6   :  { %5229 = vst [vmem:[#allocation22_spill] sm:$0xff] %v3924_v47  ;;  %5230 = vst [vmem:[#allocation23_spill] sm:$0xff] %v3927_v4 }
  0xf7   :  { %5231 = vst [vmem:[#allocation24_spill] sm:$0xff] %v3929_v45  ;;  %5232 = vst [vmem:[#allocation25_spill] sm:$0xff] %v3932_v43 }
  0xf9   :  { %v528_v57 = vpop.f32.mrb[16].mxu0 }
  0xfa   :  { %v576_v47 = vadd.f32 %v528_v57, %v155_v0  ;;  %v569_v34 = vpop.f32.mrb[16].mxu1  ;;  %v530_v2 = vpop.f32.mrb[17].mxu0 }
  0xfb   :  { %v578_v61 = vadd.f32 %v569_v34, %v228_v1  ;;  %v577_v4 = vadd.f32 %v530_v2, %v157_v42  ;;  %v571_v59 = vpop.f32.mrb[17].mxu1  ;;  %v532_v44 = vpop.f32.mrb[18].mxu0 }
  0xfc   :  { %v580_v45 = vmul.f32 0.5, %v576_v47  ;;  %v579_v56 = vadd.f32 %v571_v59, %v230_v46  ;;  %v533_v14 = vpop.f32.mrb[19].mxu0  ;;  %v573_v43 = vpop.f32.mrb[18].mxu1 }
  0xfd   :  { %v584_v41 = vmul.f32 0.5, %v577_v4  ;;  %v574_v49 = vpop.f32.mrb[19].mxu1  ;;  %v5233_v43 = vmov 0  }
  0xfe   :  { %3286 = vtanh.f32 %v580_v45  ;;  %v589_v48 = vmul.f32 0.5, %v579_v56 }
  0xff   :  { %3288 = vtanh.f32 %v584_v41 }
 0x100   :  { %3290 = vtanh.f32 %v578_v61 }
 0x101   :  { %3292 = vtanh.f32 %v589_v48 }
 0x108   :  { %v3287_v50 = vpop.eup %3286 }
 0x109   :  { %v3289_v52 = vpop.eup %3288  ;;  %v582_v51 = vadd.f32 1.0, %v3287_v50 }
 0x10a   :  { %v586_v53 = vadd.f32 1.0, %v3289_v52  ;;  %v3291_v55 = vpop.eup %3290 }
 0x10b   :  { %v583_v54 = vmul.f32 0.5, %v582_v51  ;;  %v3293_v59 = vpop.eup %3292 }
 0x10c   :  { %v587_v42 = vmul.f32 0.5, %v586_v53  ;;  %v591_v4 = vadd.f32 1.0, %v3293_v59 }
 0x10d   :  { %v594_v2 = vmul.f32 %v3291_v55, %v583_v54 }
 0x10e   :  { %v593_v34 = vmul.f32 0.0, %v587_v42  ;;  %v592_v45 = vmul.f32 0.5, %v591_v4 }
 0x110   :  { %v3938_v47 = vadd.f32 %v594_v2, %v593_v34 }
 0x112   :  { %3294 = vtanh.f32 %v3938_v47 }
 0x11c   :  { %v3295_v41 = vpop.eup %3294 }
 0x11d   :  { %v597_v57 = vmul.f32 %v3295_v41, %v592_v45 }
 0x11f   :  { %v598_v56 = vpack.c.bf16 %v597_v57, %v597_v57 }
 0x121   :  { %599 = vst [vmem:[#allocation3] sm:$0xf] %v598_v56  ;;  %637 = vmatmul.mubr.bf16.vlgmr.msra.gmra.mrb[20].mxu0 %v598_v56  ;;  %678 = vmatmul.mubr.bf16.vlgmr.msra.gmra.mrb[20].mxu1 %v598_v56 }
 0x122   :  { %718 = vmatpush1.bf16.msra.mxu0 %v3597_v8  ;;  %759 = vmatpush1.bf16.msra.mxu1 %v3603_v9 }
 0x123   :  { %719 = vmatprep.subr.bf16.mxu0 %v3610_v10  ;;  %760 = vmatprep.subr.bf16.mxu1 %v3617_v11 }
 0x124   :  { %749 = vmatprep.mubr.bf16.mxu0 %v5233_v43  ;;  %790 = vmatprep.mubr.bf16.mxu1 %v5233_v43 }
 0x126   :  { %720 = vmatpush1.bf16.msra.mxu0 %v3622_v12  ;;  %761 = vmatpush1.bf16.msra.mxu1 %v3627_v13 }
 0x127   :  { %721 = vmatprep.subr.bf16.mxu0 %v3639_v15  ;;  %762 = vmatprep.subr.bf16.mxu1 %v3645_v16 }
 0x12a   :  { %722 = vmatpush1.bf16.msra.mxu0 %v3651_v17  ;;  %763 = vmatpush1.bf16.msra.mxu1 %v3656_v18 }
 0x12b   :  { %723 = vmatprep.subr.bf16.mxu0 %v3663_v19  ;;  %764 = vmatprep.subr.bf16.mxu1 %v3669_v20 }
 0x12e   :  { %724 = vmatpush1.bf16.msra.mxu0 %v3676_v21  ;;  %765 = vmatpush1.bf16.msra.mxu1 %v3682_v22 }
 0x12f   :  { %725 = vmatprep.subr.bf16.mxu0 %v3690_v23  ;;  %766 = vmatprep.subr.bf16.mxu1 %v3697_v24 }
 0x132   :  { %726 = vmatpush1.bf16.msra.mxu0 %v3706_v26  ;;  %767 = vmatpush1.bf16.msra.mxu1 %v3713_v27 }
 0x133   :  { %727 = vmatprep.subr.bf16.mxu0 %v3718_v28  ;;  %768 = vmatprep.subr.bf16.mxu1 %v3724_v29 }
 0x136   :  { %728 = vmatpush1.bf16.msra.mxu0 %v3732_v30  ;;  %769 = vmatpush1.bf16.msra.mxu1 %v3737_v31 }
 0x137   :  { %729 = vmatprep.subr.bf16.mxu0 %v3745_v32  ;;  %770 = vmatprep.subr.bf16.mxu1 %v3752_v33 }
 0x13a   :  { %730 = vmatpush1.bf16.msra.mxu0 %v3761_v35  ;;  %771 = vmatpush1.bf16.msra.mxu1 %v3768_v36 }
 0x13b   :  { %731 = vmatprep.subr.bf16.mxu0 %v3773_v37  ;;  %772 = vmatprep.subr.bf16.mxu1 %v3779_v38 }
 0x13e   :  { %732 = vmatpush1.bf16.msra.mxu0 %v3787_v39  ;;  %773 = vmatpush1.bf16.msra.mxu1 %v3795_v40 }
 0x13f   :  { %827 = vmatprep.subr.bf16.mxu0 %v3587_v6  ;;  %868 = vmatprep.subr.bf16.mxu1 %v3592_v7 }
 0x1f4   :  { %v638_v0 = vpop.f32.mrb[20].mxu0  ;;  %v679_v1 = vpop.f32.mrb[20].mxu1 }
 0x1f5   :  { %v686_v46 = vadd.f32 %v638_v0, %v3864_v58  ;;  %v688_v61 = vadd.f32 %v679_v1, %v3867_v60  ;;  %v640_v44 = vpop.f32.mrb[21].mxu0  ;;  %v681_v14 = vpop.f32.mrb[21].mxu1 }
 0x1f6   :  { %v687_v49 = vadd.f32 %v640_v44, %v3869_v62  ;;  %v689_v48 = vadd.f32 %v681_v14, %v3872_v63  ;;  %v642_v50 = vpop.f32.mrb[22].mxu0  ;;  %v683_v52 = vpop.f32.mrb[22].mxu1 }
 0x1f7   :  { %v690_v51 = vmul.f32 0.5, %v686_v46  ;;  %v643_v53 = vpop.f32.mrb[23].mxu0  ;;  %v684_v54 = vpop.f32.mrb[23].mxu1 }
 0x1f8   :  { %v694_v55 = vmul.f32 0.5, %v687_v49  ;;  %v699_v42 = vmul.f32 0.5, %v689_v48  ;;  %v5234_v53 = vld [vmem:[#allocation5_spill] sm:$0xff] }
 0x1f9   :  { %3296 = vtanh.f32 %v690_v51 }
 0x1fa   :  { %3298 = vtanh.f32 %v694_v55 }
 0x1fb   :  { %3300 = vtanh.f32 %v688_v61 }
 0x1fc   :  { %3302 = vtanh.f32 %v699_v42 }
 0x203   :  { %v3297_v2 = vpop.eup %3296 }
 0x204   :  { %v3299_v58 = vpop.eup %3298  ;;  %v692_v34 = vadd.f32 1.0, %v3297_v2 }
 0x205   :  { %v696_v60 = vadd.f32 1.0, %v3299_v58  ;;  %v3301_v4 = vpop.eup %3300 }
 0x206   :  { %v693_v59 = vmul.f32 0.5, %v692_v34  ;;  %v3303_v57 = vpop.eup %3302 }
 0x207   :  { %v697_v62 = vmul.f32 0.5, %v696_v60  ;;  %v701_v56 = vadd.f32 1.0, %v3303_v57 }
 0x208   :  { %v704_v45 = vmul.f32 %v3301_v4, %v693_v59 }
 0x209   :  { %v703_v63 = vmul.f32 %v697_v62, %v3938_v47  ;;  %v702_v0 = vmul.f32 0.5, %v701_v56 }
 0x20b   :  { %v3980_v41 = vadd.f32 %v704_v45, %v703_v63 }
 0x20d   :  { %3304 = vtanh.f32 %v3980_v41 }
 0x217   :  { %v3305_v1 = vpop.eup %3304 }
 0x218   :  { %v707_v46 = vmul.f32 %v3305_v1, %v702_v0 }
 0x21a   :  { %v708_v61 = vpack.c.bf16 %v707_v46, %v707_v46 }
 0x21c   :  { %v710_v44 = vrot.slane %v708_v61, 4  ;;  %750 = vmatmul.mubr.bf16.vlgmr.msra.gmra.mrb[24].mxu0 %v708_v61  ;;  %791 = vmatmul.mubr.bf16.vlgmr.msra.gmra.mrb[24].mxu1 %v708_v61 }
 0x21d   :  { %828 = vmatpush1.bf16.msra.mxu0 %v3597_v8  ;;  %869 = vmatpush1.bf16.msra.mxu1 %v3603_v9 }
 0x21e   :  { %712 = vst [vmem:[#allocation3] sm:$0xf0] %v710_v44  ;;  %829 = vmatprep.subr.bf16.mxu0 %v3610_v10  ;;  %870 = vmatprep.subr.bf16.mxu1 %v3617_v11 }
 0x21f   :  { %859 = vmatprep.mubr.bf16.mxu0 %v5233_v43  ;;  %900 = vmatprep.mubr.bf16.mxu1 %v5233_v43 }
 0x221   :  { %830 = vmatpush1.bf16.msra.mxu0 %v3622_v12  ;;  %871 = vmatpush1.bf16.msra.mxu1 %v3627_v13 }
 0x222   :  { %831 = vmatprep.subr.bf16.mxu0 %v3639_v15  ;;  %872 = vmatprep.subr.bf16.mxu1 %v3645_v16 }
 0x225   :  { %832 = vmatpush1.bf16.msra.mxu0 %v3651_v17  ;;  %873 = vmatpush1.bf16.msra.mxu1 %v3656_v18 }
 0x226   :  { %833 = vmatprep.subr.bf16.mxu0 %v3663_v19  ;;  %874 = vmatprep.subr.bf16.mxu1 %v3669_v20 }
 0x229   :  { %834 = vmatpush1.bf16.msra.mxu0 %v3676_v21  ;;  %875 = vmatpush1.bf16.msra.mxu1 %v3682_v22 }
 0x22a   :  { %835 = vmatprep.subr.bf16.mxu0 %v3690_v23  ;;  %876 = vmatprep.subr.bf16.mxu1 %v3697_v24 }
 0x22d   :  { %836 = vmatpush1.bf16.msra.mxu0 %v3706_v26  ;;  %877 = vmatpush1.bf16.msra.mxu1 %v3713_v27 }
 0x22e   :  { %837 = vmatprep.subr.bf16.mxu0 %v3718_v28  ;;  %878 = vmatprep.subr.bf16.mxu1 %v3724_v29 }
 0x231   :  { %838 = vmatpush1.bf16.msra.mxu0 %v3732_v30  ;;  %879 = vmatpush1.bf16.msra.mxu1 %v3737_v31 }
 0x232   :  { %839 = vmatprep.subr.bf16.mxu0 %v3745_v32  ;;  %880 = vmatprep.subr.bf16.mxu1 %v3752_v33 }
 0x235   :  { %840 = vmatpush1.bf16.msra.mxu0 %v3761_v35  ;;  %881 = vmatpush1.bf16.msra.mxu1 %v3768_v36 }
 0x236   :  { %841 = vmatprep.subr.bf16.mxu0 %v3773_v37  ;;  %882 = vmatprep.subr.bf16.mxu1 %v3779_v38 }
 0x239   :  { %842 = vmatpush1.bf16.msra.mxu0 %v3787_v39  ;;  %883 = vmatpush1.bf16.msra.mxu1 %v3795_v40 }
 0x23a   :  { %940 = vmatprep.subr.bf16.mxu0 %v3587_v6  ;;  %981 = vmatprep.subr.bf16.mxu1 %v3592_v7 }
 0x2ef   :  { %v751_v47 = vpop.f32.mrb[24].mxu0  ;;  %v792_v14 = vpop.f32.mrb[24].mxu1 }
 0x2f0   :  { %v799_v49 = vadd.f32 %v751_v47, %v3874_v3  ;;  %v801_v48 = vadd.f32 %v792_v14, %v3877_v5  ;;  %v753_v50 = vpop.f32.mrb[25].mxu0  ;;  %v794_v52 = vpop.f32.mrb[25].mxu1 }
 0x2f1   :  { %v800_v51 = vadd.f32 %v753_v50, %v3879_v25  ;;  %v802_v54 = vadd.f32 %v794_v52, %v5234_v53  ;;  %v755_v55 = vpop.f32.mrb[26].mxu0  ;;  %v796_v42 = vpop.f32.mrb[26].mxu1  ;;  %v5236_v52 = vld [vmem:[#allocation7_spill] sm:$0xff] }
 0x2f2   :  { %v803_v2 = vmul.f32 0.5, %v799_v49  ;;  %v756_v58 = vpop.f32.mrb[27].mxu0  ;;  %v797_v34 = vpop.f32.mrb[27].mxu1  ;;  %v5237_v55 = vld [vmem:[#allocation8_spill] sm:$0xff] }
 0x2f3   :  { %v807_v60 = vmul.f32 0.5, %v800_v51  ;;  %v812_v59 = vmul.f32 0.5, %v802_v54 }
 0x2f4   :  { %3306 = vtanh.f32 %v803_v2  ;;  %v5238_v2 = vld [vmem:[#allocation9_spill] sm:$0xff] }
 0x2f5   :  { %3308 = vtanh.f32 %v807_v60 }
 0x2f6   :  { %3310 = vtanh.f32 %v801_v48  ;;  %v5235_v48 = vld [vmem:[#allocation6_spill] sm:$0xff] }
 0x2f7   :  { %3312 = vtanh.f32 %v812_v59 }
 0x2fe   :  { %v3307_v4 = vpop.eup %3306 }
 0x2ff   :  { %v3309_v3 = vpop.eup %3308  ;;  %v805_v62 = vadd.f32 1.0, %v3307_v4 }
 0x300   :  { %v809_v5 = vadd.f32 1.0, %v3309_v3  ;;  %v3311_v63 = vpop.eup %3310 }
 0x301   :  { %v806_v45 = vmul.f32 0.5, %v805_v62  ;;  %v3313_v1 = vpop.eup %3312 }
 0x302   :  { %v810_v25 = vmul.f32 0.5, %v809_v5  ;;  %v814_v46 = vadd.f32 1.0, %v3313_v1 }
 0x303   :  { %v817_v57 = vmul.f32 %v3311_v63, %v806_v45 }
 0x304   :  { %v816_v56 = vmul.f32 %v810_v25, %v3980_v41  ;;  %v815_v61 = vmul.f32 0.5, %v814_v46 }
 0x306   :  { %v4022_v0 = vadd.f32 %v817_v57, %v816_v56 }
 0x308   :  { %3314 = vtanh.f32 %v4022_v0 }
 0x312   :  { %v3315_v44 = vpop.eup %3314 }
 0x313   :  { %v820_v47 = vmul.f32 %v3315_v44, %v815_v61 }
 0x315   :  { %v821_v14 = vpack.c.bf16 %v820_v47, %v820_v47 }
 0x317   :  { %822 = vst [vmem:[#allocation3 + $0x8] sm:$0xf] %v821_v14  ;;  %860 = vmatmul.mubr.bf16.vlgmr.msra.gmra.mrb[28].mxu0 %v821_v14  ;;  %901 = vmatmul.mubr.bf16.vlgmr.msra.gmra.mrb[28].mxu1 %v821_v14 }
 0x318   :  { %941 = vmatpush1.bf16.msra.mxu0 %v3597_v8  ;;  %982 = vmatpush1.bf16.msra.mxu1 %v3603_v9 }
 0x319   :  { %942 = vmatprep.subr.bf16.mxu0 %v3610_v10  ;;  %983 = vmatprep.subr.bf16.mxu1 %v3617_v11 }
 0x31a   :  { %972 = vmatprep.mubr.bf16.mxu0 %v5233_v43  ;;  %1013 = vmatprep.mubr.bf16.mxu1 %v5233_v43 }
 0x31c   :  { %943 = vmatpush1.bf16.msra.mxu0 %v3622_v12  ;;  %984 = vmatpush1.bf16.msra.mxu1 %v3627_v13 }
 0x31d   :  { %944 = vmatprep.subr.bf16.mxu0 %v3639_v15  ;;  %985 = vmatprep.subr.bf16.mxu1 %v3645_v16 }
 0x320   :  { %945 = vmatpush1.bf16.msra.mxu0 %v3651_v17  ;;  %986 = vmatpush1.bf16.msra.mxu1 %v3656_v18 }
 0x321   :  { %946 = vmatprep.subr.bf16.mxu0 %v3663_v19  ;;  %987 = vmatprep.subr.bf16.mxu1 %v3669_v20 }
 0x324   :  { %947 = vmatpush1.bf16.msra.mxu0 %v3676_v21  ;;  %988 = vmatpush1.bf16.msra.mxu1 %v3682_v22 }
 0x325   :  { %948 = vmatprep.subr.bf16.mxu0 %v3690_v23  ;;  %989 = vmatprep.subr.bf16.mxu1 %v3697_v24 }
 0x328   :  { %949 = vmatpush1.bf16.msra.mxu0 %v3706_v26  ;;  %990 = vmatpush1.bf16.msra.mxu1 %v3713_v27 }
 0x329   :  { %950 = vmatprep.subr.bf16.mxu0 %v3718_v28  ;;  %991 = vmatprep.subr.bf16.mxu1 %v3724_v29 }
 0x32c   :  { %951 = vmatpush1.bf16.msra.mxu0 %v3732_v30  ;;  %992 = vmatpush1.bf16.msra.mxu1 %v3737_v31 }
 0x32d   :  { %952 = vmatprep.subr.bf16.mxu0 %v3745_v32  ;;  %993 = vmatprep.subr.bf16.mxu1 %v3752_v33 }
 0x330   :  { %953 = vmatpush1.bf16.msra.mxu0 %v3761_v35  ;;  %994 = vmatpush1.bf16.msra.mxu1 %v3768_v36 }
 0x331   :  { %954 = vmatprep.subr.bf16.mxu0 %v3773_v37  ;;  %995 = vmatprep.subr.bf16.mxu1 %v3779_v38 }
 0x334   :  { %955 = vmatpush1.bf16.msra.mxu0 %v3787_v39  ;;  %996 = vmatpush1.bf16.msra.mxu1 %v3795_v40 }
 0x335   :  { %1050 = vmatprep.subr.bf16.mxu0 %v3587_v6  ;;  %1091 = vmatprep.subr.bf16.mxu1 %v3592_v7 }
 0x3ea   :  { %v861_v41 = vpop.f32.mrb[28].mxu0  ;;  %v902_v49 = vpop.f32.mrb[28].mxu1 }
 0x3eb   :  { %v909_v50 = vadd.f32 %v861_v41, %v5235_v48  ;;  %v911_v51 = vadd.f32 %v902_v49, %v5236_v52  ;;  %v863_v53 = vpop.f32.mrb[29].mxu0  ;;  %v904_v54 = vpop.f32.mrb[29].mxu1 }
 0x3ec   :  { %v910_v42 = vadd.f32 %v863_v53, %v5237_v55  ;;  %v912_v58 = vadd.f32 %v904_v54, %v5238_v2  ;;  %v865_v34 = vpop.f32.mrb[30].mxu0  ;;  %v906_v60 = vpop.f32.mrb[30].mxu1 }
 0x3ed   :  { %v913_v59 = vmul.f32 0.5, %v909_v50  ;;  %v866_v4 = vpop.f32.mrb[31].mxu0  ;;  %v907_v3 = vpop.f32.mrb[31].mxu1 }
 0x3ee   :  { %v917_v6 = vmul.f32 0.5, %v910_v42  ;;  %v922_v7 = vmul.f32 0.5, %v912_v58 }
 0x3ef   :  { %3316 = vtanh.f32 %v913_v59 }
 0x3f0   :  { %3318 = vtanh.f32 %v917_v6 }
 0x3f1   :  { %3320 = vtanh.f32 %v911_v51 }
 0x3f2   :  { %3322 = vtanh.f32 %v922_v7 }
 0x3f9   :  { %v3317_v62 = vpop.eup %3316 }
 0x3fa   :  { %v3319_v5 = vpop.eup %3318  ;;  %v915_v45 = vadd.f32 1.0, %v3317_v62 }
 0x3fb   :  { %v919_v63 = vadd.f32 1.0, %v3319_v5  ;;  %v3321_v57 = vpop.eup %3320 }
 0x3fc   :  { %v916_v25 = vmul.f32 0.5, %v915_v45  ;;  %v3323_v44 = vpop.eup %3322  ;;  %v4122_v45 = vld [vmem:[%s5195_s2] ss:$16 sps:$4 sm:$0xff]  }
 0x3fd   :  { %v920_v56 = vmul.f32 0.5, %v919_v63  ;;  %v924_v47 = vadd.f32 1.0, %v3323_v44  ;;  %v4128_v63 = vld [vmem:[%s5195_s2 + $0x8] ss:$16 sps:$4 sm:$0xff]   ;;  %v4172_v44 = vld [vmem:[%s5195_s2 + $0x40] ss:$16 sps:$4 sm:$0xff]  }
 0x3fe   :  { %v927_v1 = vmul.f32 %v3321_v57, %v916_v25  ;;  %v4134_v25 = vld [vmem:[%s5195_s2 + $0x24] ss:$16 sps:$4 sm:$0xff]   ;;  %v4140_v57 = vld [vmem:[%s5195_s2 + $0x2c] ss:$16 sps:$4 sm:$0xff]  }
 0x3ff   :  { %v926_v46 = vmul.f32 %v920_v56, %v4022_v0  ;;  %v925_v14 = vmul.f32 0.5, %v924_v47  ;;  %v4148_v56 = vld [vmem:[%s5195_s2 + $0x20] ss:$16 sps:$4 sm:$0xff]   ;;  %v4178_v47 = vld [vmem:[%s5195_s2 + $0x48] ss:$16 sps:$4 sm:$0xff]  }
 0x401   :  { %v4064_v61 = vadd.f32 %v927_v1, %v926_v46  ;;  %v4154_v1 = vld [vmem:[%s5195_s2 + $0x28] ss:$16 sps:$4 sm:$0xff]   ;;  %v4160_v46 = vld [vmem:[%s5195_s2 + $0x44] ss:$16 sps:$4 sm:$0xff]  }
 0x403   :  { %3324 = vtanh.f32 %v4064_v61 }
 0x40d   :  { %v3325_v41 = vpop.eup %3324 }
 0x40e   :  { %v930_v49 = vmul.f32 %v3325_v41, %v925_v14  ;;  %v4184_v14 = vld [vmem:[%s5195_s2 + $0x64] ss:$16 sps:$4 sm:$0xff]   ;;  %v4190_v41 = vld [vmem:[%s5195_s2 + $0x6c] ss:$16 sps:$4 sm:$0xff]  }
 0x410   :  { %v931_v48 = vpack.c.bf16 %v930_v49, %v930_v49  ;;  %v4196_v49 = vld [vmem:[%s5195_s2 + $0x60] ss:$16 sps:$4 sm:$0xff]  }
 0x412   :  { %v933_v50 = vrot.slane %v931_v48, 4  ;;  %973 = vmatmul.mubr.bf16.vlgmr.msra.gmra.mrb[32].mxu0 %v931_v48  ;;  %1014 = vmatmul.mubr.bf16.vlgmr.msra.gmra.mrb[32].mxu1 %v931_v48  ;;  %v4202_v48 = vld [vmem:[%s5195_s2 + $0x68] ss:$16 sps:$4 sm:$0xff]  }
 0x413   :  { %1051 = vmatpush1.bf16.msra.mxu0 %v3597_v8  ;;  %1092 = vmatpush1.bf16.msra.mxu1 %v3603_v9  ;;  %v4102_v8 = vld [vmem:[%s5195_s2 + $0x4] ss:$16 sps:$4 sm:$0xff]   ;;  %v4108_v9 = vld [vmem:[%s5195_s2 + $0xc] ss:$16 sps:$4 sm:$0xff]  }
 0x414   :  { %935 = vst [vmem:[#allocation3 + $0x8] sm:$0xf0] %v933_v50  ;;  %1052 = vmatprep.subr.bf16.mxu0 %v3610_v10  ;;  %1093 = vmatprep.subr.bf16.mxu1 %v3617_v11  ;;  %v4208_v50 = vld [vmem:[%s5195_s2 + $0x84] ss:$16 sps:$4 sm:$0xff]  }
 0x415   :  { %1082 = vmatprep.mubr.bf16.mxu0 %v5233_v43  ;;  %1123 = vmatprep.mubr.bf16.mxu1 %v5233_v43 }
 0x417   :  { %1053 = vmatpush1.bf16.msra.mxu0 %v3622_v12  ;;  %1094 = vmatpush1.bf16.msra.mxu1 %v3627_v13  ;;  %v5239_v12 = vld [vmem:[#allocation10_spill] sm:$0xff] }
 0x418   :  { %1054 = vmatprep.subr.bf16.mxu0 %v3639_v15  ;;  %1095 = vmatprep.subr.bf16.mxu1 %v3645_v16  ;;  %v5240_v15 = vld [vmem:[#allocation11_spill] sm:$0xff] }
 0x41b   :  { %1055 = vmatpush1.bf16.msra.mxu0 %v3651_v17  ;;  %1096 = vmatpush1.bf16.msra.mxu1 %v3656_v18 }
 0x41c   :  { %1056 = vmatprep.subr.bf16.mxu0 %v3663_v19  ;;  %1097 = vmatprep.subr.bf16.mxu1 %v3669_v20  ;;  %v5241_v19 = vld [vmem:[#allocation12_spill] sm:$0xff] }
 0x41f   :  { %1057 = vmatpush1.bf16.msra.mxu0 %v3676_v21  ;;  %1098 = vmatpush1.bf16.msra.mxu1 %v3682_v22  ;;  %v5242_v21 = vld [vmem:[#allocation13_spill] sm:$0xff] }
 0x420   :  { %1058 = vmatprep.subr.bf16.mxu0 %v3690_v23  ;;  %1099 = vmatprep.subr.bf16.mxu1 %v3697_v24 }
 0x423   :  { %1059 = vmatpush1.bf16.msra.mxu0 %v3706_v26  ;;  %1100 = vmatpush1.bf16.msra.mxu1 %v3713_v27 }
 0x424   :  { %1060 = vmatprep.subr.bf16.mxu0 %v3718_v28  ;;  %1101 = vmatprep.subr.bf16.mxu1 %v3724_v29 }
 0x427   :  { %1061 = vmatpush1.bf16.msra.mxu0 %v3732_v30  ;;  %1102 = vmatpush1.bf16.msra.mxu1 %v3737_v31 }
 0x428   :  { %1062 = vmatprep.subr.bf16.mxu0 %v3745_v32  ;;  %1103 = vmatprep.subr.bf16.mxu1 %v3752_v33 }
 0x42b   :  { %1063 = vmatpush1.bf16.msra.mxu0 %v3761_v35  ;;  %1104 = vmatpush1.bf16.msra.mxu1 %v3768_v36 }
 0x42c   :  { %1064 = vmatprep.subr.bf16.mxu0 %v3773_v37  ;;  %1105 = vmatprep.subr.bf16.mxu1 %v3779_v38 }
 0x42f   :  { %1065 = vmatpush1.bf16.msra.mxu0 %v3787_v39  ;;  %1106 = vmatpush1.bf16.msra.mxu1 %v3795_v40 }
 0x430   :  { %1163 = vmatprep.subr.bf16.mxu0 %v4102_v8  ;;  %1204 = vmatprep.subr.bf16.mxu1 %v4108_v9 }
 0x4e5   :  { %v974_v10 = vpop.f32.mrb[32].mxu0  ;;  %v1015_v11 = vpop.f32.mrb[32].mxu1 }
 0x4e6   :  { %v1022_v13 = vadd.f32 %v974_v10, %v5239_v12  ;;  %v1024_v16 = vadd.f32 %v1015_v11, %v5240_v15  ;;  %v976_v17 = vpop.f32.mrb[33].mxu0  ;;  %v1017_v18 = vpop.f32.mrb[33].mxu1  ;;  %v4214_v10 = vld [vmem:[%s5195_s2 + $0x8c] ss:$16 sps:$4 sm:$0xff]   ;;  %v4220_v11 = vld [vmem:[%s5195_s2 + $0x80] ss:$16 sps:$4 sm:$0xff]  }
 0x4e7   :  { %v1023_v20 = vadd.f32 %v976_v17, %v5241_v19  ;;  %v1025_v22 = vadd.f32 %v1017_v18, %v5242_v21  ;;  %v978_v23 = vpop.f32.mrb[34].mxu0  ;;  %v1019_v24 = vpop.f32.mrb[34].mxu1  ;;  %v4226_v12 = vld [vmem:[%s5195_s2 + $0x88] ss:$16 sps:$4 sm:$0xff]  }
 0x4e8   :  { %v1026_v26 = vmul.f32 0.5, %v1022_v13  ;;  %v979_v27 = vpop.f32.mrb[35].mxu0  ;;  %v1020_v28 = vpop.f32.mrb[35].mxu1  ;;  %v4232_v13 = vld [vmem:[%s5195_s2 + $0xa4] ss:$16 sps:$4 sm:$0xff]   ;;  %v5246_v17 = vld [vmem:[#allocation17_spill] sm:$0xff] }
 0x4e9   :  { %v1030_v0 = vmul.f32 0.5, %v1023_v20  ;;  %v1035_v52 = vmul.f32 0.5, %v1025_v22 }
 0x4ea   :  { %3326 = vtanh.f32 %v1026_v26 }
 0x4eb   :  { %3328 = vtanh.f32 %v1030_v0 }
 0x4ec   :  { %3330 = vtanh.f32 %v1024_v16  ;;  %v5245_v16 = vld [vmem:[#allocation16_spill] sm:$0xff] }
 0x4ed   :  { %3332 = vtanh.f32 %v1035_v52 }
 0x4f4   :  { %v3327_v51 = vpop.eup %3326 }
 0x4f5   :  { %v3329_v53 = vpop.eup %3328  ;;  %v1028_v54 = vadd.f32 1.0, %v3327_v51 }
 0x4f6   :  { %v1032_v55 = vadd.f32 1.0, %v3329_v53  ;;  %v3331_v2 = vpop.eup %3330 }
 0x4f7   :  { %v1029_v42 = vmul.f32 0.5, %v1028_v54  ;;  %v3333_v4 = vpop.eup %3332 }
 0x4f8   :  { %v1033_v58 = vmul.f32 0.5, %v1032_v55  ;;  %v1037_v3 = vadd.f32 1.0, %v3333_v4  ;;  %v3473_v4 = vld [vmem:[%s5195_s2 + $0xa8] ss:$16 sps:$4 sm:$0xff]  }
 0x4f9   :  { %v1040_v34 = vmul.f32 %v3331_v2, %v1029_v42 }
 0x4fa   :  { %v1039_v60 = vmul.f32 %v1033_v58, %v4064_v61  ;;  %v1038_v6 = vmul.f32 0.5, %v1037_v3  ;;  %v4166_v61 = vld [vmem:[%s5195_s2 + $0x4c] ss:$16 sps:$4 sm:$0xff]   ;;  %v3474_v3 = vld [vmem:[%s5195_s2 + $0xc4] ss:$16 sps:$4 sm:$0xff]  }
 0x4fc   :  { %v4116_v59 = vadd.f32 %v1040_v34, %v1039_v60  ;;  %v3471_v60 = vld [vmem:[%s5195_s2 + $0xac] ss:$16 sps:$4 sm:$0xff]  }
 0x4fe   :  { %3334 = vtanh.f32 %v4116_v59 }
 0x508   :  { %v3335_v7 = vpop.eup %3334 }
 0x509   :  { %v1043_v62 = vmul.f32 %v3335_v7, %v1038_v6  ;;  %v3475_v6 = vld [vmem:[%s5195_s2 + $0xcc] ss:$16 sps:$4 sm:$0xff]   ;;  %v3476_v7 = vld [vmem:[%s5195_s2 + $0xc0] ss:$16 sps:$4 sm:$0xff]  }
 0x50b   :  { %v1044_v5 = vpack.c.bf16 %v1043_v62, %v1043_v62  ;;  %v3477_v62 = vld [vmem:[%s5195_s2 + $0xc8] ss:$16 sps:$4 sm:$0xff]  }
 0x50d   :  { %1045 = vst [vmem:[#allocation3 + $0x10] sm:$0xf] %v1044_v5  ;;  %1083 = vmatmul.mubr.bf16.vlgmr.msra.gmra.mrb[36].mxu0 %v1044_v5  ;;  %1124 = vmatmul.mubr.bf16.vlgmr.msra.gmra.mrb[36].mxu1 %v1044_v5  ;;  %v3478_v5 = vld [vmem:[%s5195_s2 + $0xe4] ss:$16 sps:$4 sm:$0xff]  }
 0x50e   :  { %1164 = vmatpush1.bf16.msra.mxu0 %v4122_v45  ;;  %1205 = vmatpush1.bf16.msra.mxu1 %v4128_v63 }
 0x50f   :  { %1165 = vmatprep.subr.bf16.mxu0 %v4134_v25  ;;  %1206 = vmatprep.subr.bf16.mxu1 %v4140_v57 }
 0x510   :  { %1195 = vmatprep.mubr.bf16.mxu0 %v5233_v43  ;;  %1236 = vmatprep.mubr.bf16.mxu1 %v5233_v43 }
 0x512   :  { %1166 = vmatpush1.bf16.msra.mxu0 %v4148_v56  ;;  %1207 = vmatpush1.bf16.msra.mxu1 %v4154_v1 }
 0x513   :  { %1167 = vmatprep.subr.bf16.mxu0 %v4160_v46  ;;  %1208 = vmatprep.subr.bf16.mxu1 %v4166_v61 }
 0x516   :  { %1168 = vmatpush1.bf16.msra.mxu0 %v4172_v44  ;;  %1209 = vmatpush1.bf16.msra.mxu1 %v4178_v47 }
 0x517   :  { %1169 = vmatprep.subr.bf16.mxu0 %v4184_v14  ;;  %1210 = vmatprep.subr.bf16.mxu1 %v4190_v41 }
 0x51a   :  { %1170 = vmatpush1.bf16.msra.mxu0 %v4196_v49  ;;  %1211 = vmatpush1.bf16.msra.mxu1 %v4202_v48 }
 0x51b   :  { %1171 = vmatprep.subr.bf16.mxu0 %v4208_v50  ;;  %1212 = vmatprep.subr.bf16.mxu1 %v4214_v10 }
 0x51e   :  { %1172 = vmatpush1.bf16.msra.mxu0 %v4220_v11  ;;  %1213 = vmatpush1.bf16.msra.mxu1 %v4226_v12 }
 0x51f   :  { %1173 = vmatprep.subr.bf16.mxu0 %v4232_v13  ;;  %1214 = vmatprep.subr.bf16.mxu1 %v3724_v29 }
 0x522   :  { %1174 = vmatpush1.bf16.msra.mxu0 %v3732_v30  ;;  %1215 = vmatpush1.bf16.msra.mxu1 %v3737_v31  ;;  %v5243_v31 = vld [vmem:[#allocation14_spill] sm:$0xff] }
 0x523   :  { %1175 = vmatprep.subr.bf16.mxu0 %v3745_v32  ;;  %1216 = vmatprep.subr.bf16.mxu1 %v3752_v33  ;;  %v5244_v33 = vld [vmem:[#allocation15_spill] sm:$0xff] }
 0x526   :  { %1176 = vmatpush1.bf16.msra.mxu0 %v3761_v35  ;;  %1217 = vmatpush1.bf16.msra.mxu1 %v3768_v36 }
 0x527   :  { %1177 = vmatprep.subr.bf16.mxu0 %v3773_v37  ;;  %1218 = vmatprep.subr.bf16.mxu1 %v3779_v38 }
 0x52a   :  { %1178 = vmatpush1.bf16.msra.mxu0 %v3787_v39  ;;  %1219 = vmatpush1.bf16.msra.mxu1 %v3795_v40 }
 0x52b   :  { %1273 = vmatprep.subr.bf16.mxu0 %v4102_v8  ;;  %1314 = vmatprep.subr.bf16.mxu1 %v4108_v9 }
 0x5e0   :  { %v1084_v29 = vpop.f32.mrb[36].mxu0  ;;  %v1125_v30 = vpop.f32.mrb[36].mxu1 }
 0x5e1   :  { %v1132_v32 = vadd.f32 %v1084_v29, %v5243_v31  ;;  %v1134_v35 = vadd.f32 %v1125_v30, %v5244_v33  ;;  %v1086_v15 = vpop.f32.mrb[37].mxu0  ;;  %v1127_v36 = vpop.f32.mrb[37].mxu1 }
 0x5e2   :  { %v1133_v37 = vadd.f32 %v1086_v15, %v5245_v16  ;;  %v1135_v38 = vadd.f32 %v1127_v36, %v5246_v17  ;;  %v1088_v18 = vpop.f32.mrb[38].mxu0  ;;  %v1129_v39 = vpop.f32.mrb[38].mxu1 }
 0x5e3   :  { %v1136_v19 = vmul.f32 0.5, %v1132_v32  ;;  %v1089_v40 = vpop.f32.mrb[39].mxu0  ;;  %v1130_v20 = vpop.f32.mrb[39].mxu1 }
 0x5e4   :  { %v1140_v8 = vmul.f32 0.5, %v1133_v37  ;;  %v1145_v9 = vmul.f32 0.5, %v1135_v38 }
 0x5e5   :  { %3336 = vtanh.f32 %v1136_v19 }
 0x5e6   :  { %3338 = vtanh.f32 %v1140_v8 }
 0x5e7   :  { %3340 = vtanh.f32 %v1134_v35 }
 0x5e8   :  { %3342 = vtanh.f32 %v1145_v9 }
 0x5ef   :  { %v3337_v21 = vpop.eup %3336 }
 0x5f0   :  { %v3339_v22 = vpop.eup %3338  ;;  %v1138_v23 = vadd.f32 1.0, %v3337_v21 }
 0x5f1   :  { %v1142_v24 = vadd.f32 1.0, %v3339_v22  ;;  %v3341_v27 = vpop.eup %3340  ;;  %v3182_v22 = vld [vmem:[%s5197_s4] ss:$16 sps:$4 sm:$0xff]  }
 0x5f2   :  { %v1139_v26 = vmul.f32 0.5, %v1138_v23  ;;  %v3343_v53 = vpop.eup %3342  ;;  %v3185_v23 = vld [vmem:[%s5197_s4 + $0x8] ss:$16 sps:$4 sm:$0xff]  }
 0x5f3   :  { %v1143_v28 = vmul.f32 0.5, %v1142_v24  ;;  %v1147_v54 = vadd.f32 1.0, %v3343_v53  ;;  %v3194_v53 = vld [vmem:[%s5197_s4 + $0x40] ss:$16 sps:$4 sm:$0xff]  }
 0x5f4   :  { %v1150_v0 = vmul.f32 %v3341_v27, %v1139_v26  ;;  %v3190_v26 = vld [vmem:[%s5197_s4 + $0x24] ss:$16 sps:$4 sm:$0xff]   ;;  %v3193_v27 = vld [vmem:[%s5197_s4 + $0x2c] ss:$16 sps:$4 sm:$0xff]  }
 0x5f5   :  { %v1149_v52 = vmul.f32 %v1143_v28, %v4116_v59  ;;  %v1148_v55 = vmul.f32 0.5, %v1147_v54  ;;  %v3472_v59 = vld [vmem:[%s5195_s2 + $0xa0] ss:$16 sps:$4 sm:$0xff]   ;;  %v3197_v54 = vld [vmem:[%s5197_s4 + $0x48] ss:$16 sps:$4 sm:$0xff]  }
 0x5f6   :  { %v3188_v28 = vld [vmem:[%s5197_s4 + $0x20] ss:$16 sps:$4 sm:$0xff]  }
 0x5f7   :  { %v4253_v51 = vadd.f32 %v1150_v0, %v1149_v52  ;;  %v3191_v0 = vld [vmem:[%s5197_s4 + $0x28] ss:$16 sps:$4 sm:$0xff]   ;;  %v3196_v52 = vld [vmem:[%s5197_s4 + $0x44] ss:$16 sps:$4 sm:$0xff]  }
 0x5f9   :  { %3344 = vtanh.f32 %v4253_v51 }
 0x603   :  { %v3345_v42 = vpop.eup %3344 }
 0x604   :  { %v1153_v2 = vmul.f32 %v3345_v42, %v1148_v55  ;;  %v3202_v55 = vld [vmem:[%s5197_s4 + $0x64] ss:$16 sps:$4 sm:$0xff]   ;;  %v3205_v42 = vld [vmem:[%s5197_s4 + $0x6c] ss:$16 sps:$4 sm:$0xff]  }
 0x606   :  { %v1154_v58 = vpack.c.bf16 %v1153_v2, %v1153_v2  ;;  %v3200_v2 = vld [vmem:[%s5197_s4 + $0x60] ss:$16 sps:$4 sm:$0xff]  }
 0x608   :  { %v1156_v34 = vrot.slane %v1154_v58, 4  ;;  %1196 = vmatmul.mubr.bf16.vlgmr.msra.gmra.mrb[40].mxu0 %v1154_v58  ;;  %1237 = vmatmul.mubr.bf16.vlgmr.msra.gmra.mrb[40].mxu1 %v1154_v58  ;;  %v3203_v58 = vld [vmem:[%s5197_s4 + $0x68] ss:$16 sps:$4 sm:$0xff]  }
 0x609   :  { %1274 = vmatpush1.bf16.msra.mxu0 %v4122_v45  ;;  %1315 = vmatpush1.bf16.msra.mxu1 %v4128_v63  ;;  %v3479_v45 = vld [vmem:[%s5195_s2 + $0xec] ss:$16 sps:$4 sm:$0xff]   ;;  %v3480_v63 = vld [vmem:[%s5195_s2 + $0xe0] ss:$16 sps:$4 sm:$0xff]  }
 0x60a   :  { %1158 = vst [vmem:[#allocation3 + $0x10] sm:$0xf0] %v1156_v34  ;;  %1275 = vmatprep.subr.bf16.mxu0 %v4134_v25  ;;  %1316 = vmatprep.subr.bf16.mxu1 %v4140_v57  ;;  %v3481_v25 = vld [vmem:[%s5195_s2 + $0xe8] ss:$16 sps:$4 sm:$0xff]   ;;  %v3184_v57 = vld [vmem:[%s5197_s4 + $0x4] ss:$16 sps:$4 sm:$0xff]  }
 0x60b   :  { %1305 = vmatprep.mubr.bf16.mxu0 %v5233_v43  ;;  %1346 = vmatprep.mubr.bf16.mxu1 %v5233_v43  ;;  %v3208_v34 = vld [vmem:[%s5197_s4 + $0x84] ss:$16 sps:$4 sm:$0xff]  }
 0x60d   :  { %1276 = vmatpush1.bf16.msra.mxu0 %v4148_v56  ;;  %1317 = vmatpush1.bf16.msra.mxu1 %v4154_v1  ;;  %v3187_v56 = vld [vmem:[%s5197_s4 + $0xc] ss:$16 sps:$4 sm:$0xff]  }
 0x60e   :  { %1277 = vmatprep.subr.bf16.mxu0 %v4160_v46  ;;  %1318 = vmatprep.subr.bf16.mxu1 %v4166_v61  ;;  %v5247_v61 = vld [vmem:[#allocation18_spill] sm:$0xff] }
 0x611   :  { %1278 = vmatpush1.bf16.msra.mxu0 %v4172_v44  ;;  %1319 = vmatpush1.bf16.msra.mxu1 %v4178_v47  ;;  %v5248_v47 = vld [vmem:[#allocation19_spill] sm:$0xff] }
 0x612   :  { %1279 = vmatprep.subr.bf16.mxu0 %v4184_v14  ;;  %1320 = vmatprep.subr.bf16.mxu1 %v4190_v41 }
 0x615   :  { %1280 = vmatpush1.bf16.msra.mxu0 %v4196_v49  ;;  %1321 = vmatpush1.bf16.msra.mxu1 %v4202_v48  ;;  %v5249_v48 = vld [vmem:[#allocation20_spill] sm:$0xff] }
 0x616   :  { %1281 = vmatprep.subr.bf16.mxu0 %v4208_v50  ;;  %1322 = vmatprep.subr.bf16.mxu1 %v4214_v10  ;;  %v5250_v10 = vld [vmem:[#allocation21_spill] sm:$0xff] }
 0x619   :  { %1282 = vmatpush1.bf16.msra.mxu0 %v4220_v11  ;;  %1323 = vmatpush1.bf16.msra.mxu1 %v4226_v12 }
 0x61a   :  { %1283 = vmatprep.subr.bf16.mxu0 %v4232_v13  ;;  %1324 = vmatprep.subr.bf16.mxu1 %v3471_v60  ;;  %v3211_v60 = vld [vmem:[%s5197_s4 + $0x8c] ss:$16 sps:$4 sm:$0xff]  }
 0x61d   :  { %1284 = vmatpush1.bf16.msra.mxu0 %v3472_v59  ;;  %1325 = vmatpush1.bf16.msra.mxu1 %v3473_v4  ;;  %v3206_v59 = vld [vmem:[%s5197_s4 + $0x80] ss:$16 sps:$4 sm:$0xff]   ;;  %v3209_v4 = vld [vmem:[%s5197_s4 + $0x88] ss:$16 sps:$4 sm:$0xff]  }
 0x61e   :  { %1285 = vmatprep.subr.bf16.mxu0 %v3474_v3  ;;  %1326 = vmatprep.subr.bf16.mxu1 %v3475_v6  ;;  %v3214_v3 = vld [vmem:[%s5197_s4 + $0xa4] ss:$16 sps:$4 sm:$0xff]   ;;  %v3217_v6 = vld [vmem:[%s5197_s4 + $0xac] ss:$16 sps:$4 sm:$0xff]  }
 0x621   :  { %1286 = vmatpush1.bf16.msra.mxu0 %v3476_v7  ;;  %1327 = vmatpush1.bf16.msra.mxu1 %v3477_v62  ;;  %v3212_v7 = vld [vmem:[%s5197_s4 + $0xa0] ss:$16 sps:$4 sm:$0xff]   ;;  %v3215_v62 = vld [vmem:[%s5197_s4 + $0xa8] ss:$16 sps:$4 sm:$0xff]  }
 0x622   :  { %1287 = vmatprep.subr.bf16.mxu0 %v3478_v5  ;;  %1328 = vmatprep.subr.bf16.mxu1 %v3479_v45  ;;  %v3220_v5 = vld [vmem:[%s5197_s4 + $0xc4] ss:$16 sps:$4 sm:$0xff]   ;;  %v3223_v45 = vld [vmem:[%s5197_s4 + $0xcc] ss:$16 sps:$4 sm:$0xff]  }
 0x625   :  { %1288 = vmatpush1.bf16.msra.mxu0 %v3480_v63  ;;  %1329 = vmatpush1.bf16.msra.mxu1 %v3481_v25  ;;  %v3218_v63 = vld [vmem:[%s5197_s4 + $0xc0] ss:$16 sps:$4 sm:$0xff]   ;;  %v3221_v25 = vld [vmem:[%s5197_s4 + $0xc8] ss:$16 sps:$4 sm:$0xff]  }
 0x626   :  { %1600 = vmatprep.subr.bf16.mxu0 %v3184_v57  ;;  %1673 = vmatprep.subr.bf16.mxu1 %v3187_v56  ;;  %v3226_v57 = vld [vmem:[%s5197_s4 + $0xe4] ss:$16 sps:$4 sm:$0xff]   ;;  %v3229_v56 = vld [vmem:[%s5197_s4 + $0xec] ss:$16 sps:$4 sm:$0xff]  }
 0x6db   :  { %v1197_v1 = vpop.f32.mrb[40].mxu0  ;;  %v1238_v46 = vpop.f32.mrb[40].mxu1 }
 0x6dc   :  { %v1245_v44 = vadd.f32 %v1197_v1, %v5247_v61  ;;  %v1247_v14 = vadd.f32 %v1238_v46, %v5248_v47  ;;  %v1199_v41 = vpop.f32.mrb[41].mxu0  ;;  %v1240_v49 = vpop.f32.mrb[41].mxu1  ;;  %v3224_v1 = vld [vmem:[%s5197_s4 + $0xe0] ss:$16 sps:$4 sm:$0xff]   ;;  %v3227_v46 = vld [vmem:[%s5197_s4 + $0xe8] ss:$16 sps:$4 sm:$0xff]  }
 0x6dd   :  { %v1246_v50 = vadd.f32 %v1199_v41, %v5249_v48  ;;  %v1248_v11 = vadd.f32 %v1240_v49, %v5250_v10  ;;  %v1201_v12 = vpop.f32.mrb[42].mxu0  ;;  %v1242_v13 = vpop.f32.mrb[42].mxu1  ;;  %v1382_v61 = vld [vmem:[#allocation3] sm:$0xff]  ;;  %v1384_v47 = vld [vmem:[#allocation3 + $0x10] sm:$0xff]  ;;  %v4430_v41 = vld [vmem:[%s5198_s5 + $0xc] ss:$16 sps:$4 sm:$0xff]  }
 0x6de   :  { %v1249_v29 = vmul.f32 0.5, %v1245_v44  ;;  %v1202_v30 = vpop.f32.mrb[43].mxu0  ;;  %v1243_v31 = vpop.f32.mrb[43].mxu1  ;;  %v1383_v44 = vld [vmem:[#allocation3 + $0x8] sm:$0xff]  ;;  %v4436_v49 = vld [vmem:[%s5198_s5] ss:$16 sps:$4 sm:$0xff]  }
 0x6df   :  { %v1253_v32 = vmul.f32 0.5, %v1246_v50  ;;  %v1258_v33 = vmul.f32 0.5, %v1248_v11  ;;  %v4441_v48 = vld [vmem:[%s5198_s5 + $0x8] ss:$16 sps:$4 sm:$0xff]   ;;  %v4449_v50 = vld [vmem:[%s5198_s5 + $0x24] ss:$16 sps:$4 sm:$0xff]  }
 0x6e0   :  { %3346 = vtanh.f32 %v1249_v29  ;;  %v4454_v10 = vld [vmem:[%s5198_s5 + $0x2c] ss:$16 sps:$4 sm:$0xff]   ;;  %v4459_v11 = vld [vmem:[%s5198_s5 + $0x20] ss:$16 sps:$4 sm:$0xff]   ;;  %v4464_v12 = vld [vmem:[%s5198_s5 + $0x28] ss:$16 sps:$4 sm:$0xff]  }
 0x6e1   :  { %3348 = vtanh.f32 %v1253_v32  ;;  %v4473_v13 = vld [vmem:[%s5198_s5 + $0x44] ss:$16 sps:$4 sm:$0xff]   ;;  %v4478_v29 = vld [vmem:[%s5198_s5 + $0x4c] ss:$16 sps:$4 sm:$0xff]   ;;  %v4483_v30 = vld [vmem:[%s5198_s5 + $0x40] ss:$16 sps:$4 sm:$0xff]  }
 0x6e2   :  { %3350 = vtanh.f32 %v1247_v14  ;;  %v4425_v14 = vld [vmem:[%s5198_s5 + $0x4] ss:$16 sps:$4 sm:$0xff]   ;;  %v4488_v31 = vld [vmem:[%s5198_s5 + $0x48] ss:$16 sps:$4 sm:$0xff]  }
 0x6e3   :  { %3352 = vtanh.f32 %v1258_v33  ;;  %v4497_v32 = vld [vmem:[%s5198_s5 + $0x64] ss:$16 sps:$4 sm:$0xff]   ;;  %v4502_v33 = vld [vmem:[%s5198_s5 + $0x6c] ss:$16 sps:$4 sm:$0xff]  }
 0x6ea   :  { %v3347_v35 = vpop.eup %3346 }
 0x6eb   :  { %v3349_v15 = vpop.eup %3348  ;;  %v1251_v36 = vadd.f32 1.0, %v3347_v35  ;;  %v4507_v35 = vld [vmem:[%s5198_s5 + $0x60] ss:$16 sps:$4 sm:$0xff]  }
 0x6ec   :  { %v1255_v16 = vadd.f32 1.0, %v3349_v15  ;;  %v3351_v17 = vpop.eup %3350  ;;  %v4512_v15 = vld [vmem:[%s5198_s5 + $0x68] ss:$16 sps:$4 sm:$0xff]  }
 0x6ed   :  { %v1252_v37 = vmul.f32 0.5, %v1251_v36  ;;  %v3353_v40 = vpop.eup %3352  ;;  %v4521_v36 = vld [vmem:[%s5198_s5 + $0x84] ss:$16 sps:$4 sm:$0xff]  }
 0x6ee   :  { %v1256_v38 = vmul.f32 0.5, %v1255_v16  ;;  %v1260_v20 = vadd.f32 1.0, %v3353_v40  ;;  %v4526_v16 = vld [vmem:[%s5198_s5 + $0x8c] ss:$16 sps:$4 sm:$0xff]   ;;  %v4562_v40 = vld [vmem:[%s5198_s5 + $0xa8] ss:$16 sps:$4 sm:$0xff]  }
 0x6ef   :  { %v1263_v18 = vmul.f32 %v3351_v17, %v1252_v37  ;;  %v4531_v37 = vld [vmem:[%s5198_s5 + $0x80] ss:$16 sps:$4 sm:$0xff]   ;;  %v4536_v17 = vld [vmem:[%s5198_s5 + $0x88] ss:$16 sps:$4 sm:$0xff]  }
 0x6f0   :  { %v1262_v39 = vmul.f32 %v1256_v38, %v4253_v51  ;;  %v1261_v8 = vmul.f32 0.5, %v1260_v20  ;;  %v3199_v51 = vld [vmem:[%s5197_s4 + $0x4c] ss:$16 sps:$4 sm:$0xff]   ;;  %v4543_v38 = vld [vmem:[%s5198_s5 + $0xa4] ss:$16 sps:$4 sm:$0xff]  }
 0x6f1   :  { %v4569_v20 = vld [vmem:[%s5198_s5 + $0xc4] ss:$16 sps:$4 sm:$0xff]  }
 0x6f2   :  { %v4321_v19 = vadd.f32 %v1263_v18, %v1262_v39  ;;  %v4548_v18 = vld [vmem:[%s5198_s5 + $0xac] ss:$16 sps:$4 sm:$0xff]   ;;  %v4557_v39 = vld [vmem:[%s5198_s5 + $0xa0] ss:$16 sps:$4 sm:$0xff]  }
 0x6f4   :  { %3354 = vtanh.f32 %v4321_v19 }
 0x6fe   :  { %v3355_v9 = vpop.eup %3354 }
 0x6ff   :  { %v1266_v21 = vmul.f32 %v3355_v9, %v1261_v8  ;;  %v4574_v8 = vld [vmem:[%s5198_s5 + $0xcc] ss:$16 sps:$4 sm:$0xff]   ;;  %v4579_v9 = vld [vmem:[%s5198_s5 + $0xc0] ss:$16 sps:$4 sm:$0xff]  }
 0x701   :  { %v1267_v24 = vpack.c.bf16 %v1266_v21, %v1266_v21  ;;  %v4584_v21 = vld [vmem:[%s5198_s5 + $0xc8] ss:$16 sps:$4 sm:$0xff]  }
 0x703   :  { %1268 = vst [vmem:[#allocation3 + $0x18] sm:$0xf] %v1267_v24  ;;  %1306 = vmatmul.mubr.bf16.vlgmr.msra.gmra.mrb[44].mxu0 %v1267_v24  ;;  %1347 = vmatmul.mubr.bf16.vlgmr.msra.gmra.mrb[44].mxu1 %v1267_v24  ;;  %v4603_v24 = vld [vmem:[%s5198_s5 + $0xe0] ss:$16 sps:$4 sm:$0xff]  }
 0x704   :  { %1601 = vmatpush1.bf16.msra.mxu0 %v3182_v22  ;;  %1674 = vmatpush1.bf16.msra.mxu1 %v3185_v23  ;;  %v4591_v22 = vld [vmem:[%s5198_s5 + $0xe4] ss:$16 sps:$4 sm:$0xff]   ;;  %v4596_v23 = vld [vmem:[%s5198_s5 + $0xec] ss:$16 sps:$4 sm:$0xff]  }
 0x705   :  { %1602 = vmatprep.subr.bf16.mxu0 %v3190_v26  ;;  %1675 = vmatprep.subr.bf16.mxu1 %v3193_v27  ;;  %v4608_v26 = vld [vmem:[%s5198_s5 + $0xe8] ss:$16 sps:$4 sm:$0xff]  }
 0x706   :  { %1632 = vmatprep.mubr.bf16.mxu0 %v5233_v43  ;;  %1705 = vmatprep.mubr.bf16.mxu1 %v5233_v43 }
 0x708   :  { %1603 = vmatpush1.bf16.msra.mxu0 %v3188_v28  ;;  %1676 = vmatpush1.bf16.msra.mxu1 %v3191_v0  ;;  %v5251_v0 = vld [vmem:[#allocation22_spill] sm:$0xff] }
 0x709   :  { %1604 = vmatprep.subr.bf16.mxu0 %v3196_v52  ;;  %1677 = vmatprep.subr.bf16.mxu1 %v3199_v51  ;;  %v5252_v51 = vld [vmem:[#allocation23_spill] sm:$0xff] }
 0x70c   :  { %1605 = vmatpush1.bf16.msra.mxu0 %v3194_v53  ;;  %1678 = vmatpush1.bf16.msra.mxu1 %v3197_v54 }
 0x70d   :  { %1606 = vmatprep.subr.bf16.mxu0 %v3202_v55  ;;  %1679 = vmatprep.subr.bf16.mxu1 %v3205_v42  ;;  %v5253_v42 = vld [vmem:[#allocation24_spill] sm:$0xff] }
 0x710   :  { %1607 = vmatpush1.bf16.msra.mxu0 %v3200_v2  ;;  %1680 = vmatpush1.bf16.msra.mxu1 %v3203_v58  ;;  %v5254_v58 = vld [vmem:[#allocation25_spill] sm:$0xff] }
 0x711   :  { %1608 = vmatprep.subr.bf16.mxu0 %v3208_v34  ;;  %1681 = vmatprep.subr.bf16.mxu1 %v3211_v60 }
 0x714   :  { %1609 = vmatpush1.bf16.msra.mxu0 %v3206_v59  ;;  %1682 = vmatpush1.bf16.msra.mxu1 %v3209_v4 }
 0x715   :  { %1610 = vmatprep.subr.bf16.mxu0 %v3214_v3  ;;  %1683 = vmatprep.subr.bf16.mxu1 %v3217_v6 }
 0x718   :  { %1611 = vmatpush1.bf16.msra.mxu0 %v3212_v7  ;;  %1684 = vmatpush1.bf16.msra.mxu1 %v3215_v62 }
 0x719   :  { %1612 = vmatprep.subr.bf16.mxu0 %v3220_v5  ;;  %1685 = vmatprep.subr.bf16.mxu1 %v3223_v45 }
 0x71c   :  { %1613 = vmatpush1.bf16.msra.mxu0 %v3218_v63  ;;  %1686 = vmatpush1.bf16.msra.mxu1 %v3221_v25 }
 0x71d   :  { %1614 = vmatprep.subr.bf16.mxu0 %v3226_v57  ;;  %1687 = vmatprep.subr.bf16.mxu1 %v3229_v56 }
 0x720   :  { %1615 = vmatpush1.bf16.msra.mxu0 %v3224_v1  ;;  %1688 = vmatpush1.bf16.msra.mxu1 %v3227_v46 }
 0x721   :  { %1974 = vmatprep.subr.bf16.mxu0 %v4425_v14  ;;  %2015 = vmatprep.subr.bf16.mxu1 %v4430_v41 }
 0x723   :  { %1633 = vmatmul.mubr.bf16.vlgmr.msra.gmra.mrb[48].mxu0 %v1382_v61  ;;  %1706 = vmatmul.mubr.bf16.vlgmr.msra.gmra.mrb[48].mxu1 %v1382_v61 }
 0x724   :  { %1642 = vmatprep.mubr.bf16.mxu0 %v5233_v43  ;;  %1715 = vmatprep.mubr.bf16.mxu1 %v5233_v43 }
 0x725   :  { %1975 = vmatpush1.bf16.msra.mxu0 %v4436_v49  ;;  %2016 = vmatpush1.bf16.msra.mxu1 %v4441_v48 }
 0x726   :  { %1976 = vmatprep.subr.bf16.mxu0 %v4449_v50  ;;  %2017 = vmatprep.subr.bf16.mxu1 %v4454_v10 }
 0x729   :  { %1977 = vmatpush1.bf16.msra.mxu0 %v4459_v11  ;;  %2018 = vmatpush1.bf16.msra.mxu1 %v4464_v12 }
 0x72a   :  { %1978 = vmatprep.subr.bf16.mxu0 %v4473_v13  ;;  %2019 = vmatprep.subr.bf16.mxu1 %v4478_v29 }
 0x72b   :  { %1643 = vmatmul.mubr.bf16.gmra.mrb[52].mxu0 %v1383_v44  ;;  %1716 = vmatmul.mubr.bf16.gmra.mrb[52].mxu1 %v1383_v44 }
 0x72c   :  { %1652 = vmatprep.mubr.bf16.mxu0 %v5233_v43  ;;  %1725 = vmatprep.mubr.bf16.mxu1 %v5233_v43 }
 0x72d   :  { %1979 = vmatpush1.bf16.msra.mxu0 %v4483_v30  ;;  %2020 = vmatpush1.bf16.msra.mxu1 %v4488_v31 }
 0x72e   :  { %1980 = vmatprep.subr.bf16.mxu0 %v4497_v32  ;;  %2021 = vmatprep.subr.bf16.mxu1 %v4502_v33 }
 0x731   :  { %1981 = vmatpush1.bf16.msra.mxu0 %v4507_v35  ;;  %2022 = vmatpush1.bf16.msra.mxu1 %v4512_v15 }
 0x732   :  { %1982 = vmatprep.subr.bf16.mxu0 %v4521_v36  ;;  %2023 = vmatprep.subr.bf16.mxu1 %v4526_v16 }
 0x733   :  { %1653 = vmatmul.mubr.bf16.gmra.mrb[56].mxu0 %v1384_v47  ;;  %1726 = vmatmul.mubr.bf16.gmra.mrb[56].mxu1 %v1384_v47 }
 0x734   :  { %1662 = vmatprep.mubr.bf16.mxu0 %v5233_v43  ;;  %1735 = vmatprep.mubr.bf16.mxu1 %v5233_v43 }
 0x735   :  { %1983 = vmatpush1.bf16.msra.mxu0 %v4531_v37  ;;  %2024 = vmatpush1.bf16.msra.mxu1 %v4536_v17 }
 0x736   :  { %1984 = vmatprep.subr.bf16.mxu0 %v4543_v38  ;;  %2025 = vmatprep.subr.bf16.mxu1 %v4548_v18 }
 0x739   :  { %1985 = vmatpush1.bf16.msra.mxu0 %v4557_v39  ;;  %2026 = vmatpush1.bf16.msra.mxu1 %v4562_v40 }
 0x73a   :  { %1986 = vmatprep.subr.bf16.mxu0 %v4569_v20  ;;  %2027 = vmatprep.subr.bf16.mxu1 %v4574_v8 }
 0x73d   :  { %1987 = vmatpush1.bf16.msra.mxu0 %v4579_v9  ;;  %2028 = vmatpush1.bf16.msra.mxu1 %v4584_v21 }
 0x73e   :  { %1988 = vmatprep.subr.bf16.mxu0 %v4591_v22  ;;  %2029 = vmatprep.subr.bf16.mxu1 %v4596_v23 }
 0x741   :  { %1989 = vmatpush1.bf16.msra.mxu0 %v4603_v24  ;;  %2030 = vmatpush1.bf16.msra.mxu1 %v4608_v26 }
 0x742   :  { %2083 = vmatprep.subr.bf16.mxu0 %v4425_v14  ;;  %2124 = vmatprep.subr.bf16.mxu1 %v4430_v41 }
 0x7d6   :  { %v1307_v27 = vpop.f32.mrb[44].mxu0  ;;  %v1348_v28 = vpop.f32.mrb[44].mxu1 }
 0x7d7   :  { %v1355_v52 = vadd.f32 %v1307_v27, %v5251_v0  ;;  %v1357_v53 = vadd.f32 %v1348_v28, %v5252_v51  ;;  %v1309_v54 = vpop.f32.mrb[45].mxu0  ;;  %v1350_v55 = vpop.f32.mrb[45].mxu1 }
 0x7d8   :  { %v1356_v2 = vadd.f32 %v1309_v54, %v5253_v42  ;;  %v1358_v34 = vadd.f32 %v1350_v55, %v5254_v58  ;;  %v1311_v60 = vpop.f32.mrb[46].mxu0  ;;  %v1352_v59 = vpop.f32.mrb[46].mxu1 }
 0x7d9   :  { %v1359_v4 = vmul.f32 0.5, %v1355_v52  ;;  %v1312_v3 = vpop.f32.mrb[47].mxu0  ;;  %v1353_v6 = vpop.f32.mrb[47].mxu1 }
 0x7da   :  { %v1363_v7 = vmul.f32 0.5, %v1356_v2  ;;  %v1368_v62 = vmul.f32 0.5, %v1358_v34 }
 0x7db   :  { %3356 = vtanh.f32 %v1359_v4 }
 0x7dc   :  { %3358 = vtanh.f32 %v1363_v7 }
 0x7dd   :  { %3360 = vtanh.f32 %v1357_v53 }
 0x7de   :  { %3362 = vtanh.f32 %v1368_v62 }
 0x7e5   :  { %v3357_v5 = vpop.eup %3356 }
 0x7e6   :  { %v3359_v45 = vpop.eup %3358  ;;  %v1361_v63 = vadd.f32 1.0, %v3357_v5 }
 0x7e7   :  { %v1365_v25 = vadd.f32 1.0, %v3359_v45  ;;  %v3361_v56 = vpop.eup %3360 }
 0x7e8   :  { %v1362_v57 = vmul.f32 0.5, %v1361_v63  ;;  %v3363_v47 = vpop.eup %3362 }
 0x7e9   :  { %v1366_v1 = vmul.f32 0.5, %v1365_v25  ;;  %v1370_v27 = vadd.f32 1.0, %v3363_v47 }
 0x7ea   :  { %v1373_v46 = vmul.f32 %v3361_v56, %v1362_v57 }
 0x7eb   :  { %v1372_v61 = vmul.f32 %v1366_v1, %v4321_v19  ;;  %v1371_v53 = vmul.f32 0.5, %v1370_v27  ;;  %v1418_v27 = vld [vmem:[%s5199_s6] sm:$0xf] }
 0x7ed   :  { %v1374_v44 = vadd.f32 %v1373_v46, %v1372_v61 }
 0x7ef   :  { %3364 = vtanh.f32 %v1374_v44 }
 0x7f6   :  { %v4621_v28 = vpop.f32.mrb[48].mxu0  ;;  %v4623_v0 = vpop.f32.mrb[48].mxu1 }
 0x7f7   :  { %v4625_v52 = vpop.f32.mrb[49].mxu0  ;;  %v4627_v51 = vpop.f32.mrb[49].mxu1 }
 0x7f8   :  { %v4629_v54 = vpop.f32.mrb[50].mxu0  ;;  %v4631_v55 = vpop.f32.mrb[50].mxu1 }
 0x7f9   :  { %v3365_v42 = vpop.eup %3364  ;;  %v4633_v2 = vpop.f32.mrb[51].mxu0 }
 0x7fa   :  { %v4635_v19 = vpop.f32.mrb[51].mxu1  ;;  %v1376_v58 = vmul.f32 %v3365_v42, %v1371_v53 }
 0x7fc   :  { %v1377_v34 = vpack.c.bf16 %v1376_v58, %v1376_v58 }
 0x7fe   :  { %v1379_v60 = vrot.slane %v1377_v34, 4  ;;  %v4637_v59 = vpop.f32.mrb[52].mxu0  ;;  %v4639_v4 = vpop.f32.mrb[52].mxu1 }
 0x7ff   :  { %5255 = vst [vmem:[#allocation5_spill] sm:$0xff] %v4637_v59  ;;  %5256 = vst [vmem:[#allocation6_spill] sm:$0xff] %v4639_v4  ;;  %v4641_v3 = vpop.f32.mrb[53].mxu0  ;;  %v4643_v6 = vpop.f32.mrb[53].mxu1 }
 0x800   :  { %5257 = vst [vmem:[#allocation7_spill] sm:$0xff] %v4641_v3  ;;  %5258 = vst [vmem:[#allocation8_spill] sm:$0xff] %v4643_v6  ;;  %v4645_v7 = vpop.f32.mrb[54].mxu0  ;;  %v4647_v62 = vpop.f32.mrb[54].mxu1 }
 0x801   :  { %1381 = vst [vmem:[#allocation3 + $0x18] sm:$0xf0] %v1379_v60  ;;  %5259 = vst [vmem:[#allocation9_spill] sm:$0xff] %v4645_v7  ;;  %v4649_v5 = vpop.f32.mrb[55].mxu0  ;;  %v4651_v45 = vpop.f32.mrb[55].mxu1 }
 0x802   :  { %5260 = vst [vmem:[#allocation10_spill] sm:$0xff] %v4647_v62  ;;  %5261 = vst [vmem:[#allocation11_spill] sm:$0xff] %v4649_v5 }
 0x803   :  { %5262 = vst [vmem:[#allocation12_spill] sm:$0xff] %v4651_v45 }
 0x806   :  { %v4653_v63 = vpop.f32.mrb[56].mxu0  ;;  %v4655_v25 = vpop.f32.mrb[56].mxu1 }
 0x807   :  { %5263 = vst [vmem:[#allocation13_spill] sm:$0xff] %v4653_v63  ;;  %5264 = vst [vmem:[#allocation14_spill] sm:$0xff] %v4655_v25  ;;  %v4657_v57 = vpop.f32.mrb[57].mxu0  ;;  %v4659_v56 = vpop.f32.mrb[57].mxu1 }
 0x808   :  { %5265 = vst [vmem:[#allocation15_spill] sm:$0xff] %v4657_v57  ;;  %5266 = vst [vmem:[#allocation16_spill] sm:$0xff] %v4659_v56  ;;  %v1385_v1 = vld [vmem:[#allocation3 + $0x18] sm:$0xff]  ;;  %v4661_v46 = vpop.f32.mrb[58].mxu0  ;;  %v4663_v61 = vpop.f32.mrb[58].mxu1 }
 0x809   :  { %5267 = vst [vmem:[#allocation17_spill] sm:$0xff] %v4661_v46  ;;  %5268 = vst [vmem:[#allocation18_spill] sm:$0xff] %v4663_v61  ;;  %1663 = vmatmul.mubr.bf16.gmra.mrb[60].mxu0 %v1385_v1  ;;  %1736 = vmatmul.mubr.bf16.gmra.mrb[60].mxu1 %v1385_v1  ;;  %v4665_v44 = vpop.f32.mrb[59].mxu0  ;;  %v4667_v47 = vpop.f32.mrb[59].mxu1 }
 0x80a   :  { %5269 = vst [vmem:[#allocation19_spill] sm:$0xff] %v4665_v44  ;;  %5270 = vst [vmem:[#allocation20_spill] sm:$0xff] %v4667_v47  ;;  %2006 = vmatprep.mubr.bf16.mxu0 %v5233_v43  ;;  %2047 = vmatprep.mubr.bf16.mxu1 %v5233_v43  ;;  %v5277_v47 = vld [vmem:[#allocation4_spill] sm:$0xff] }
 0x80b   :  { %v5278_v44 = vsub.s32 0, %v5277_v47  ;;  %v5279_v46 = vsub.s32 2, %v5277_v47 }
 0x80d   :  { %v4724_v61 = vrot.slane %v1418_v27, %v5278_v44  ;;  %v4728_v56 = vrot.slane %v1418_v27, %v5279_v46 }
 0x80f   :  { %v1635_v44 = vadd.f32 %v4621_v28, %v4724_v61 }
 0x811   :  { %2007 = vmatmul.mubr.bf16.vlgmr.msra.gmra.mrb[64].mxu0 %v5233_v43  ;;  %2048 = vmatmul.mubr.bf16.vlgmr.msra.gmra.mrb[64].mxu1 %v5233_v43 }
 0x812   :  { %2084 = vmatpush1.bf16.msra.mxu0 %v4436_v49  ;;  %2125 = vmatpush1.bf16.msra.mxu1 %v4441_v48 }
 0x813   :  { %2085 = vmatprep.subr.bf16.mxu0 %v4449_v50  ;;  %2126 = vmatprep.subr.bf16.mxu1 %v4454_v10 }
 0x814   :  { %2115 = vmatprep.mubr.bf16.mxu0 %v5233_v43  ;;  %2156 = vmatprep.mubr.bf16.mxu1 %v5233_v43 }
 0x816   :  { %2086 = vmatpush1.bf16.msra.mxu0 %v4459_v11  ;;  %2127 = vmatpush1.bf16.msra.mxu1 %v4464_v12 }
 0x817   :  { %2087 = vmatprep.subr.bf16.mxu0 %v4473_v13  ;;  %2128 = vmatprep.subr.bf16.mxu1 %v4478_v29 }
 0x81a   :  { %2088 = vmatpush1.bf16.msra.mxu0 %v4483_v30  ;;  %2129 = vmatpush1.bf16.msra.mxu1 %v4488_v31 }
 0x81b   :  { %2089 = vmatprep.subr.bf16.mxu0 %v4497_v32  ;;  %2130 = vmatprep.subr.bf16.mxu1 %v4502_v33 }
 0x81e   :  { %2090 = vmatpush1.bf16.msra.mxu0 %v4507_v35  ;;  %2131 = vmatpush1.bf16.msra.mxu1 %v4512_v15 }
 0x81f   :  { %2091 = vmatprep.subr.bf16.mxu0 %v4521_v36  ;;  %2132 = vmatprep.subr.bf16.mxu1 %v4526_v16 }
 0x822   :  { %2092 = vmatpush1.bf16.msra.mxu0 %v4531_v37  ;;  %2133 = vmatpush1.bf16.msra.mxu1 %v4536_v17 }
 0x823   :  { %2093 = vmatprep.subr.bf16.mxu0 %v4543_v38  ;;  %2134 = vmatprep.subr.bf16.mxu1 %v4548_v18 }
 0x826   :  { %2094 = vmatpush1.bf16.msra.mxu0 %v4557_v39  ;;  %2135 = vmatpush1.bf16.msra.mxu1 %v4562_v40 }
 0x827   :  { %2095 = vmatprep.subr.bf16.mxu0 %v4569_v20  ;;  %2136 = vmatprep.subr.bf16.mxu1 %v4574_v8 }
 0x82a   :  { %2096 = vmatpush1.bf16.msra.mxu0 %v4579_v9  ;;  %2137 = vmatpush1.bf16.msra.mxu1 %v4584_v21 }
 0x82b   :  { %2097 = vmatprep.subr.bf16.mxu0 %v4591_v22  ;;  %2138 = vmatprep.subr.bf16.mxu1 %v4596_v23 }
 0x82e   :  { %2098 = vmatpush1.bf16.msra.mxu0 %v4603_v24  ;;  %2139 = vmatpush1.bf16.msra.mxu1 %v4608_v26 }
 0x82f   :  { %2192 = vmatprep.subr.bf16.mxu0 %v4425_v14  ;;  %2233 = vmatprep.subr.bf16.mxu1 %v4430_v41 }
 0x8dc   :  { %v4710_v53 = vpop.f32.mrb[60].mxu0  ;;  %v4712_v42 = vpop.f32.mrb[60].mxu1 }
 0x8dd   :  { %5271 = vst [vmem:[#allocation21_spill] sm:$0xff] %v4710_v53  ;;  %5272 = vst [vmem:[#allocation22_spill] sm:$0xff] %v4712_v42  ;;  %v4714_v58 = vpop.f32.mrb[61].mxu0  ;;  %v4716_v34 = vpop.f32.mrb[61].mxu1 }
 0x8de   :  { %5273 = vst [vmem:[#allocation23_spill] sm:$0xff] %v4714_v58  ;;  %5274 = vst [vmem:[#allocation24_spill] sm:$0xff] %v4716_v34  ;;  %v4718_v60 = vpop.f32.mrb[62].mxu0  ;;  %v4720_v1 = vpop.f32.mrb[62].mxu1  ;;  %v5282_v58 = vsub.s32 1, %v5277_v47 }
 0x8df   :  { %5275 = vst [vmem:[#allocation25_spill] sm:$0xff] %v4718_v60  ;;  %5276 = vst [vmem:[#allocation26_spill] sm:$0xff] %v4720_v1  ;;  %v4730_v57 = vpop.f32.mrb[63].mxu0  ;;  %v4732_v53 = vpop.f32.mrb[63].mxu1  ;;  %v5283_v60 = vsub.s32 3, %v5277_v47  ;;  %v1708_v1 = vadd.f32 %v4623_v0, %v4728_v56 }
 0x8e0   :  { %5280 = vst [vmem:[#allocation4_spill] sm:$0xff] %v4730_v57  ;;  %5281 = vst [vmem:[#allocation27_spill] sm:$0xff] %v4732_v53  ;;  %v4736_v42 = vrot.slane %v1418_v27, %v5282_v58 }
 0x8e1   :  { %v4740_v34 = vrot.slane %v1418_v27, %v5283_v60 }
 0x8e2   :  { %v1637_v46 = vadd.f32 %v4625_v52, %v4736_v42 }
 0x8e3   :  { %v1710_v53 = vadd.f32 %v4627_v51, %v4740_v34 }
 0x8e4   :  { %v2008_v57 = vpop.f32.mrb[64].mxu0  ;;  %v2049_v25 = vpop.f32.mrb[64].mxu1 }
 0x8e5   :  { %v2056_v58 = vadd.f32 %v2008_v57, %v1635_v44  ;;  %v2058_v63 = vadd.f32 %v2049_v25, %v1708_v1  ;;  %v2010_v45 = vpop.f32.mrb[65].mxu0  ;;  %v2051_v47 = vpop.f32.mrb[65].mxu1 }
 0x8e6   :  { %v2057_v27 = vadd.f32 %v2010_v45, %v1637_v46  ;;  %v2059_v60 = vadd.f32 %v2051_v47, %v1710_v53  ;;  %v2012_v5 = vpop.f32.mrb[66].mxu0  ;;  %v2053_v62 = vpop.f32.mrb[66].mxu1 }
 0x8e7   :  { %v2060_v28 = vmul.f32 0.5, %v2056_v58  ;;  %v2013_v7 = vpop.f32.mrb[67].mxu0  ;;  %v2054_v6 = vpop.f32.mrb[67].mxu1  ;;  %v1714_v58 = vadd.f32 %v4635_v19, %v4740_v34 }
 0x8e8   :  { %v2064_v0 = vmul.f32 0.5, %v2057_v27  ;;  %v2069_v52 = vmul.f32 0.5, %v2059_v60 }
 0x8e9   :  { %3366 = vtanh.f32 %v2060_v28 }
 0x8ea   :  { %3368 = vtanh.f32 %v2064_v0 }
 0x8eb   :  { %3370 = vtanh.f32 %v2058_v63 }
 0x8ec   :  { %3372 = vtanh.f32 %v2069_v52 }
 0x8f3   :  { %v3367_v3 = vpop.eup %3366 }
 0x8f4   :  { %v3369_v51 = vpop.eup %3368  ;;  %v2062_v4 = vadd.f32 1.0, %v3367_v3  ;;  %v1641_v3 = vadd.f32 %v4633_v2, %v4736_v42 }
 0x8f5   :  { %v2066_v59 = vadd.f32 1.0, %v3369_v51  ;;  %v3371_v57 = vpop.eup %3370 }
 0x8f6   :  { %v2063_v25 = vmul.f32 0.5, %v2062_v4  ;;  %v3373_v6 = vpop.eup %3372  ;;  %v1712_v4 = vadd.f32 %v4631_v55, %v4728_v56 }
 0x8f7   :  { %v2067_v1 = vmul.f32 0.5, %v2066_v59  ;;  %v2071_v7 = vadd.f32 1.0, %v3373_v6  ;;  %v1639_v59 = vadd.f32 %v4629_v54, %v4724_v61 }
 0x8f8   :  { %v2074_v45 = vmul.f32 %v3371_v57, %v2063_v25 }
 0x8f9   :  { %v2073_v53 = vmul.f32 0.0, %v2067_v1  ;;  %v2072_v62 = vmul.f32 0.5, %v2071_v7 }
 0x8fb   :  { %v4750_v5 = vadd.f32 %v2074_v45, %v2073_v53 }
 0x8fd   :  { %3374 = vtanh.f32 %v4750_v5 }
 0x907   :  { %v3375_v44 = vpop.eup %3374 }
 0x908   :  { %v2077_v63 = vmul.f32 %v3375_v44, %v2072_v62 }
 0x90a   :  { %v2082_v46 = vpack.c.bf16 %v2077_v63, %v2077_v63 }
 0x90c   :  { %2116 = vmatmul.mubr.bf16.vlgmr.msra.gmra.mrb[68].mxu0 %v2082_v46  ;;  %2157 = vmatmul.mubr.bf16.vlgmr.msra.gmra.mrb[68].mxu1 %v2082_v46 }
 0x90d   :  { %2193 = vmatpush1.bf16.msra.mxu0 %v4436_v49  ;;  %2234 = vmatpush1.bf16.msra.mxu1 %v4441_v48 }
 0x90e   :  { %2194 = vmatprep.subr.bf16.mxu0 %v4449_v50  ;;  %2235 = vmatprep.subr.bf16.mxu1 %v4454_v10 }
 0x90f   :  { %2224 = vmatprep.mubr.bf16.mxu0 %v5233_v43  ;;  %2265 = vmatprep.mubr.bf16.mxu1 %v5233_v43 }
 0x911   :  { %2195 = vmatpush1.bf16.msra.mxu0 %v4459_v11  ;;  %2236 = vmatpush1.bf16.msra.mxu1 %v4464_v12 }
 0x912   :  { %2196 = vmatprep.subr.bf16.mxu0 %v4473_v13  ;;  %2237 = vmatprep.subr.bf16.mxu1 %v4478_v29 }
 0x915   :  { %2197 = vmatpush1.bf16.msra.mxu0 %v4483_v30  ;;  %2238 = vmatpush1.bf16.msra.mxu1 %v4488_v31 }
 0x916   :  { %2198 = vmatprep.subr.bf16.mxu0 %v4497_v32  ;;  %2239 = vmatprep.subr.bf16.mxu1 %v4502_v33 }
 0x919   :  { %2199 = vmatpush1.bf16.msra.mxu0 %v4507_v35  ;;  %2240 = vmatpush1.bf16.msra.mxu1 %v4512_v15 }
 0x91a   :  { %2200 = vmatprep.subr.bf16.mxu0 %v4521_v36  ;;  %2241 = vmatprep.subr.bf16.mxu1 %v4526_v16 }
 0x91d   :  { %2201 = vmatpush1.bf16.msra.mxu0 %v4531_v37  ;;  %2242 = vmatpush1.bf16.msra.mxu1 %v4536_v17 }
 0x91e   :  { %2202 = vmatprep.subr.bf16.mxu0 %v4543_v38  ;;  %2243 = vmatprep.subr.bf16.mxu1 %v4548_v18 }
 0x921   :  { %2203 = vmatpush1.bf16.msra.mxu0 %v4557_v39  ;;  %2244 = vmatpush1.bf16.msra.mxu1 %v4562_v40 }
 0x922   :  { %2204 = vmatprep.subr.bf16.mxu0 %v4569_v20  ;;  %2245 = vmatprep.subr.bf16.mxu1 %v4574_v8 }
 0x925   :  { %2205 = vmatpush1.bf16.msra.mxu0 %v4579_v9  ;;  %2246 = vmatpush1.bf16.msra.mxu1 %v4584_v21 }
 0x926   :  { %2206 = vmatprep.subr.bf16.mxu0 %v4591_v22  ;;  %2247 = vmatprep.subr.bf16.mxu1 %v4596_v23 }
 0x929   :  { %2207 = vmatpush1.bf16.msra.mxu0 %v4603_v24  ;;  %2248 = vmatpush1.bf16.msra.mxu1 %v4608_v26 }
 0x92a   :  { %2301 = vmatprep.subr.bf16.mxu0 %v4425_v14  ;;  %2342 = vmatprep.subr.bf16.mxu1 %v4430_v41 }
 0x9df   :  { %v2117_v47 = vpop.f32.mrb[68].mxu0  ;;  %v2158_v27 = vpop.f32.mrb[68].mxu1 }
 0x9e0   :  { %v2165_v60 = vadd.f32 %v2117_v47, %v1639_v59  ;;  %v2167_v28 = vadd.f32 %v2158_v27, %v1712_v4  ;;  %v2119_v0 = vpop.f32.mrb[69].mxu0  ;;  %v2160_v52 = vpop.f32.mrb[69].mxu1 }
 0x9e1   :  { %v2166_v51 = vadd.f32 %v2119_v0, %v1641_v3  ;;  %v2168_v25 = vadd.f32 %v2160_v52, %v1714_v58  ;;  %v2121_v57 = vpop.f32.mrb[70].mxu0  ;;  %v2162_v1 = vpop.f32.mrb[70].mxu1 }
 0x9e2   :  { %v2169_v54 = vmul.f32 0.5, %v2165_v60  ;;  %v2122_v45 = vpop.f32.mrb[71].mxu0  ;;  %v2163_v53 = vpop.f32.mrb[71].mxu1  ;;  %v5286_v57 = vld [vmem:[#allocation7_spill] sm:$0xff] }
 0x9e3   :  { %v2173_v55 = vmul.f32 0.5, %v2166_v51  ;;  %v2178_v2 = vmul.f32 0.5, %v2168_v25  ;;  %v5285_v51 = vld [vmem:[#allocation6_spill] sm:$0xff]  ;;  %v1647_v1 = vadd.f32 %v5286_v57, %v4736_v42 }
 0x9e4   :  { %3376 = vtanh.f32 %v2169_v54  ;;  %v1718_v25 = vadd.f32 %v5285_v51, %v4728_v56  ;;  %v5287_v54 = vld [vmem:[#allocation8_spill] sm:$0xff] }
 0x9e5   :  { %3378 = vtanh.f32 %v2173_v55  ;;  %v1720_v45 = vadd.f32 %v5287_v54, %v4740_v34 }
 0x9e6   :  { %3380 = vtanh.f32 %v2167_v28 }
 0x9e7   :  { %3382 = vtanh.f32 %v2178_v2 }
 0x9ee   :  { %v3377_v6 = vpop.eup %3376 }
 0x9ef   :  { %v3379_v19 = vpop.eup %3378  ;;  %v2171_v7 = vadd.f32 1.0, %v3377_v6 }
 0x9f0   :  { %v2175_v62 = vadd.f32 1.0, %v3379_v19  ;;  %v3381_v63 = vpop.eup %3380 }
 0x9f1   :  { %v2172_v44 = vmul.f32 0.5, %v2171_v7  ;;  %v3383_v58 = vpop.eup %3382 }
 0x9f2   :  { %v2176_v46 = vmul.f32 0.5, %v2175_v62  ;;  %v2180_v47 = vadd.f32 1.0, %v3383_v58 }
 0x9f3   :  { %v2183_v59 = vmul.f32 %v3381_v63, %v2172_v44 }
 0x9f4   :  { %v2182_v4 = vmul.f32 %v2176_v46, %v4750_v5  ;;  %v2181_v27 = vmul.f32 0.5, %v2180_v47  ;;  %v5284_v5 = vld [vmem:[#allocation5_spill] sm:$0xff] }
 0x9f5   :  { %v1645_v52 = vadd.f32 %v5284_v5, %v4724_v61 }
 0x9f6   :  { %v4796_v3 = vadd.f32 %v2183_v59, %v2182_v4 }
 0x9f8   :  { %3384 = vtanh.f32 %v4796_v3 }
 0xa02   :  { %v3385_v60 = vpop.eup %3384 }
 0xa03   :  { %v2186_v28 = vmul.f32 %v3385_v60, %v2181_v27 }
 0xa05   :  { %v2191_v0 = vpack.c.bf16 %v2186_v28, %v2186_v28 }
 0xa07   :  { %2225 = vmatmul.mubr.bf16.vlgmr.msra.gmra.mrb[72].mxu0 %v2191_v0  ;;  %2266 = vmatmul.mubr.bf16.vlgmr.msra.gmra.mrb[72].mxu1 %v2191_v0 }
 0xa08   :  { %2302 = vmatpush1.bf16.msra.mxu0 %v4436_v49  ;;  %2343 = vmatpush1.bf16.msra.mxu1 %v4441_v48 }
 0xa09   :  { %2303 = vmatprep.subr.bf16.mxu0 %v4449_v50  ;;  %2344 = vmatprep.subr.bf16.mxu1 %v4454_v10 }
 0xa0a   :  { %2333 = vmatprep.mubr.bf16.mxu0 %v5233_v43  ;;  %2374 = vmatprep.mubr.bf16.mxu1 %v5233_v43 }
 0xa0c   :  { %2304 = vmatpush1.bf16.msra.mxu0 %v4459_v11  ;;  %2345 = vmatpush1.bf16.msra.mxu1 %v4464_v12 }
 0xa0d   :  { %2305 = vmatprep.subr.bf16.mxu0 %v4473_v13  ;;  %2346 = vmatprep.subr.bf16.mxu1 %v4478_v29 }
 0xa10   :  { %2306 = vmatpush1.bf16.msra.mxu0 %v4483_v30  ;;  %2347 = vmatpush1.bf16.msra.mxu1 %v4488_v31 }
 0xa11   :  { %2307 = vmatprep.subr.bf16.mxu0 %v4497_v32  ;;  %2348 = vmatprep.subr.bf16.mxu1 %v4502_v33 }
 0xa14   :  { %2308 = vmatpush1.bf16.msra.mxu0 %v4507_v35  ;;  %2349 = vmatpush1.bf16.msra.mxu1 %v4512_v15 }
 0xa15   :  { %2309 = vmatprep.subr.bf16.mxu0 %v4521_v36  ;;  %2350 = vmatprep.subr.bf16.mxu1 %v4526_v16 }
 0xa18   :  { %2310 = vmatpush1.bf16.msra.mxu0 %v4531_v37  ;;  %2351 = vmatpush1.bf16.msra.mxu1 %v4536_v17 }
 0xa19   :  { %2311 = vmatprep.subr.bf16.mxu0 %v4543_v38  ;;  %2352 = vmatprep.subr.bf16.mxu1 %v4548_v18 }
 0xa1c   :  { %2312 = vmatpush1.bf16.msra.mxu0 %v4557_v39  ;;  %2353 = vmatpush1.bf16.msra.mxu1 %v4562_v40 }
 0xa1d   :  { %2313 = vmatprep.subr.bf16.mxu0 %v4569_v20  ;;  %2354 = vmatprep.subr.bf16.mxu1 %v4574_v8 }
 0xa20   :  { %2314 = vmatpush1.bf16.msra.mxu0 %v4579_v9  ;;  %2355 = vmatpush1.bf16.msra.mxu1 %v4584_v21 }
 0xa21   :  { %2315 = vmatprep.subr.bf16.mxu0 %v4591_v22  ;;  %2356 = vmatprep.subr.bf16.mxu1 %v4596_v23 }
 0xa24   :  { %2316 = vmatpush1.bf16.msra.mxu0 %v4603_v24  ;;  %2357 = vmatpush1.bf16.msra.mxu1 %v4608_v26 }
 0xa25   :  { %2410 = vmatprep.subr.bf16.mxu0 %v4425_v14  ;;  %2451 = vmatprep.subr.bf16.mxu1 %v4430_v41 }
 0xada   :  { %v2226_v53 = vpop.f32.mrb[72].mxu0  ;;  %v2267_v55 = vpop.f32.mrb[72].mxu1 }
 0xadb   :  { %v2274_v2 = vadd.f32 %v2226_v53, %v1645_v52  ;;  %v2276_v6 = vadd.f32 %v2267_v55, %v1718_v25  ;;  %v2228_v19 = vpop.f32.mrb[73].mxu0  ;;  %v2269_v7 = vpop.f32.mrb[73].mxu1 }
 0xadc   :  { %v2275_v62 = vadd.f32 %v2228_v19, %v1647_v1  ;;  %v2277_v44 = vadd.f32 %v2269_v7, %v1720_v45  ;;  %v2230_v63 = vpop.f32.mrb[74].mxu0  ;;  %v2271_v46 = vpop.f32.mrb[74].mxu1 }
 0xadd   :  { %v2278_v59 = vmul.f32 0.5, %v2274_v2  ;;  %v2231_v4 = vpop.f32.mrb[75].mxu0  ;;  %v2272_v58 = vpop.f32.mrb[75].mxu1  ;;  %v5290_v63 = vld [vmem:[#allocation11_spill] sm:$0xff] }
 0xade   :  { %v2282_v47 = vmul.f32 0.5, %v2275_v62  ;;  %v2287_v27 = vmul.f32 0.5, %v2277_v44  ;;  %v5289_v62 = vld [vmem:[#allocation10_spill] sm:$0xff]  ;;  %v1651_v46 = vadd.f32 %v5290_v63, %v4736_v42 }
 0xadf   :  { %3386 = vtanh.f32 %v2278_v59  ;;  %v1722_v44 = vadd.f32 %v5289_v62, %v4728_v56  ;;  %v5291_v59 = vld [vmem:[#allocation12_spill] sm:$0xff] }
 0xae0   :  { %3388 = vtanh.f32 %v2282_v47  ;;  %v1724_v4 = vadd.f32 %v5291_v59, %v4740_v34 }
 0xae1   :  { %3390 = vtanh.f32 %v2276_v6 }
 0xae2   :  { %3392 = vtanh.f32 %v2287_v27 }
 0xae9   :  { %v3387_v60 = vpop.eup %3386 }
 0xaea   :  { %v3389_v28 = vpop.eup %3388  ;;  %v2280_v0 = vadd.f32 1.0, %v3387_v60 }
 0xaeb   :  { %v2284_v5 = vadd.f32 1.0, %v3389_v28  ;;  %v3391_v51 = vpop.eup %3390 }
 0xaec   :  { %v2281_v52 = vmul.f32 0.5, %v2280_v0  ;;  %v3393_v45 = vpop.eup %3392 }
 0xaed   :  { %v2285_v25 = vmul.f32 0.5, %v2284_v5  ;;  %v2289_v53 = vadd.f32 1.0, %v3393_v45 }
 0xaee   :  { %v2292_v57 = vmul.f32 %v3391_v51, %v2281_v52 }
 0xaef   :  { %v2291_v1 = vmul.f32 %v2285_v25, %v4796_v3  ;;  %v2290_v55 = vmul.f32 0.5, %v2289_v53  ;;  %v5288_v3 = vld [vmem:[#allocation9_spill] sm:$0xff] }
 0xaf0   :  { %v1649_v7 = vadd.f32 %v5288_v3, %v4724_v61 }
 0xaf1   :  { %v4842_v54 = vadd.f32 %v2292_v57, %v2291_v1 }
 0xaf3   :  { %3394 = vtanh.f32 %v4842_v54 }
 0xafd   :  { %v3395_v2 = vpop.eup %3394 }
 0xafe   :  { %v2295_v6 = vmul.f32 %v3395_v2, %v2290_v55 }
 0xb00   :  { %v2300_v19 = vpack.c.bf16 %v2295_v6, %v2295_v6 }
 0xb02   :  { %2334 = vmatmul.mubr.bf16.vlgmr.msra.gmra.mrb[76].mxu0 %v2300_v19  ;;  %2375 = vmatmul.mubr.bf16.vlgmr.msra.gmra.mrb[76].mxu1 %v2300_v19 }
 0xb03   :  { %2411 = vmatpush1.bf16.msra.mxu0 %v4436_v49  ;;  %2452 = vmatpush1.bf16.msra.mxu1 %v4441_v48 }
 0xb04   :  { %2412 = vmatprep.subr.bf16.mxu0 %v4449_v50  ;;  %2453 = vmatprep.subr.bf16.mxu1 %v4454_v10 }
 0xb05   :  { %2442 = vmatprep.mubr.bf16.mxu0 %v5233_v43  ;;  %2483 = vmatprep.mubr.bf16.mxu1 %v5233_v43 }
 0xb07   :  { %2413 = vmatpush1.bf16.msra.mxu0 %v4459_v11  ;;  %2454 = vmatpush1.bf16.msra.mxu1 %v4464_v12 }
 0xb08   :  { %2414 = vmatprep.subr.bf16.mxu0 %v4473_v13  ;;  %2455 = vmatprep.subr.bf16.mxu1 %v4478_v29 }
 0xb0b   :  { %2415 = vmatpush1.bf16.msra.mxu0 %v4483_v30  ;;  %2456 = vmatpush1.bf16.msra.mxu1 %v4488_v31 }
 0xb0c   :  { %2416 = vmatprep.subr.bf16.mxu0 %v4497_v32  ;;  %2457 = vmatprep.subr.bf16.mxu1 %v4502_v33 }
 0xb0f   :  { %2417 = vmatpush1.bf16.msra.mxu0 %v4507_v35  ;;  %2458 = vmatpush1.bf16.msra.mxu1 %v4512_v15 }
 0xb10   :  { %2418 = vmatprep.subr.bf16.mxu0 %v4521_v36  ;;  %2459 = vmatprep.subr.bf16.mxu1 %v4526_v16 }
 0xb13   :  { %2419 = vmatpush1.bf16.msra.mxu0 %v4531_v37  ;;  %2460 = vmatpush1.bf16.msra.mxu1 %v4536_v17 }
 0xb14   :  { %2420 = vmatprep.subr.bf16.mxu0 %v4543_v38  ;;  %2461 = vmatprep.subr.bf16.mxu1 %v4548_v18 }
 0xb17   :  { %2421 = vmatpush1.bf16.msra.mxu0 %v4557_v39  ;;  %2462 = vmatpush1.bf16.msra.mxu1 %v4562_v40 }
 0xb18   :  { %2422 = vmatprep.subr.bf16.mxu0 %v4569_v20  ;;  %2463 = vmatprep.subr.bf16.mxu1 %v4574_v8 }
 0xb1b   :  { %2423 = vmatpush1.bf16.msra.mxu0 %v4579_v9  ;;  %2464 = vmatpush1.bf16.msra.mxu1 %v4584_v21 }
 0xb1c   :  { %2424 = vmatprep.subr.bf16.mxu0 %v4591_v22  ;;  %2465 = vmatprep.subr.bf16.mxu1 %v4596_v23 }
 0xb1f   :  { %2425 = vmatpush1.bf16.msra.mxu0 %v4603_v24  ;;  %2466 = vmatpush1.bf16.msra.mxu1 %v4608_v26 }
 0xb20   :  { %2519 = vmatprep.subr.bf16.mxu0 %v4425_v14  ;;  %2560 = vmatprep.subr.bf16.mxu1 %v4430_v41 }
 0xbd5   :  { %v2335_v58 = vpop.f32.mrb[76].mxu0  ;;  %v2376_v47 = vpop.f32.mrb[76].mxu1 }
 0xbd6   :  { %v2383_v27 = vadd.f32 %v2335_v58, %v1649_v7  ;;  %v2385_v60 = vadd.f32 %v2376_v47, %v1722_v44  ;;  %v2337_v28 = vpop.f32.mrb[77].mxu0  ;;  %v2378_v14 = vpop.f32.mrb[77].mxu1 }
 0xbd7   :  { %v2384_v0 = vadd.f32 %v2337_v28, %v1651_v46  ;;  %v2386_v41 = vadd.f32 %v2378_v14, %v1724_v4  ;;  %v2339_v5 = vpop.f32.mrb[78].mxu0  ;;  %v2380_v52 = vpop.f32.mrb[78].mxu1 }
 0xbd8   :  { %v2387_v51 = vmul.f32 0.5, %v2383_v27  ;;  %v2340_v25 = vpop.f32.mrb[79].mxu0  ;;  %v2381_v57 = vpop.f32.mrb[79].mxu1 }
 0xbd9   :  { %v2391_v1 = vmul.f32 0.5, %v2384_v0  ;;  %v2396_v45 = vmul.f32 0.5, %v2386_v41 }
 0xbda   :  { %3396 = vtanh.f32 %v2387_v51 }
 0xbdb   :  { %3398 = vtanh.f32 %v2391_v1 }
 0xbdc   :  { %3400 = vtanh.f32 %v2385_v60 }
 0xbdd   :  { %3402 = vtanh.f32 %v2396_v45 }
 0xbe4   :  { %v3397_v53 = vpop.eup %3396 }
 0xbe5   :  { %v3399_v55 = vpop.eup %3398  ;;  %v2389_v2 = vadd.f32 1.0, %v3397_v53 }
 0xbe6   :  { %v2393_v6 = vadd.f32 1.0, %v3399_v55  ;;  %v3401_v3 = vpop.eup %3400 }
 0xbe7   :  { %v2390_v19 = vmul.f32 0.5, %v2389_v2  ;;  %v3403_v46 = vpop.eup %3402 }
 0xbe8   :  { %v2394_v7 = vmul.f32 0.5, %v2393_v6  ;;  %v2398_v59 = vadd.f32 1.0, %v3403_v46 }
 0xbe9   :  { %v2401_v62 = vmul.f32 %v3401_v3, %v2390_v19 }
 0xbea   :  { %v2400_v44 = vmul.f32 %v2394_v7, %v4842_v54  ;;  %v2399_v4 = vmul.f32 0.5, %v2398_v59  ;;  %v4950_v59 = vld [vmem:[%s5198_s5] ss:$16 sps:$4 sm:$0xff]  }
 0xbec   :  { %v4888_v63 = vadd.f32 %v2401_v62, %v2400_v44 }
 0xbee   :  { %3404 = vtanh.f32 %v4888_v63 }
 0xbf8   :  { %v3405_v58 = vpop.eup %3404 }
 0xbf9   :  { %v2404_v47 = vmul.f32 %v3405_v58, %v2399_v4  ;;  %v4962_v4 = vld [vmem:[%s5198_s5 + $0x24] ss:$16 sps:$4 sm:$0xff]   ;;  %v4968_v58 = vld [vmem:[%s5198_s5 + $0x2c] ss:$16 sps:$4 sm:$0xff]  }
 0xbfb   :  { %v2409_v27 = vpack.c.bf16 %v2404_v47, %v2404_v47  ;;  %v4976_v47 = vld [vmem:[%s5198_s5 + $0x20] ss:$16 sps:$4 sm:$0xff]  }
 0xbfd   :  { %2443 = vmatmul.mubr.bf16.vlgmr.msra.gmra.mrb[80].mxu0 %v2409_v27  ;;  %2484 = vmatmul.mubr.bf16.vlgmr.msra.gmra.mrb[80].mxu1 %v2409_v27  ;;  %v4982_v27 = vld [vmem:[%s5198_s5 + $0x28] ss:$16 sps:$4 sm:$0xff]  }
 0xbfe   :  { %2520 = vmatpush1.bf16.msra.mxu0 %v4436_v49  ;;  %2561 = vmatpush1.bf16.msra.mxu1 %v4441_v48  ;;  %v4926_v49 = vld [vmem:[%s5198_s5 + $0x4] ss:$16 sps:$4 sm:$0xff]   ;;  %v4932_v48 = vld [vmem:[%s5198_s5 + $0xc] ss:$16 sps:$4 sm:$0xff]  }
 0xbff   :  { %2521 = vmatprep.subr.bf16.mxu0 %v4449_v50  ;;  %2562 = vmatprep.subr.bf16.mxu1 %v4454_v10  ;;  %v5292_v50 = vld [vmem:[#allocation13_spill] sm:$0xff] }
 0xc00   :  { %2551 = vmatprep.mubr.bf16.mxu0 %v5233_v43  ;;  %2592 = vmatprep.mubr.bf16.mxu1 %v5233_v43  ;;  %v1655_v10 = vadd.f32 %v5292_v50, %v4724_v61  ;;  %v4988_v50 = vld [vmem:[%s5198_s5 + $0x44] ss:$16 sps:$4 sm:$0xff]  }
 0xc02   :  { %2522 = vmatpush1.bf16.msra.mxu0 %v4459_v11  ;;  %2563 = vmatpush1.bf16.msra.mxu1 %v4464_v12  ;;  %v5293_v11 = vld [vmem:[#allocation14_spill] sm:$0xff] }
 0xc03   :  { %2523 = vmatprep.subr.bf16.mxu0 %v4473_v13  ;;  %2564 = vmatprep.subr.bf16.mxu1 %v4478_v29  ;;  %v1728_v12 = vadd.f32 %v5293_v11, %v4728_v56  ;;  %v5294_v13 = vld [vmem:[#allocation15_spill] sm:$0xff]  ;;  %v5000_v11 = vld [vmem:[%s5198_s5 + $0x40] ss:$16 sps:$4 sm:$0xff]  }
 0xc04   :  { %v1657_v29 = vadd.f32 %v5294_v13, %v4736_v42  ;;  %v5012_v13 = vld [vmem:[%s5198_s5 + $0x64] ss:$16 sps:$4 sm:$0xff]  }
 0xc06   :  { %2524 = vmatpush1.bf16.msra.mxu0 %v4483_v30  ;;  %2565 = vmatpush1.bf16.msra.mxu1 %v4488_v31  ;;  %v5295_v30 = vld [vmem:[#allocation16_spill] sm:$0xff] }
 0xc07   :  { %2525 = vmatprep.subr.bf16.mxu0 %v4497_v32  ;;  %2566 = vmatprep.subr.bf16.mxu1 %v4502_v33  ;;  %v1730_v31 = vadd.f32 %v5295_v30, %v4740_v34  ;;  %v5024_v30 = vld [vmem:[%s5198_s5 + $0x60] ss:$16 sps:$4 sm:$0xff]  }
 0xc0a   :  { %2526 = vmatpush1.bf16.msra.mxu0 %v4507_v35  ;;  %2567 = vmatpush1.bf16.msra.mxu1 %v4512_v15 }
 0xc0b   :  { %2527 = vmatprep.subr.bf16.mxu0 %v4521_v36  ;;  %2568 = vmatprep.subr.bf16.mxu1 %v4526_v16 }
 0xc0e   :  { %2528 = vmatpush1.bf16.msra.mxu0 %v4531_v37  ;;  %2569 = vmatpush1.bf16.msra.mxu1 %v4536_v17 }
 0xc0f   :  { %2529 = vmatprep.subr.bf16.mxu0 %v4543_v38  ;;  %2570 = vmatprep.subr.bf16.mxu1 %v4548_v18 }
 0xc12   :  { %2530 = vmatpush1.bf16.msra.mxu0 %v4557_v39  ;;  %2571 = vmatpush1.bf16.msra.mxu1 %v4562_v40 }
 0xc13   :  { %2531 = vmatprep.subr.bf16.mxu0 %v4569_v20  ;;  %2572 = vmatprep.subr.bf16.mxu1 %v4574_v8 }
 0xc16   :  { %2532 = vmatpush1.bf16.msra.mxu0 %v4579_v9  ;;  %2573 = vmatpush1.bf16.msra.mxu1 %v4584_v21 }
 0xc17   :  { %2533 = vmatprep.subr.bf16.mxu0 %v4591_v22  ;;  %2574 = vmatprep.subr.bf16.mxu1 %v4596_v23 }
 0xc1a   :  { %2534 = vmatpush1.bf16.msra.mxu0 %v4603_v24  ;;  %2575 = vmatpush1.bf16.msra.mxu1 %v4608_v26 }
 0xc1b   :  { %2628 = vmatprep.subr.bf16.mxu0 %v4926_v49  ;;  %2669 = vmatprep.subr.bf16.mxu1 %v4932_v48 }
 0xcd0   :  { %v2444_v32 = vpop.f32.mrb[80].mxu0  ;;  %v2485_v33 = vpop.f32.mrb[80].mxu1 }
 0xcd1   :  { %v2492_v35 = vadd.f32 %v2444_v32, %v1655_v10  ;;  %v2494_v15 = vadd.f32 %v2485_v33, %v1728_v12  ;;  %v2446_v36 = vpop.f32.mrb[81].mxu0  ;;  %v2487_v16 = vpop.f32.mrb[81].mxu1  ;;  %v4994_v10 = vld [vmem:[%s5198_s5 + $0x4c] ss:$16 sps:$4 sm:$0xff]   ;;  %v5006_v12 = vld [vmem:[%s5198_s5 + $0x48] ss:$16 sps:$4 sm:$0xff]  }
 0xcd2   :  { %v2493_v37 = vadd.f32 %v2446_v36, %v1657_v29  ;;  %v2495_v17 = vadd.f32 %v2487_v16, %v1730_v31  ;;  %v2448_v54 = vpop.f32.mrb[82].mxu0  ;;  %v2489_v60 = vpop.f32.mrb[82].mxu1  ;;  %v5018_v29 = vld [vmem:[%s5198_s5 + $0x6c] ss:$16 sps:$4 sm:$0xff]   ;;  %v5030_v31 = vld [vmem:[%s5198_s5 + $0x68] ss:$16 sps:$4 sm:$0xff]  }
 0xcd3   :  { %v2496_v28 = vmul.f32 0.5, %v2492_v35  ;;  %v2449_v14 = vpop.f32.mrb[83].mxu0  ;;  %v2490_v0 = vpop.f32.mrb[83].mxu1  ;;  %v5036_v32 = vld [vmem:[%s5198_s5 + $0x84] ss:$16 sps:$4 sm:$0xff]  }
 0xcd4   :  { %v2500_v41 = vmul.f32 0.5, %v2493_v37  ;;  %v2505_v5 = vmul.f32 0.5, %v2495_v17  ;;  %v5042_v33 = vld [vmem:[%s5198_s5 + $0x8c] ss:$16 sps:$4 sm:$0xff]   ;;  %v5048_v35 = vld [vmem:[%s5198_s5 + $0x80] ss:$16 sps:$4 sm:$0xff]  }
 0xcd5   :  { %3406 = vtanh.f32 %v2496_v28 }
 0xcd6   :  { %3408 = vtanh.f32 %v2500_v41 }
 0xcd7   :  { %3410 = vtanh.f32 %v2494_v15  ;;  %v5054_v15 = vld [vmem:[%s5198_s5 + $0x88] ss:$16 sps:$4 sm:$0xff]  }
 0xcd8   :  { %3412 = vtanh.f32 %v2505_v5 }
 0xcdf   :  { %v3407_v52 = vpop.eup %3406 }
 0xce0   :  { %v3409_v51 = vpop.eup %3408  ;;  %v2498_v25 = vadd.f32 1.0, %v3407_v52 }
 0xce1   :  { %v2502_v57 = vadd.f32 1.0, %v3409_v51  ;;  %v3411_v45 = vpop.eup %3410 }
 0xce2   :  { %v2499_v1 = vmul.f32 0.5, %v2498_v25  ;;  %v3413_v19 = vpop.eup %3412 }
 0xce3   :  { %v2503_v53 = vmul.f32 0.5, %v2502_v57  ;;  %v2507_v3 = vadd.f32 1.0, %v3413_v19 }
 0xce4   :  { %v2510_v55 = vmul.f32 %v3411_v45, %v2499_v1 }
 0xce5   :  { %v2509_v2 = vmul.f32 %v2503_v53, %v4888_v63  ;;  %v2508_v7 = vmul.f32 0.5, %v2507_v3  ;;  %v4956_v63 = vld [vmem:[%s5198_s5 + $0x8] ss:$16 sps:$4 sm:$0xff]  }
 0xce7   :  { %v4944_v6 = vadd.f32 %v2510_v55, %v2509_v2 }
 0xce9   :  { %3414 = vtanh.f32 %v4944_v6 }
 0xcf3   :  { %v3415_v62 = vpop.eup %3414 }
 0xcf4   :  { %v2513_v44 = vmul.f32 %v3415_v62, %v2508_v7 }
 0xcf6   :  { %v2518_v46 = vpack.c.bf16 %v2513_v44, %v2513_v44 }
 0xcf8   :  { %2552 = vmatmul.mubr.bf16.vlgmr.msra.gmra.mrb[84].mxu0 %v2518_v46  ;;  %2593 = vmatmul.mubr.bf16.vlgmr.msra.gmra.mrb[84].mxu1 %v2518_v46  ;;  %v3504_v46 = vld [vmem:[%s5198_s5 + $0xa0] ss:$16 sps:$4 sm:$0xff]  }
 0xcf9   :  { %2629 = vmatpush1.bf16.msra.mxu0 %v4950_v59  ;;  %2670 = vmatpush1.bf16.msra.mxu1 %v4956_v63 }
 0xcfa   :  { %2630 = vmatprep.subr.bf16.mxu0 %v4962_v4  ;;  %2671 = vmatprep.subr.bf16.mxu1 %v4968_v58 }
 0xcfb   :  { %2660 = vmatprep.mubr.bf16.mxu0 %v5233_v43  ;;  %2701 = vmatprep.mubr.bf16.mxu1 %v5233_v43 }
 0xcfd   :  { %2631 = vmatpush1.bf16.msra.mxu0 %v4976_v47  ;;  %2672 = vmatpush1.bf16.msra.mxu1 %v4982_v27 }
 0xcfe   :  { %2632 = vmatprep.subr.bf16.mxu0 %v4988_v50  ;;  %2673 = vmatprep.subr.bf16.mxu1 %v4994_v10 }
 0xd01   :  { %2633 = vmatpush1.bf16.msra.mxu0 %v5000_v11  ;;  %2674 = vmatpush1.bf16.msra.mxu1 %v5006_v12 }
 0xd02   :  { %2634 = vmatprep.subr.bf16.mxu0 %v5012_v13  ;;  %2675 = vmatprep.subr.bf16.mxu1 %v5018_v29 }
 0xd05   :  { %2635 = vmatpush1.bf16.msra.mxu0 %v5024_v30  ;;  %2676 = vmatpush1.bf16.msra.mxu1 %v5030_v31 }
 0xd06   :  { %2636 = vmatprep.subr.bf16.mxu0 %v5036_v32  ;;  %2677 = vmatprep.subr.bf16.mxu1 %v5042_v33 }
 0xd09   :  { %2637 = vmatpush1.bf16.msra.mxu0 %v5048_v35  ;;  %2678 = vmatpush1.bf16.msra.mxu1 %v5054_v15 }
 0xd0a   :  { %2638 = vmatprep.subr.bf16.mxu0 %v4543_v38  ;;  %2679 = vmatprep.subr.bf16.mxu1 %v4548_v18  ;;  %v5296_v38 = vld [vmem:[#allocation17_spill] sm:$0xff] }
 0xd0b   :  { %v1659_v18 = vadd.f32 %v5296_v38, %v4724_v61 }
 0xd0d   :  { %2639 = vmatpush1.bf16.msra.mxu0 %v4557_v39  ;;  %2680 = vmatpush1.bf16.msra.mxu1 %v4562_v40  ;;  %v5297_v39 = vld [vmem:[#allocation18_spill] sm:$0xff] }
 0xd0e   :  { %2640 = vmatprep.subr.bf16.mxu0 %v4569_v20  ;;  %2681 = vmatprep.subr.bf16.mxu1 %v4574_v8  ;;  %v1732_v40 = vadd.f32 %v5297_v39, %v4728_v56  ;;  %v5298_v20 = vld [vmem:[#allocation19_spill] sm:$0xff] }
 0xd0f   :  { %v1661_v8 = vadd.f32 %v5298_v20, %v4736_v42 }
 0xd11   :  { %2641 = vmatpush1.bf16.msra.mxu0 %v4579_v9  ;;  %2682 = vmatpush1.bf16.msra.mxu1 %v4584_v21  ;;  %v5299_v9 = vld [vmem:[#allocation20_spill] sm:$0xff] }
 0xd12   :  { %2642 = vmatprep.subr.bf16.mxu0 %v4591_v22  ;;  %2683 = vmatprep.subr.bf16.mxu1 %v4596_v23  ;;  %v1734_v21 = vadd.f32 %v5299_v9, %v4740_v34 }
 0xd15   :  { %2643 = vmatpush1.bf16.msra.mxu0 %v4603_v24  ;;  %2684 = vmatpush1.bf16.msra.mxu1 %v4608_v26 }
 0xd16   :  { %2737 = vmatprep.subr.bf16.mxu0 %v4926_v49  ;;  %2778 = vmatprep.subr.bf16.mxu1 %v4932_v48 }
 0xdcb   :  { %v2553_v22 = vpop.f32.mrb[84].mxu0  ;;  %v2594_v23 = vpop.f32.mrb[84].mxu1 }
 0xdcc   :  { %v2601_v24 = vadd.f32 %v2553_v22, %v1659_v18  ;;  %v2603_v26 = vadd.f32 %v2594_v23, %v1732_v40  ;;  %v2555_v36 = vpop.f32.mrb[85].mxu0  ;;  %v2596_v49 = vpop.f32.mrb[85].mxu1 }
 0xdcd   :  { %v2602_v16 = vadd.f32 %v2555_v36, %v1661_v8  ;;  %v2604_v48 = vadd.f32 %v2596_v49, %v1734_v21  ;;  %v2557_v37 = vpop.f32.mrb[86].mxu0  ;;  %v2598_v17 = vpop.f32.mrb[86].mxu1 }
 0xdce   :  { %v2605_v54 = vmul.f32 0.5, %v2601_v24  ;;  %v2558_v60 = vpop.f32.mrb[87].mxu0  ;;  %v2599_v28 = vpop.f32.mrb[87].mxu1 }
 0xdcf   :  { %v2609_v14 = vmul.f32 0.5, %v2602_v16  ;;  %v2614_v0 = vmul.f32 0.5, %v2604_v48 }
 0xdd0   :  { %3416 = vtanh.f32 %v2605_v54 }
 0xdd1   :  { %3418 = vtanh.f32 %v2609_v14 }
 0xdd2   :  { %3420 = vtanh.f32 %v2603_v26 }
 0xdd3   :  { %3422 = vtanh.f32 %v2614_v0 }
 0xdda   :  { %v3417_v41 = vpop.eup %3416 }
 0xddb   :  { %v3419_v5 = vpop.eup %3418  ;;  %v2607_v52 = vadd.f32 1.0, %v3417_v41 }
 0xddc   :  { %v2611_v51 = vadd.f32 1.0, %v3419_v5  ;;  %v3421_v57 = vpop.eup %3420 }
 0xddd   :  { %v2608_v25 = vmul.f32 0.5, %v2607_v52  ;;  %v3423_v2 = vpop.eup %3422 }
 0xdde   :  { %v2612_v1 = vmul.f32 0.5, %v2611_v51  ;;  %v2616_v19 = vadd.f32 1.0, %v3423_v2  ;;  %v3280_v2 = vld [vmem:[%s5200_s7 + $0x10] sm:$0xff]  }
 0xddf   :  { %v2619_v45 = vmul.f32 %v3421_v57, %v2608_v25 }
 0xde0   :  { %v2618_v53 = vmul.f32 %v2612_v1, %v4944_v6  ;;  %v2617_v3 = vmul.f32 0.5, %v2616_v19  ;;  %v3503_v6 = vld [vmem:[%s5198_s5 + $0xac] ss:$16 sps:$4 sm:$0xff]  }
 0xde1   :  { %v3281_v19 = vld [vmem:[%s5200_s7 + $0x18] sm:$0xff]  }
 0xde2   :  { %v5080_v55 = vadd.f32 %v2619_v45, %v2618_v53  ;;  %v3278_v45 = vld [vmem:[%s5200_s7] sm:$0xff]   ;;  %v3515_v53 = vmov 0.0  }
 0xde4   :  { %3424 = vtanh.f32 %v5080_v55 }
 0xdee   :  { %v3425_v7 = vpop.eup %3424 }
 0xdef   :  { %v2622_v62 = vmul.f32 %v3425_v7, %v2617_v3  ;;  %v3282_v3 = vld [vmem:[%s5200_s7 + $0x20] sm:$0xff]   ;;  %v3283_v7 = vld [vmem:[%s5200_s7 + $0x28] sm:$0xff]  }
 0xdf1   :  { %v2627_v44 = vpack.c.bf16 %v2622_v62, %v2622_v62  ;;  %v3284_v62 = vld [vmem:[%s5200_s7 + $0x30] sm:$0xff]  }
 0xdf3   :  { %2661 = vmatmul.mubr.bf16.vlgmr.msra.gmra.mrb[88].mxu0 %v2627_v44  ;;  %2702 = vmatmul.mubr.bf16.vlgmr.msra.gmra.mrb[88].mxu1 %v2627_v44  ;;  %v3285_v44 = vld [vmem:[%s5200_s7 + $0x38] sm:$0xff]  }
 0xdf4   :  { %2738 = vmatpush1.bf16.msra.mxu0 %v4950_v59  ;;  %2779 = vmatpush1.bf16.msra.mxu1 %v4956_v63  ;;  %v3505_v59 = vld [vmem:[%s5198_s5 + $0xa8] ss:$16 sps:$4 sm:$0xff]   ;;  %v3506_v63 = vld [vmem:[%s5198_s5 + $0xc4] ss:$16 sps:$4 sm:$0xff]  }
 0xdf5   :  { %2739 = vmatprep.subr.bf16.mxu0 %v4962_v4  ;;  %2780 = vmatprep.subr.bf16.mxu1 %v4968_v58  ;;  %v3507_v4 = vld [vmem:[%s5198_s5 + $0xcc] ss:$16 sps:$4 sm:$0xff]   ;;  %v3508_v58 = vld [vmem:[%s5198_s5 + $0xc0] ss:$16 sps:$4 sm:$0xff]  }
 0xdf6   :  { %2769 = vmatprep.mubr.bf16.mxu0 %v5233_v43  ;;  %2810 = vmatprep.mubr.bf16.mxu1 %v5233_v43  ;;  %v3502_v43 = vld [vmem:[%s5198_s5 + $0xa4] ss:$16 sps:$4 sm:$0xff]  }
 0xdf8   :  { %2740 = vmatpush1.bf16.msra.mxu0 %v4976_v47  ;;  %2781 = vmatpush1.bf16.msra.mxu1 %v4982_v27  ;;  %v3509_v47 = vld [vmem:[%s5198_s5 + $0xc8] ss:$16 sps:$4 sm:$0xff]   ;;  %v3510_v27 = vld [vmem:[%s5198_s5 + $0xe4] ss:$16 sps:$4 sm:$0xff]  }
 0xdf9   :  { %2741 = vmatprep.subr.bf16.mxu0 %v4988_v50  ;;  %2782 = vmatprep.subr.bf16.mxu1 %v4994_v10  ;;  %v3511_v50 = vld [vmem:[%s5198_s5 + $0xec] ss:$16 sps:$4 sm:$0xff]   ;;  %v3512_v10 = vld [vmem:[%s5198_s5 + $0xe0] ss:$16 sps:$4 sm:$0xff]  }
 0xdfc   :  { %2742 = vmatpush1.bf16.msra.mxu0 %v5000_v11  ;;  %2783 = vmatpush1.bf16.msra.mxu1 %v5006_v12  ;;  %v3513_v11 = vld [vmem:[%s5198_s5 + $0xe8] ss:$16 sps:$4 sm:$0xff]  }
 0xdfd   :  { %2743 = vmatprep.subr.bf16.mxu0 %v5012_v13  ;;  %2784 = vmatprep.subr.bf16.mxu1 %v5018_v29  ;;  %v5300_v12 = vld [vmem:[#allocation21_spill] sm:$0xff]  ;;  %v5301_v29 = vld [vmem:[#allocation22_spill] sm:$0xff] }
 0xdfe   :  { %v1665_v13 = vadd.f32 %v5300_v12, %v4724_v61 }
 0xe00   :  { %2744 = vmatpush1.bf16.msra.mxu0 %v5024_v30  ;;  %2785 = vmatpush1.bf16.msra.mxu1 %v5030_v31  ;;  %v1738_v30 = vadd.f32 %v5301_v29, %v4728_v56  ;;  %v5302_v31 = vld [vmem:[#allocation23_spill] sm:$0xff] }
 0xe01   :  { %2745 = vmatprep.subr.bf16.mxu0 %v5036_v32  ;;  %2786 = vmatprep.subr.bf16.mxu1 %v5042_v33  ;;  %v1667_v32 = vadd.f32 %v5302_v31, %v4736_v42  ;;  %v5303_v33 = vld [vmem:[#allocation24_spill] sm:$0xff] }
 0xe04   :  { %2746 = vmatpush1.bf16.msra.mxu0 %v5048_v35  ;;  %2787 = vmatpush1.bf16.msra.mxu1 %v5054_v15  ;;  %v1740_v35 = vadd.f32 %v5303_v33, %v4740_v34 }
 0xe05   :  { %2747 = vmatprep.subr.bf16.mxu0 %v3502_v43  ;;  %2788 = vmatprep.subr.bf16.mxu1 %v3503_v6  ;;  %v5304_v43 = vld [vmem:[#allocation25_spill] sm:$0xff] }
 0xe06   :  { %v1669_v6 = vadd.f32 %v5304_v43, %v4724_v61 }
 0xe08   :  { %2748 = vmatpush1.bf16.msra.mxu0 %v3504_v46  ;;  %2789 = vmatpush1.bf16.msra.mxu1 %v3505_v59  ;;  %v5305_v46 = vld [vmem:[#allocation26_spill] sm:$0xff] }
 0xe09   :  { %2749 = vmatprep.subr.bf16.mxu0 %v3506_v63  ;;  %2790 = vmatprep.subr.bf16.mxu1 %v3507_v4  ;;  %v1742_v59 = vadd.f32 %v5305_v46, %v4728_v56  ;;  %v5306_v63 = vld [vmem:[#allocation4_spill] sm:$0xff] }
 0xe0a   :  { %v1671_v4 = vadd.f32 %v5306_v63, %v4736_v42 }
 0xe0c   :  { %2750 = vmatpush1.bf16.msra.mxu0 %v3508_v58  ;;  %2791 = vmatpush1.bf16.msra.mxu1 %v3509_v47  ;;  %v5307_v58 = vld [vmem:[#allocation27_spill] sm:$0xff] }
 0xe0d   :  { %2751 = vmatprep.subr.bf16.mxu0 %v3510_v27  ;;  %2792 = vmatprep.subr.bf16.mxu1 %v3511_v50  ;;  %v1744_v47 = vadd.f32 %v5307_v58, %v4740_v34 }
 0xe10   :  { %2752 = vmatpush1.bf16.msra.mxu0 %v3512_v10  ;;  %2793 = vmatpush1.bf16.msra.mxu1 %v3513_v11 }
 0xe11   :  { %3101 = vmatprep.subr.bf16.mxu0 %v3515_v53 }
 0xec6   :  { %v2662_v15 = vpop.f32.mrb[88].mxu0  ;;  %v2703_v38 = vpop.f32.mrb[88].mxu1 }
 0xec7   :  { %v2710_v18 = vadd.f32 %v2662_v15, %v1665_v13  ;;  %v2712_v39 = vadd.f32 %v2703_v38, %v1738_v30  ;;  %v2664_v40 = vpop.f32.mrb[89].mxu0  ;;  %v2705_v20 = vpop.f32.mrb[89].mxu1 }
 0xec8   :  { %v2711_v8 = vadd.f32 %v2664_v40, %v1667_v32  ;;  %v2713_v9 = vadd.f32 %v2705_v20, %v1740_v35  ;;  %v2666_v21 = vpop.f32.mrb[90].mxu0  ;;  %v2707_v22 = vpop.f32.mrb[90].mxu1 }
 0xec9   :  { %v2714_v23 = vmul.f32 0.5, %v2710_v18  ;;  %v2667_v24 = vpop.f32.mrb[91].mxu0  ;;  %v2708_v26 = vpop.f32.mrb[91].mxu1 }
 0xeca   :  { %v2718_v36 = vmul.f32 0.5, %v2711_v8  ;;  %v2723_v49 = vmul.f32 0.5, %v2713_v9 }
 0xecb   :  { %3426 = vtanh.f32 %v2714_v23 }
 0xecc   :  { %3428 = vtanh.f32 %v2718_v36 }
 0xecd   :  { %3430 = vtanh.f32 %v2712_v39 }
 0xece   :  { %3432 = vtanh.f32 %v2723_v49 }
 0xed5   :  { %v3427_v16 = vpop.eup %3426 }
 0xed6   :  { %v3429_v48 = vpop.eup %3428  ;;  %v2716_v37 = vadd.f32 1.0, %v3427_v16  ;;  %v3083_v16 = vld [vmem:[%s5201_s8] ss:$0 sm:$0xff] }
 0xed7   :  { %v2720_v17 = vadd.f32 1.0, %v3429_v48  ;;  %v3431_v60 = vpop.eup %3430 }
 0xed8   :  { %v2717_v54 = vmul.f32 0.5, %v2716_v37  ;;  %v3433_v5 = vpop.eup %3432 }
 0xed9   :  { %v2721_v28 = vmul.f32 0.5, %v2720_v17  ;;  %v2725_v52 = vadd.f32 1.0, %v3433_v5 }
 0xeda   :  { %v2728_v14 = vmul.f32 %v3431_v60, %v2717_v54 }
 0xedb   :  { %v2727_v0 = vmul.f32 %v2721_v28, %v5080_v55  ;;  %v2726_v51 = vmul.f32 0.5, %v2725_v52  ;;  %v3279_v55 = vld [vmem:[%s5200_s7 + $0x8] sm:$0xff]  }
 0xedd   :  { %v5148_v41 = vadd.f32 %v2728_v14, %v2727_v0 }
 0xedf   :  { %3434 = vtanh.f32 %v5148_v41 }
 0xee9   :  { %v3435_v25 = vpop.eup %3434 }
 0xeea   :  { %v2731_v57 = vmul.f32 %v3435_v25, %v2726_v51 }
 0xeec   :  { %v2736_v1 = vpack.c.bf16 %v2731_v57, %v2731_v57 }
 0xeee   :  { %2770 = vmatmul.mubr.bf16.vlgmr.msra.gmra.mrb[92].mxu0 %v2736_v1  ;;  %2811 = vmatmul.mubr.bf16.vlgmr.msra.gmra.mrb[92].mxu1 %v2736_v1 }
 0xeef   :  { %3102 = vmatpush3.bf16.msra.mxu0 %v3278_v45  ;;  %3117 = vmatprep.mubr.msk.bf16.mxu0 %vm3516_vm1, %v3515_v53 }
 0xef0   :  { %3103 = vmatprep.subr.bf16.mxu0 %v3515_v53 }
 0xef3   :  { %3104 = vmatpush3.bf16.msra.mxu0 %v3279_v55 }
 0xef4   :  { %3105 = vmatprep.subr.bf16.mxu0 %v3515_v53 }
 0xef7   :  { %3106 = vmatpush3.bf16.msra.mxu0 %v3280_v2 }
 0xef8   :  { %3107 = vmatprep.subr.bf16.mxu0 %v3515_v53 }
 0xefb   :  { %3108 = vmatpush3.bf16.msra.mxu0 %v3281_v19 }
 0xefc   :  { %3109 = vmatprep.subr.bf16.mxu0 %v3515_v53 }
 0xeff   :  { %3110 = vmatpush3.bf16.msra.mxu0 %v3282_v3 }
 0xf00   :  { %3111 = vmatprep.subr.bf16.mxu0 %v3515_v53 }
 0xf03   :  { %3112 = vmatpush3.bf16.msra.mxu0 %v3283_v7 }
 0xf04   :  { %3113 = vmatprep.subr.bf16.mxu0 %v3515_v53 }
 0xf07   :  { %3114 = vmatpush3.bf16.msra.mxu0 %v3284_v62 }
 0xf08   :  { %3115 = vmatprep.subr.bf16.mxu0 %v3515_v53 }
 0xf0b   :  { %3116 = vmatpush3.bf16.msra.mxu0 %v3285_v44 }
 0xfc1   :  { %v2771_v27 = vpop.f32.mrb[92].mxu0  ;;  %v2812_v50 = vpop.f32.mrb[92].mxu1 }
 0xfc2   :  { %v2819_v10 = vadd.f32 %v2771_v27, %v1669_v6  ;;  %v2821_v11 = vadd.f32 %v2812_v50, %v1742_v59  ;;  %v2773_v12 = vpop.f32.mrb[93].mxu0  ;;  %v2814_v13 = vpop.f32.mrb[93].mxu1 }
 0xfc3   :  { %v2820_v29 = vadd.f32 %v2773_v12, %v1671_v4  ;;  %v2822_v30 = vadd.f32 %v2814_v13, %v1744_v47  ;;  %v2775_v31 = vpop.f32.mrb[94].mxu0  ;;  %v2816_v32 = vpop.f32.mrb[94].mxu1 }
 0xfc4   :  { %v2823_v61 = vmul.f32 0.5, %v2819_v10  ;;  %v2776_v33 = vpop.f32.mrb[95].mxu0  ;;  %v2817_v35 = vpop.f32.mrb[95].mxu1 }
 0xfc5   :  { %v2827_v56 = vmul.f32 0.5, %v2820_v29  ;;  %v2832_v42 = vmul.f32 0.5, %v2822_v30 }
 0xfc6   :  { %3436 = vtanh.f32 %v2823_v61 }
 0xfc7   :  { %3438 = vtanh.f32 %v2827_v56 }
 0xfc8   :  { %3440 = vtanh.f32 %v2821_v11 }
 0xfc9   :  { %3442 = vtanh.f32 %v2832_v42 }
 0xfd0   :  { %v3437_v15 = vpop.eup %3436 }
 0xfd1   :  { %v3439_v34 = vpop.eup %3438  ;;  %v2825_v38 = vadd.f32 1.0, %v3437_v15 }
 0xfd2   :  { %v2829_v18 = vadd.f32 1.0, %v3439_v34  ;;  %v3441_v40 = vpop.eup %3440 }
 0xfd3   :  { %v2826_v39 = vmul.f32 0.5, %v2825_v38  ;;  %v3443_v22 = vpop.eup %3442 }
 0xfd4   :  { %v2830_v20 = vmul.f32 0.5, %v2829_v18  ;;  %v2834_v23 = vadd.f32 1.0, %v3443_v22 }
 0xfd5   :  { %v2837_v8 = vmul.f32 %v3441_v40, %v2826_v39 }
 0xfd6   :  { %v2836_v9 = vmul.f32 %v2830_v20, %v5148_v41  ;;  %v2835_v24 = vmul.f32 0.5, %v2834_v23 }
 0xfd8   :  { %v2838_v21 = vadd.f32 %v2837_v8, %v2836_v9 }
 0xfda   :  { %3444 = vtanh.f32 %v2838_v21 }
 0xfe4   :  { %v3445_v26 = vpop.eup %3444 }
 0xfe5   :  { %v2840_v36 = vmul.f32 %v3445_v26, %v2835_v24 }
 0xfe7   :  { %v2841_v49 = vpack.c.bf16 %v2840_v36, %v2840_v36 }
 0xfe9   :  { %3118 = vmatmul.mubr.bf16.vlgmr.msra.gmra.mrb[96].mxu0 %v2841_v49 }
0x10bc   :  { %v2947_v48 = vpop.f32.mrb[96].mxu0 }
0x10bd   :  { %v2948_v37 = vadd.f32 %v3083_v16, %v2947_v48  ;;  %v3119_v17 = vpop.f32.mrb[97].mxu0 }
0x10be   :  { %v2950_v54 = vpop.f32.mrb[98].mxu0 }
0x10bf   :  { %v3120_v60 = vpop.f32.mrb[99].mxu0  ;;  %v2954_v28 = vsel %vm2953_vm2, %v2948_v37, -inf }
0x10c0   :  { %2955 = vmax.xlane.f32.xlu0 %v2954_v28 }
0x114d   :  { %v2956_v14 = vpop.xlane.xlu0 %2955 }
0x114e   :  { %v2957_v0 = vsub.f32 %v2948_v37, %v2956_v14 }
0x1150   :  { %v2958_v41 = vmul.f32 1.442695, %v2957_v0 }
0x1152   :  { %3446 = vpow2.f32 %v2958_v41 }
0x115c   :  { %v3447_v5 = vpop.eup %3446 }
0x115d   :  { %v2960_v52 = vsel %vm2953_vm2, %v3447_v5, 0.0 }
0x115e   :  { %2961 = vadd.xlane.f32.xlu0 %v2960_v52 }
0x11eb   :  { %v2962_v51 = vpop.xlane.xlu0 %2961 }
0x11ec   :  { %3448 = vlog2.f32 %v2962_v51 }
0x11f6   :  { %v3449_v25 = vpop.eup %3448 }
0x11f7   :  { %v2964_v57 = vmul.f32 0.6931472, %v3449_v25 }
0x11f9   :  { %v2965_v1 = vsub.f32 %v2957_v0, %v2964_v57 }
0x11fb   :  { %2966 = vst.msk [vmem:[%s5202_s9] sm:$0xff] %vm2953_vm2, %v2965_v1 }

</bundles_post_ra>
